<compile_context>
chip_gen: v6e
topology: v6e:2x2x1
jax: 0.10.0
libtpu: 0.0.40
codegen_flags: <defaults>
</compile_context>

<pallas_src>
import functools

import jax
import jax.numpy as jnp
from jax import lax
from jax.experimental import pallas as pl

# ----- module hyper-parameters (match CapsuleUnit defaults) -----
HIDDEN = 32          # hidden_size
NUM_CAPSULE = 8      # num_capsule
DIM_CAPSULE = 8      # dim_capsule
ROUTINGS = 4         # routings
SEQ = 8              # seq_len of the example input
BATCH = 2

_HI = jax.lax.Precision.HIGHEST


def _capsule_kernel(x_ref, w_ref, blk_ref, grp_ref, o_ref, *,
                    num_capsule, dim_capsule, routings):
    S = x_ref.shape[0]            # seq rows (sublanes)
    L = w_ref.shape[1]            # B * num_capsule * dim_capsule (lane axis)
    NC, DC = num_capsule, dim_capsule
    dc_f = jnp.float32(DC)
    eps = jnp.float32(1e-8)

    # ---- projection, already in the batch-in-lanes layout -------------------
    #   u[s, b*NC*DC + n*DC + d] == u_hat[b, s, n, d]
    # one (S, B*H) @ (B*H, L) MXU matmul; w_ref is block-diagonal per batch.
    u = jnp.dot(x_ref[...], w_ref[...],
                preferred_element_type=jnp.float32, precision=_HI)      # (S, L)

    blk = blk_ref[...]   # (L, L): 1 iff same capsule (DC-wide lane blocks)
    grp = grp_ref[...]   # (L, L): 1 iff same batch element (NC*DC-wide lane blocks)

    # ---- routing iteration 0 (peeled): b == 0 -> softmax is exactly uniform,
    #      c = 1/NC, so s is just a scaled sublane (seq) sum of u.
    s = jnp.sum(u, axis=0, keepdims=True) * jnp.float32(1.0 / NC)       # (1, L)

    for _ in range(1, routings):
        # Squash-norm dot and agreement dot depend only on s -> independent,
        # issued back-to-back into the MXU; rsqrt applied afterwards.
        sq = jnp.dot(s * s, blk,
                     preferred_element_type=jnp.float32, precision=_HI)  # (1, L) per-capsule ||s||^2 (replicated)
        g = jnp.dot(u * jnp.broadcast_to(s, (S, L)), blk,
                    preferred_element_type=jnp.float32, precision=_HI)   # (S, L) sum_d u*s (replicated)
        b = g * jnp.broadcast_to(lax.rsqrt(sq + eps), (S, L))            # agreement logits, replicated over DC lanes

        # Softmax over capsules within each batch-element lane group.
        # Subtracting the per-row max over ALL lanes is a constant shift per row,
        # so each group's softmax is unchanged; denom is replicated by the
        # block-diagonal group selector (it equals DC * true per-group denom).
        m = jnp.max(b, axis=-1, keepdims=True)                           # (S, 1)  XLU lane reduce
        e = jnp.exp(b - m)                                               # (S, L)  EUP
        denom = jnp.dot(e, grp,
                        preferred_element_type=jnp.float32, precision=_HI)
        r0 = pl.reciprocal(denom, approx=True)                           # EUP
        r1 = r0 * (2.0 - denom * r0)                                     # one Newton step -> ~f32 exact
        c_exp = e * (dc_f * r1)                                          # coupling coeffs, replicated over DC lanes

        # Weighted sum over seq: plain sublane (XLU) reduce, no MXU round-trip.
        s = jnp.sum(c_exp * u, axis=0, keepdims=True)                    # (1, L)

    # final squash -> single lane-dense (1, L) store
    sq = jnp.dot(s * s, blk, preferred_element_type=jnp.float32, precision=_HI)
    o_ref[...] = (s * lax.rsqrt(sq + eps)).astype(o_ref.dtype)


def capsule_unit(inputs, W, *, num_capsule=NUM_CAPSULE,
                 dim_capsule=DIM_CAPSULE, routings=ROUTINGS):
    """inputs: (B, S, H) float32, W: (H, NC*DC) float32 -> (B, NC*DC)."""
    B, S, H = inputs.shape
    OD = num_capsule * dim_capsule
    L = B * OD
    assert W.shape == (H, OD)

    # Batch-in-lanes layout, built outside the kernel (cheap XLA ops):
    #   x2d[s, b*H + h] = inputs[b, s, h]
    x2d = jnp.transpose(inputs, (1, 0, 2)).reshape(S, B * H)             # (S, B*H)
    # Block-diagonal W so the projection lands directly in the (S, L) layout.
    big_w = jnp.kron(jnp.eye(B, dtype=W.dtype), W)                       # (B*H, L)

    # Constant 0/1 selector matrices (hoisted out of the kernel entirely).
    lane = jnp.arange(L)
    blk = (lane[:, None] // dim_capsule == lane[None, :] // dim_capsule
           ).astype(jnp.float32)                                         # per-capsule blocks
    grp = (lane[:, None] // OD == lane[None, :] // OD
           ).astype(jnp.float32)                                         # per-batch lane groups

    kernel = functools.partial(_capsule_kernel, num_capsule=num_capsule,
                               dim_capsule=dim_capsule, routings=routings)

    out = pl.pallas_call(
        kernel,
        out_shape=jax.ShapeDtypeStruct((1, L), jnp.float32),
        # no grid: one kernel invocation, whole operands resident in VMEM
        in_specs=[
            pl.BlockSpec((S, B * H), lambda: (0, 0)),
            pl.BlockSpec((B * H, L), lambda: (0, 0)),
            pl.BlockSpec((L, L), lambda: (0, 0)),
            pl.BlockSpec((L, L), lambda: (0, 0)),
        ],
        out_specs=pl.BlockSpec((1, L), lambda: (0, 0)),
    )(x2d, big_w, blk, grp)

    return out.reshape(B, OD)


def capsule_unit_ref(inputs, W, *, num_capsule=NUM_CAPSULE,
                     dim_capsule=DIM_CAPSULE, routings=ROUTINGS):
    """Pure-JAX reference mirroring the torch forward, for validation."""
    B, S, H = inputs.shape
    u_hat = jnp.matmul(inputs, W, precision=_HI)               # (B, S, NC*DC)
    u_hat = u_hat.reshape(B, S, num_capsule, dim_capsule)
    u_hat = jnp.transpose(u_hat, (0, 2, 1, 3))                 # (B, NC, S, DC)
    b = jnp.zeros(u_hat.shape[:3], dtype=jnp.float32)          # (B, NC, S)
    x = None
    for i in range(routings):
        c = jax.nn.softmax(b, axis=1)                          # softmax over NC
        x = jnp.einsum('bij,bijk->bik', c, u_hat, precision=_HI)
        x = x / jnp.sqrt(jnp.sum(x * x, axis=-1, keepdims=True) + 1e-8)
        if i < routings - 1:
            b = jnp.einsum('bik,bijk->bij', x, u_hat, precision=_HI)
    return x.reshape(B, num_capsule * dim_capsule)


if __name__ == "__main__":
    key = jax.random.PRNGKey(0)
    k_x, k_w = jax.random.split(key)

    # Deterministic xavier-normal-like init for W (torch shape (1, H, NC*DC)).
    out_dim = NUM_CAPSULE * DIM_CAPSULE
    fan_in = HIDDEN * out_dim
    fan_out = 1 * out_dim
    std = (2.0 / (fan_in + fan_out)) ** 0.5
    W = (std * jax.random.normal(k_w, (HIDDEN, out_dim))).astype(jnp.float32)

    x = jax.random.normal(k_x, (BATCH, SEQ, HIDDEN), dtype=jnp.float32)

    out = jax.block_until_ready(capsule_unit(x, W))
    ref = capsule_unit_ref(x, W)

    assert out.shape == (BATCH, out_dim)
    assert jnp.allclose(out, ref, atol=1e-4, rtol=1e-4), "mismatch vs reference"

    print("KERNEL_OK")
</pallas_src>

<mosaic_0001>
module attributes {stable_mosaic.version = 11 : i64} {
  func.func @_capsule_kernel(%arg0: memref<8x64xf32, #tpu.memory_space<vmem>>, %arg1: memref<64x128xf32, #tpu.memory_space<vmem>>, %arg2: memref<128x128xf32, #tpu.memory_space<vmem>>, %arg3: memref<128x128xf32, #tpu.memory_space<vmem>>, %arg4: memref<1x128xf32, #tpu.memory_space<vmem>>) attributes {dimension_semantics = [], scalar_prefetch = 0 : i64, scratch_operands = 0 : i64, tpu.core_type = #tpu.core_type<tc>} {
    %c0 = arith.constant 0 : index
    %c0_0 = arith.constant 0 : index
    %0 = vector.load %arg0[%c0, %c0_0] : memref<8x64xf32, #tpu.memory_space<vmem>>, vector<8x64xf32>
    %c0_1 = arith.constant 0 : index
    %c0_2 = arith.constant 0 : index
    %1 = vector.load %arg1[%c0_1, %c0_2] : memref<64x128xf32, #tpu.memory_space<vmem>>, vector<64x128xf32>
    %cst = arith.constant dense<0.000000e+00> : vector<8x128xf32>
    %2 = tpu.matmul %0, %1, %cst {dimension_numbers = #tpu.dot_dimension_numbers<[1], [0], [0], [1], [0, 0, 1, 1], [], []>, precision = #tpu.contract_precision<fp32>} : vector<8x64xf32>, vector<64x128xf32>, vector<8x128xf32> -> vector<8x128xf32>
    %c0_3 = arith.constant 0 : index
    %c0_4 = arith.constant 0 : index
    %3 = vector.load %arg2[%c0_3, %c0_4] : memref<128x128xf32, #tpu.memory_space<vmem>>, vector<128x128xf32>
    %c0_5 = arith.constant 0 : index
    %c0_6 = arith.constant 0 : index
    %4 = vector.load %arg3[%c0_5, %c0_6] : memref<128x128xf32, #tpu.memory_space<vmem>>, vector<128x128xf32>
    %cst_7 = arith.constant dense<0.000000e+00> : vector<128xf32>
    %5 = vector.multi_reduction <add>, %2, %cst_7 [0] : vector<8x128xf32> to vector<128xf32>
    %6 = vector.shape_cast %5 : vector<128xf32> to vector<1x128xf32>
    %cst_8 = arith.constant 1.250000e-01 : f32
    %7 = vector.broadcast %cst_8 : f32 to vector<1x128xf32>
    %8 = arith.mulf %6, %7 : vector<1x128xf32>
    %9 = arith.mulf %8, %8 : vector<1x128xf32>
    %cst_9 = arith.constant dense<0.000000e+00> : vector<1x128xf32>
    %10 = tpu.matmul %9, %3, %cst_9 {dimension_numbers = #tpu.dot_dimension_numbers<[1], [0], [0], [1], [0, 0, 1, 1], [], []>, precision = #tpu.contract_precision<fp32>} : vector<1x128xf32>, vector<128x128xf32>, vector<1x128xf32> -> vector<1x128xf32>
    %11 = vector.shape_cast %8 : vector<1x128xf32> to vector<1x128xf32>
    %12 = vector.broadcast %11 : vector<1x128xf32> to vector<8x128xf32>
    %13 = arith.mulf %2, %12 : vector<8x128xf32>
    %cst_10 = arith.constant dense<0.000000e+00> : vector<8x128xf32>
    %14 = tpu.matmul %13, %3, %cst_10 {dimension_numbers = #tpu.dot_dimension_numbers<[1], [0], [0], [1], [0, 0, 1, 1], [], []>, precision = #tpu.contract_precision<fp32>} : vector<8x128xf32>, vector<128x128xf32>, vector<8x128xf32> -> vector<8x128xf32>
    %cst_11 = arith.constant 9.99999993E-9 : f32
    %15 = vector.broadcast %cst_11 : f32 to vector<1x128xf32>
    %16 = arith.addf %10, %15 : vector<1x128xf32>
    %17 = math.rsqrt %16 : vector<1x128xf32>
    %18 = vector.shape_cast %17 : vector<1x128xf32> to vector<1x128xf32>
    %19 = vector.broadcast %18 : vector<1x128xf32> to vector<8x128xf32>
    %20 = arith.mulf %14, %19 : vector<8x128xf32>
    %cst_12 = arith.constant dense<0xFF800000> : vector<8xf32>
    %21 = vector.multi_reduction <maximumf>, %20, %cst_12 [1] : vector<8x128xf32> to vector<8xf32>
    %22 = vector.shape_cast %21 : vector<8xf32> to vector<8x1xf32>
    %23 = vector.broadcast %22 : vector<8x1xf32> to vector<8x128xf32>
    %24 = arith.subf %20, %23 : vector<8x128xf32>
    %25 = math.exp %24 : vector<8x128xf32>
    %cst_13 = arith.constant dense<0.000000e+00> : vector<8x128xf32>
    %26 = tpu.matmul %25, %4, %cst_13 {dimension_numbers = #tpu.dot_dimension_numbers<[1], [0], [0], [1], [0, 0, 1, 1], [], []>, precision = #tpu.contract_precision<fp32>} : vector<8x128xf32>, vector<128x128xf32>, vector<8x128xf32> -> vector<8x128xf32>
    %27 = tpu.reciprocal %26 {approx = true} : vector<8x128xf32> -> vector<8x128xf32>
    %28 = arith.mulf %26, %27 : vector<8x128xf32>
    %cst_14 = arith.constant 2.000000e+00 : f32
    %29 = vector.broadcast %cst_14 : f32 to vector<8x128xf32>
    %30 = arith.subf %29, %28 : vector<8x128xf32>
    %31 = arith.mulf %27, %30 : vector<8x128xf32>
    %cst_15 = arith.constant 8.000000e+00 : f32
    %32 = vector.broadcast %cst_15 : f32 to vector<8x128xf32>
    %33 = arith.mulf %32, %31 : vector<8x128xf32>
    %34 = arith.mulf %25, %33 : vector<8x128xf32>
    %35 = arith.mulf %34, %2 : vector<8x128xf32>
    %cst_16 = arith.constant dense<0.000000e+00> : vector<128xf32>
    %36 = vector.multi_reduction <add>, %35, %cst_16 [0] : vector<8x128xf32> to vector<128xf32>
    %37 = vector.shape_cast %36 : vector<128xf32> to vector<1x128xf32>
    %38 = arith.mulf %37, %37 : vector<1x128xf32>
    %cst_17 = arith.constant dense<0.000000e+00> : vector<1x128xf32>
    %39 = tpu.matmul %38, %3, %cst_17 {dimension_numbers = #tpu.dot_dimension_numbers<[1], [0], [0], [1], [0, 0, 1, 1], [], []>, precision = #tpu.contract_precision<fp32>} : vector<1x128xf32>, vector<128x128xf32>, vector<1x128xf32> -> vector<1x128xf32>
    %40 = vector.shape_cast %37 : vector<1x128xf32> to vector<1x128xf32>
    %41 = vector.broadcast %40 : vector<1x128xf32> to vector<8x128xf32>
    %42 = arith.mulf %2, %41 : vector<8x128xf32>
    %cst_18 = arith.constant dense<0.000000e+00> : vector<8x128xf32>
    %43 = tpu.matmul %42, %3, %cst_18 {dimension_numbers = #tpu.dot_dimension_numbers<[1], [0], [0], [1], [0, 0, 1, 1], [], []>, precision = #tpu.contract_precision<fp32>} : vector<8x128xf32>, vector<128x128xf32>, vector<8x128xf32> -> vector<8x128xf32>
    %cst_19 = arith.constant 9.99999993E-9 : f32
    %44 = vector.broadcast %cst_19 : f32 to vector<1x128xf32>
    %45 = arith.addf %39, %44 : vector<1x128xf32>
    %46 = math.rsqrt %45 : vector<1x128xf32>
    %47 = vector.shape_cast %46 : vector<1x128xf32> to vector<1x128xf32>
    %48 = vector.broadcast %47 : vector<1x128xf32> to vector<8x128xf32>
    %49 = arith.mulf %43, %48 : vector<8x128xf32>
    %cst_20 = arith.constant dense<0xFF800000> : vector<8xf32>
    %50 = vector.multi_reduction <maximumf>, %49, %cst_20 [1] : vector<8x128xf32> to vector<8xf32>
    %51 = vector.shape_cast %50 : vector<8xf32> to vector<8x1xf32>
    %52 = vector.broadcast %51 : vector<8x1xf32> to vector<8x128xf32>
    %53 = arith.subf %49, %52 : vector<8x128xf32>
    %54 = math.exp %53 : vector<8x128xf32>
    %cst_21 = arith.constant dense<0.000000e+00> : vector<8x128xf32>
    %55 = tpu.matmul %54, %4, %cst_21 {dimension_numbers = #tpu.dot_dimension_numbers<[1], [0], [0], [1], [0, 0, 1, 1], [], []>, precision = #tpu.contract_precision<fp32>} : vector<8x128xf32>, vector<128x128xf32>, vector<8x128xf32> -> vector<8x128xf32>
    %56 = tpu.reciprocal %55 {approx = true} : vector<8x128xf32> -> vector<8x128xf32>
    %57 = arith.mulf %55, %56 : vector<8x128xf32>
    %cst_22 = arith.constant 2.000000e+00 : f32
    %58 = vector.broadcast %cst_22 : f32 to vector<8x128xf32>
    %59 = arith.subf %58, %57 : vector<8x128xf32>
    %60 = arith.mulf %56, %59 : vector<8x128xf32>
    %cst_23 = arith.constant 8.000000e+00 : f32
    %61 = vector.broadcast %cst_23 : f32 to vector<8x128xf32>
    %62 = arith.mulf %61, %60 : vector<8x128xf32>
    %63 = arith.mulf %54, %62 : vector<8x128xf32>
    %64 = arith.mulf %63, %2 : vector<8x128xf32>
    %cst_24 = arith.constant dense<0.000000e+00> : vector<128xf32>
    %65 = vector.multi_reduction <add>, %64, %cst_24 [0] : vector<8x128xf32> to vector<128xf32>
    %66 = vector.shape_cast %65 : vector<128xf32> to vector<1x128xf32>
    %67 = arith.mulf %66, %66 : vector<1x128xf32>
    %cst_25 = arith.constant dense<0.000000e+00> : vector<1x128xf32>
    %68 = tpu.matmul %67, %3, %cst_25 {dimension_numbers = #tpu.dot_dimension_numbers<[1], [0], [0], [1], [0, 0, 1, 1], [], []>, precision = #tpu.contract_precision<fp32>} : vector<1x128xf32>, vector<128x128xf32>, vector<1x128xf32> -> vector<1x128xf32>
    %69 = vector.shape_cast %66 : vector<1x128xf32> to vector<1x128xf32>
    %70 = vector.broadcast %69 : vector<1x128xf32> to vector<8x128xf32>
    %71 = arith.mulf %2, %70 : vector<8x128xf32>
    %cst_26 = arith.constant dense<0.000000e+00> : vector<8x128xf32>
    %72 = tpu.matmul %71, %3, %cst_26 {dimension_numbers = #tpu.dot_dimension_numbers<[1], [0], [0], [1], [0, 0, 1, 1], [], []>, precision = #tpu.contract_precision<fp32>} : vector<8x128xf32>, vector<128x128xf32>, vector<8x128xf32> -> vector<8x128xf32>
    %cst_27 = arith.constant 9.99999993E-9 : f32
    %73 = vector.broadcast %cst_27 : f32 to vector<1x128xf32>
    %74 = arith.addf %68, %73 : vector<1x128xf32>
    %75 = math.rsqrt %74 : vector<1x128xf32>
    %76 = vector.shape_cast %75 : vector<1x128xf32> to vector<1x128xf32>
    %77 = vector.broadcast %76 : vector<1x128xf32> to vector<8x128xf32>
    %78 = arith.mulf %72, %77 : vector<8x128xf32>
    %cst_28 = arith.constant dense<0xFF800000> : vector<8xf32>
    %79 = vector.multi_reduction <maximumf>, %78, %cst_28 [1] : vector<8x128xf32> to vector<8xf32>
    %80 = vector.shape_cast %79 : vector<8xf32> to vector<8x1xf32>
    %81 = vector.broadcast %80 : vector<8x1xf32> to vector<8x128xf32>
    %82 = arith.subf %78, %81 : vector<8x128xf32>
    %83 = math.exp %82 : vector<8x128xf32>
    %cst_29 = arith.constant dense<0.000000e+00> : vector<8x128xf32>
    %84 = tpu.matmul %83, %4, %cst_29 {dimension_numbers = #tpu.dot_dimension_numbers<[1], [0], [0], [1], [0, 0, 1, 1], [], []>, precision = #tpu.contract_precision<fp32>} : vector<8x128xf32>, vector<128x128xf32>, vector<8x128xf32> -> vector<8x128xf32>
    %85 = tpu.reciprocal %84 {approx = true} : vector<8x128xf32> -> vector<8x128xf32>
    %86 = arith.mulf %84, %85 : vector<8x128xf32>
    %cst_30 = arith.constant 2.000000e+00 : f32
    %87 = vector.broadcast %cst_30 : f32 to vector<8x128xf32>
    %88 = arith.subf %87, %86 : vector<8x128xf32>
    %89 = arith.mulf %85, %88 : vector<8x128xf32>
    %cst_31 = arith.constant 8.000000e+00 : f32
    %90 = vector.broadcast %cst_31 : f32 to vector<8x128xf32>
    %91 = arith.mulf %90, %89 : vector<8x128xf32>
    %92 = arith.mulf %83, %91 : vector<8x128xf32>
    %93 = arith.mulf %92, %2 : vector<8x128xf32>
    %cst_32 = arith.constant dense<0.000000e+00> : vector<128xf32>
    %94 = vector.multi_reduction <add>, %93, %cst_32 [0] : vector<8x128xf32> to vector<128xf32>
    %95 = vector.shape_cast %94 : vector<128xf32> to vector<1x128xf32>
    %96 = arith.mulf %95, %95 : vector<1x128xf32>
    %cst_33 = arith.constant dense<0.000000e+00> : vector<1x128xf32>
    %97 = tpu.matmul %96, %3, %cst_33 {dimension_numbers = #tpu.dot_dimension_numbers<[1], [0], [0], [1], [0, 0, 1, 1], [], []>, precision = #tpu.contract_precision<fp32>} : vector<1x128xf32>, vector<128x128xf32>, vector<1x128xf32> -> vector<1x128xf32>
    %cst_34 = arith.constant 9.99999993E-9 : f32
    %98 = vector.broadcast %cst_34 : f32 to vector<1x128xf32>
    %99 = arith.addf %97, %98 : vector<1x128xf32>
    %100 = math.rsqrt %99 : vector<1x128xf32>
    %101 = arith.mulf %95, %100 : vector<1x128xf32>
    %c0_35 = arith.constant 0 : index
    %c0_36 = arith.constant 0 : index
    %102 = vector.load %arg4[%c0_35, %c0_36] : memref<1x128xf32, #tpu.memory_space<vmem>>, vector<1x128xf32>
    tpu.vector_store %arg4[%c0_35, %c0_36], %101 {strides = array<i32>} : memref<1x128xf32, #tpu.memory_space<vmem>>, vector<1x128xf32>,
    return
  }
}

</mosaic_0001>

<bundles_post_ra>
// kernel: tpu_custom_call.1
= control target key start
LH: loop header
LB: loop body
LE: loop exit
PB: predicated region body
PF: predicated region fallthrough
CT: control target
= control target key end

     0   :  { %9 = vsyncpa [#allocation3], 0  ;;  %s13448_s0 = inlined_call_operand.hbm [shape: f32[8,64], index: 0, kind: input, shape index: {}]   ;;  %s13449_s1 = inlined_call_operand.hbm [shape: f32[64,128], index: 1, kind: input, shape index: {}]   ;;  %s13450_s2 = inlined_call_operand.hbm [shape: f32[128,128], index: 2, kind: input, shape index: {}]   ;;  %s13451_s3 = inlined_call_operand.hbm [shape: f32[128,128], index: 3, kind: input, shape index: {}]   ;;  %s13452_s4 = inlined_call_operand.hbm [shape: f32[1,128], index: 4, kind: output, shape index: {}]  }
   0x1   :  { %10 = vsyncpa [#allocation6], 0 }
   0x2   :  { %11 = vsyncpa [#allocation9], 0 }
   0x3   :  { %12 = vsyncpa [#allocation4], 0  ;;  %s10594_s15 = smov [#allocation5]  }
   0x4   :  { %s28_s16 = sshll.u32 %s10594_s15, 4  ;;  %s29_s16 = int_to_ptr.vmem [resolvable:$true] %s28_s16 }
   0x5   :  { %s10494_s17 = scalar_lea.vmem %s29_s16, 1024  ;;  %p10499_p1 = scmp.lt.s32.totalorder %s29_s16, %s29_s16 }
   0x6   :  { %p10495_p0 = scmp.ne.s32.totalorder %s29_s16, %s10494_s17  ;;  %p10500_p2 = scmp.lt.s32.totalorder %s10494_s17, %s10494_s17 }
   0x8   :  { %p10501_p3 = por %p10500_p2, %p10499_p1 }
   0xa   :  { %p10502_p4 = pnand %p10501_p3, %p10495_p0 }
   0xc   :  { %10505 = shalt.err (!%p10502_p4)
}
   0xd   :  { %s10595_s18 = smov 128   ;;  %s10596_s19 = smov 8  }
   0xe   :  { %34 = dma.hbm_to_vmem [thread:$0]  %s13449_s1, 1024, %s29_s16, [#allocation6], %s10595_s18, %s10595_s18, %s10596_s19  }
   0xf   :  { %s10597_s22 = smov [#allocation2]   ;;  %s10598_s24 = smov [#allocation7]  }
  0x10   :  { %s19_s23 = sshll.u32 %s10597_s22, 4  ;;  %s40_s25 = sshll.u32 %s10598_s24, 4  ;;  %s20_s23 = int_to_ptr.vmem [resolvable:$true] %s19_s23  ;;  %s41_s25 = int_to_ptr.vmem [resolvable:$true] %s40_s25 }
  0x11   :  { %s10514_s26 = scalar_lea.vmem %s20_s23, 128  ;;  %p10519_p6 = scmp.lt.s32.totalorder %s20_s23, %s20_s23 }
  0x12   :  { %p10515_p5 = scmp.ne.s32.totalorder %s20_s23, %s10514_s26  ;;  %p10520_p7 = scmp.lt.s32.totalorder %s10514_s26, %s10514_s26 }
  0x14   :  { %p10521_p8 = por %p10520_p7, %p10519_p6 }
  0x16   :  { %p10522_p9 = pnand %p10521_p8, %p10515_p5 }
  0x18   :  { %10525 = shalt.err (!%p10522_p9)
}
  0x19   :  { %22 = dma.hbm_to_vmem [thread:$0]  %s13448_s0, 128, %s20_s23, [#allocation3]  }
  0x1a   :  { %s10534_s29 = scalar_lea.vmem %s41_s25, 2048  ;;  %p10539_p11 = scmp.lt.s32.totalorder %s41_s25, %s41_s25 }
  0x1b   :  { %p10535_p10 = scmp.ne.s32.totalorder %s41_s25, %s10534_s29  ;;  %p10540_p12 = scmp.lt.s32.totalorder %s10534_s29, %s10534_s29 }
  0x1d   :  { %p10541_p13 = por %p10540_p12, %p10539_p11 }
  0x1f   :  { %p10542_p0 = pnand %p10541_p13, %p10535_p10 }
  0x21   :  { %10545 = shalt.err (!%p10542_p0)
}
  0x22   :  { %46 = dma.hbm_to_vmem [thread:$0]  %s13450_s2, 2048, %s41_s25, [#allocation6], %s10595_s18, %s10595_s18, %s10596_s19  }
  0x23   :  { %s10599_s5 = smov [#allocation8]  }
  0x24   :  { %s52_s6 = sshll.u32 %s10599_s5, 4  ;;  %s53_s6 = int_to_ptr.vmem [resolvable:$true] %s52_s6 }
  0x25   :  { %s10554_s7 = scalar_lea.vmem %s53_s6, 2048  ;;  %p10559_p2 = scmp.lt.s32.totalorder %s53_s6, %s53_s6 }
  0x26   :  { %p10555_p1 = scmp.ne.s32.totalorder %s53_s6, %s10554_s7  ;;  %p10560_p3 = scmp.lt.s32.totalorder %s10554_s7, %s10554_s7 }
  0x28   :  { %p10561_p4 = por %p10560_p3, %p10559_p2 }
  0x2a   :  { %p10562_p5 = pnand %p10561_p4, %p10555_p1 }
  0x2c   :  { %10565 = shalt.err (!%p10562_p5)
}
  0x2d   :  { %58 = dma.hbm_to_vmem [thread:$0]  %s13451_s3, 2048, %s53_s6, [#allocation9], %s10595_s18, %s10595_s18, %s10596_s19  }
  0x2e   :  { %10586 = dma.done.wait [#allocation3], 128  }
  0x2f   :  { %10587 = vsyncadd [#allocation3], 4294967168 }
  0x30   :  { %10588 = dma.done.wait [#allocation6], 3072  }
  0x31   :  { %10589 = vsyncadd [#allocation6], 4294964224 }
  0x32   :  { %10590 = dma.done.wait [#allocation9], 2048  }
  0x33   :  { %10591 = vsyncadd [#allocation9], 4294965248  ;;  %v13489_v0 = vmov 0.0   ;;  %vm10601_vm0 = vmmov 0   ;;  %v79_v1 = vld [vmem:[#allocation5 + $0x38] sm:$0xff]  ;;  %v78_v2 = vld [vmem:[#allocation5 + $0x30] sm:$0xff] }
  0x34   :  { %8243 = vmatprep.subr.mxu0 %v13489_v0  ;;  %8262 = vmatprep.subr.mxu1 %v13489_v0  ;;  %v77_v3 = vld [vmem:[#allocation5 + $0x28] sm:$0xff]  ;;  %vm80_vm1 = vcmask 523264   ;;  %v10655_v4 = vand.u32 4294901760, %v79_v1  ;;  %v10657_v5 = vand.u32 4294901760, %v78_v2  ;;  %v76_v7 = vld [vmem:[#allocation5 + $0x20] sm:$0xff]  ;;  %v75_v8 = vld [vmem:[#allocation5 + $0x18] sm:$0xff] }
  0x35   :  { %8259 = vmatprep.mubr.msk.f32.mxu0 %vm10601_vm0, %v13489_v0  ;;  %8278 = vmatprep.mubr.msk.f32.mxu1 %vm10601_vm0, %v13489_v0  ;;  %v10659_v6 = vand.u32 4294901760, %v77_v3  ;;  %v74_v9 = vld [vmem:[#allocation5 + $0x10] sm:$0xff]  ;;  %v10661_v10 = vand.u32 4294901760, %v76_v7  ;;  %v10663_v11 = vand.u32 4294901760, %v75_v8  ;;  %v73_v13 = vld [vmem:[#allocation5 + $0x8] sm:$0xff]  ;;  %v72_v14 = vld [vmem:[#allocation5] sm:$0xff] }
  0x36   :  { %v10665_v12 = vand.u32 4294901760, %v74_v9  ;;  %v71_v15 = vld [vmem:[#allocation2] sm:$0xff]  ;;  %8244 = vmatpush3.msra.mxu0 %v10655_v4  ;;  %v10669_v16 = vsub.f32 %v79_v1, %v10655_v4  ;;  %v10672_v17 = vsub.f32 %v78_v2, %v10657_v5  ;;  %v10674_v18 = vand.u32 4294901760, %v73_v13  ;;  %v635_v58 = vld [vmem:[#allocation7 + $0x70] sm:$0xff]  ;;  %v634_v61 = vld [vmem:[#allocation7 + $0x68] sm:$0xff]  ;;  %s10602_s2 = smov [#allocation10]  }
  0x37   :  { %v10677_v19 = vsub.f32 %v77_v3, %v10659_v6  ;;  %8245 = vmatprep.subr.mxu0 %v13489_v0  ;;  %v10680_v20 = vand.u32 4294901760, %v72_v14  ;;  %v10683_v21 = vsub.f32 %v76_v7, %v10661_v10  ;;  %v82_v22 = vsel %vm80_vm1, %v71_v15, 0  ;;  %v636_v56 = vld [vmem:[#allocation7 + $0x78] sm:$0xff]  ;;  %v633_v2 = vld [vmem:[#allocation7 + $0x60] sm:$0xff]  ;;  %s7158_s3 = sshll.u32 %s10602_s2, 4  ;;  %s7159_s3 = int_to_ptr.vmem [resolvable:$true] %s7158_s3 }
  0x38   :  { %v10687_v23 = vsub.f32 %v75_v8, %v10663_v11  ;;  %8246 = vmatpush3.msra.mxu0 %v10657_v5  ;;  %v186_v24 = vand.u32 4294901760, %v10669_v16  ;;  %v193_v25 = vand.u32 4294901760, %v10672_v17  ;;  %v10693_v27 = vand.u32 4294901760, %v82_v22  ;;  %v632_v7 = vld [vmem:[#allocation7 + $0x58] sm:$0xff]  ;;  %s10566_s9 = scalar_lea.vmem %s7159_s3, 16  ;;  %s10570_s10 = scalar_lea.vmem %s7159_s3, 32 }
  0x39   :  { %v200_v26 = vand.u32 4294901760, %v10677_v19  ;;  %8247 = vmatprep.subr.mxu0 %v13489_v0  ;;  %v207_v28 = vand.u32 4294901760, %v10683_v21  ;;  %v10699_v30 = vsub.f32 %v74_v9, %v10665_v12  ;;  %v10702_v31 = vsub.f32 %v73_v13, %v10674_v18  ;;  %v631_v13 = vld [vmem:[#allocation7 + $0x50] sm:$0xff]  ;;  %p10567_p6 = scmp.ne.s32.totalorder %s7159_s3, %s10566_s9  ;;  %p10571_p7 = scmp.lt.s32.totalorder %s7159_s3, %s7159_s3 }
  0x3a   :  { %v214_v29 = vand.u32 4294901760, %v10687_v23  ;;  %8248 = vmatpush3.msra.mxu0 %v10659_v6  ;;  %v187_v32 = vsub.f32 %v10669_v16, %v186_v24  ;;  %v194_v33 = vsub.f32 %v10672_v17, %v193_v25  ;;  %v10715_v35 = vsub.f32 %v82_v22, %v10693_v27  ;;  %p10572_p8 = scmp.lt.s32.totalorder %s10570_s10, %s10566_s9 }
  0x3b   :  { %v201_v34 = vsub.f32 %v10677_v19, %v200_v26  ;;  %8249 = vmatprep.subr.mxu0 %v13489_v0  ;;  %v208_v36 = vsub.f32 %v10683_v21, %v207_v28  ;;  %v221_v40 = vand.u32 4294901760, %v10699_v30  ;;  %v228_v44 = vand.u32 4294901760, %v10702_v31 }
  0x3c   :  { %8250 = vmatpush3.msra.mxu0 %v10661_v10  ;;  %v188_v37 = vand.u32 4294901760, %v187_v32  ;;  %v195_v38 = vand.u32 4294901760, %v194_v33  ;;  %v159_v39 = vand.u32 4294901760, %v10715_v35  ;;  %v215_v41 = vsub.f32 %v10687_v23, %v214_v29  ;;  %p10573_p9 = por %p10572_p8, %p10571_p7 }
  0x3d   :  { %8251 = vmatprep.subr.mxu0 %v13489_v0  ;;  %v202_v42 = vand.u32 4294901760, %v201_v34  ;;  %v10734_v45 = vsub.f32 %v72_v14, %v10680_v20  ;;  %v209_v46 = vand.u32 4294901760, %v208_v36  ;;  %v222_v47 = vsub.f32 %v10699_v30, %v221_v40 }
  0x3e   :  { %8252 = vmatpush3.msra.mxu0 %v10663_v11  ;;  %8263 = vmatpush3.msra.mxu1 %v188_v37  ;;  %v160_v43 = vsub.f32 %v10715_v35, %v159_v39  ;;  %v216_v50 = vand.u32 4294901760, %v215_v41  ;;  %v229_v51 = vsub.f32 %v10702_v31, %v228_v44  ;;  %v10851_v57 = vand.u32 4294901760, %v636_v56  ;;  %v627_v37 = vld [vmem:[#allocation7 + $0x30] sm:$0xff]  ;;  %p10574_p10 = pnand %p10573_p9, %p10567_p6 }
  0x3f   :  { %8253 = vmatprep.subr.mxu0 %v13489_v0  ;;  %8264 = vmatprep.subr.mxu1 %v13489_v0  ;;  %v235_v48 = vand.u32 4294901760, %v10734_v45  ;;  %v223_v52 = vand.u32 4294901760, %v222_v47  ;;  %v10856_v60 = vand.u32 4294901760, %v635_v58  ;;  %v10866_v1 = vand.u32 4294901760, %v634_v61 }
  0x40   :  { %8254 = vmatpush3.msra.mxu0 %v10665_v12  ;;  %8265 = vmatpush3.msra.mxu1 %v195_v38  ;;  %v161_v49 = vand.u32 4294901760, %v160_v43  ;;  %v230_v54 = vand.u32 4294901760, %v229_v51  ;;  %v10854_v59 = vsub.f32 %v636_v56, %v10851_v57  ;;  %v626_v43 = vld [vmem:[#allocation7 + $0x28] sm:$0xff]  ;;  %v623_v56 = vld [vmem:[#allocation7 + $0x10] sm:$0xff] }
  0x41   :  { %8255 = vmatprep.subr.mxu0 %v13489_v0  ;;  %8266 = vmatprep.subr.mxu1 %v13489_v0  ;;  %v236_v53 = vsub.f32 %v10734_v45, %v235_v48  ;;  %13813 = vst [vmem:[#allocation16_spill] sm:$0xff] %v10856_v60  ;;  %v10864_v63 = vsub.f32 %v635_v58, %v10856_v60  ;;  %13816 = vst [vmem:[#allocation19_spill] sm:$0xff] %v10866_v1  ;;  %v10982_v47 = vand.u32 4294901760, %v626_v43  ;;  %v622_v58 = vld [vmem:[#allocation7 + $0x8] sm:$0xff] }
  0x42   :  { %8256 = vmatpush3.msra.mxu0 %v10674_v18  ;;  %8267 = vmatpush3.msra.mxu1 %v202_v42  ;;  %13812 = vst [vmem:[#allocation15_spill] sm:$0xff] %v10854_v59  ;;  %v10861_v62 = vand.u32 4294901760, %v10854_v59  ;;  %v10971_v42 = vand.u32 4294901760, %v627_v37 }
  0x43   :  { %8257 = vmatprep.subr.mxu0 %v13489_v0  ;;  %8268 = vmatprep.subr.mxu1 %v13489_v0  ;;  %v237_v55 = vand.u32 4294901760, %v236_v53  ;;  %13815 = vst [vmem:[#allocation18_spill] sm:$0xff] %v10864_v63  ;;  %13846 = vst [vmem:[#allocation49_spill] sm:$0xff] %v10982_v47 }
  0x44   :  { %8258 = vmatpush3.msra.mxu0 %v10680_v20  ;;  %8269 = vmatpush3.msra.mxu1 %v209_v46  ;;  %13814 = vst [vmem:[#allocation17_spill] sm:$0xff] %v10861_v62  ;;  %v757_v3 = vsub.f32 %v10854_v59, %v10861_v62  ;;  %13843 = vst [vmem:[#allocation46_spill] sm:$0xff] %v10971_v42 }
  0x45   :  { %8270 = vmatprep.subr.mxu1 %v13489_v0  ;;  %8281 = vmatprep.subr.mxu0 %v13489_v0 }
  0x46   :  { %8260 = vmatmul.mubr.f32.vlgmr.msra.gmra.mxu0 %v161_v49  ;;  %8271 = vmatpush3.msra.mxu1 %v216_v50  ;;  %v10882_v8 = vand.u32 4294901760, %v757_v3  ;;  %v625_v49 = vld [vmem:[#allocation7 + $0x20] sm:$0xff] }
  0x47   :  { %8282 = vmatpush3.msra.mxu0 %v10669_v16  ;;  %8272 = vmatprep.subr.mxu1 %v13489_v0  ;;  %v10998_v53 = vand.u32 4294901760, %v625_v49 }
  0x48   :  { %8283 = vmatprep.subr.mxu0 %v13489_v0  ;;  %8273 = vmatpush3.msra.mxu1 %v223_v52  ;;  %13820 = vst [vmem:[#allocation23_spill] sm:$0xff] %v10882_v8  ;;  %v10996_v52 = vsub.f32 %v626_v43, %v10982_v47 }
  0x49   :  { %8284 = vmatpush3.msra.mxu0 %v10672_v17  ;;  %8274 = vmatprep.subr.mxu1 %v13489_v0  ;;  %v10904_v17 = vand.u32 4294901760, %v631_v13  ;;  %13850 = vst [vmem:[#allocation53_spill] sm:$0xff] %v10998_v53  ;;  %v11013_v3 = vsub.f32 %v625_v49, %v10998_v53 }
  0x4a   :  { %8285 = vmatprep.subr.mxu0 %v13489_v0  ;;  %8275 = vmatpush3.msra.mxu1 %v230_v54  ;;  %13849 = vst [vmem:[#allocation52_spill] sm:$0xff] %v10996_v52 }
  0x4b   :  { %8286 = vmatpush3.msra.mxu0 %v10677_v19  ;;  %8276 = vmatprep.subr.mxu1 %v13489_v0  ;;  %13826 = vst [vmem:[#allocation29_spill] sm:$0xff] %v10904_v17  ;;  %v630_v19 = vld [vmem:[#allocation7 + $0x48] sm:$0xff]  ;;  %v10917_v22 = vsub.f32 %v631_v13, %v10904_v17  ;;  %13854 = vst [vmem:[#allocation57_spill] sm:$0xff] %v11013_v3 }
  0x4c   :  { %8287 = vmatprep.subr.mxu0 %v13489_v0  ;;  %8277 = vmatpush3.msra.mxu1 %v237_v55  ;;  %v624_v55 = vld [vmem:[#allocation7 + $0x18] sm:$0xff] }
  0x4d   :  { %8288 = vmatpush3.msra.mxu0 %v10683_v21  ;;  %8279 = vmatmul.mubr.f32.vlgmr.msra.gmra.mxu1 %v10693_v27  ;;  %13829 = vst [vmem:[#allocation32_spill] sm:$0xff] %v10917_v22 }
  0x4e   :  { %8289 = vmatprep.subr.mxu0 %v13489_v0  ;;  %8300 = vmatprep.subr.mxu1 %v13489_v0 }
  0x4f   :  { %8290 = vmatpush3.msra.mxu0 %v10687_v23  ;;  %8301 = vmatpush3.msra.mxu1 %v10655_v4  ;;  %v10919_v23 = vand.u32 4294901760, %v630_v19 }
  0x50   :  { %8291 = vmatprep.subr.mxu0 %v13489_v0  ;;  %8302 = vmatprep.subr.mxu1 %v13489_v0 }
  0x51   :  { %8292 = vmatpush3.msra.mxu0 %v10699_v30  ;;  %8303 = vmatpush3.msra.mxu1 %v10657_v5  ;;  %13830 = vst [vmem:[#allocation33_spill] sm:$0xff] %v10919_v23 }
  0x52   :  { %8293 = vmatprep.subr.mxu0 %v13489_v0  ;;  %8304 = vmatprep.subr.mxu1 %v13489_v0 }
  0x53   :  { %8294 = vmatpush3.msra.mxu0 %v10702_v31  ;;  %8305 = vmatpush3.msra.mxu1 %v10659_v6  ;;  %v628_v31 = vld [vmem:[#allocation7 + $0x38] sm:$0xff] }
  0x54   :  { %8295 = vmatprep.subr.mxu0 %v13489_v0  ;;  %8306 = vmatprep.subr.mxu1 %v13489_v0 }
  0x55   :  { %8296 = vmatpush3.msra.mxu0 %v10734_v45  ;;  %8297 = vmatprep.mubr.msk.f32.mxu0 %vm10601_vm0, %v13489_v0 }
  0x56   :  { %8307 = vmatpush3.msra.mxu1 %v10661_v10  ;;  %8298 = vmatmul.mubr.f32.vlgmr.msra.gmra.mxu0 %v10715_v35  ;;  %v10952_v35 = vand.u32 4294901760, %v628_v31 }
  0x57   :  { %8308 = vmatprep.subr.mxu1 %v13489_v0  ;;  %8319 = vmatprep.subr.mxu0 %v13489_v0 }
  0x58   :  { %8309 = vmatpush3.msra.mxu1 %v10663_v11  ;;  %8320 = vmatpush3.msra.mxu0 %v186_v24  ;;  %13838 = vst [vmem:[#allocation41_spill] sm:$0xff] %v10952_v35  ;;  %v10967_v41 = vsub.f32 %v628_v31, %v10952_v35 }
  0x59   :  { %8310 = vmatprep.subr.mxu1 %v13489_v0  ;;  %8321 = vmatprep.subr.mxu0 %v13489_v0 }
  0x5a   :  { %8311 = vmatpush3.msra.mxu1 %v10665_v12  ;;  %8322 = vmatpush3.msra.mxu0 %v193_v25  ;;  %v629_v25 = vld [vmem:[#allocation7 + $0x40] sm:$0xff]  ;;  %13842 = vst [vmem:[#allocation45_spill] sm:$0xff] %v10967_v41  ;;  %v10980_v46 = vand.u32 4294901760, %v10967_v41 }
  0x5b   :  { %8312 = vmatprep.subr.mxu1 %v13489_v0  ;;  %8323 = vmatprep.subr.mxu0 %v13489_v0 }
  0x5c   :  { %8313 = vmatpush3.msra.mxu1 %v10674_v18  ;;  %8324 = vmatpush3.msra.mxu0 %v200_v26  ;;  %13845 = vst [vmem:[#allocation48_spill] sm:$0xff] %v10980_v46  ;;  %v813_v51 = vsub.f32 %v10967_v41, %v10980_v46 }
  0x5d   :  { %8314 = vmatprep.subr.mxu1 %v13489_v0  ;;  %8325 = vmatprep.subr.mxu0 %v13489_v0 }
  0x5e   :  { %8315 = vmatpush3.msra.mxu1 %v10680_v20  ;;  %8316 = vmatprep.mubr.msk.f32.mxu1 %vm10601_vm0, %v13489_v0 }
  0x5f   :  { %8326 = vmatpush3.msra.mxu0 %v207_v28  ;;  %8317 = vmatmul.mubr.f32.vlgmr.msra.gmra.mxu1 %v159_v39  ;;  %v10934_v28 = vsub.f32 %v630_v19, %v10919_v23  ;;  %v11023_v19 = vand.u32 4294901760, %v622_v58 }
  0x60   :  { %8327 = vmatprep.subr.mxu0 %v13489_v0  ;;  %8338 = vmatprep.subr.mxu1 %v13489_v0 }
  0x61   :  { %8328 = vmatpush3.msra.mxu0 %v214_v29  ;;  %8339 = vmatpush3.msra.mxu1 %v10655_v4  ;;  %v10873_v4 = vand.u32 4294901760, %v10864_v63  ;;  %13834 = vst [vmem:[#allocation37_spill] sm:$0xff] %v10934_v28  ;;  %v10936_v29 = vand.u32 4294901760, %v629_v25  ;;  %v10947_v33 = vand.u32 4294901760, %v10934_v28  ;;  %13857 = vst [vmem:[#allocation60_spill] sm:$0xff] %v11023_v19 }
  0x62   :  { %8329 = vmatprep.subr.mxu0 %v13489_v0  ;;  %8340 = vmatprep.subr.mxu1 %v13489_v0 }
  0x63   :  { %8330 = vmatpush3.msra.mxu0 %v221_v40  ;;  %8341 = vmatpush3.msra.mxu1 %v10657_v5  ;;  %13817 = vst [vmem:[#allocation20_spill] sm:$0xff] %v10873_v4  ;;  %v10876_v5 = vsub.f32 %v634_v61, %v10866_v1  ;;  %v764_v9 = vsub.f32 %v10864_v63, %v10873_v4  ;;  %13835 = vst [vmem:[#allocation38_spill] sm:$0xff] %v10936_v29  ;;  %v11007_v61 = vand.u32 4294901760, %v813_v51 }
  0x64   :  { %8331 = vmatprep.subr.mxu0 %v13489_v0  ;;  %8342 = vmatprep.subr.mxu1 %v13489_v0  ;;  %13836 = vst [vmem:[#allocation39_spill] sm:$0xff] %v10947_v33  ;;  %v10950_v34 = vsub.f32 %v629_v25, %v10936_v29  ;;  %v799_v39 = vsub.f32 %v10934_v28, %v10947_v33 }
  0x65   :  { %8332 = vmatpush3.msra.mxu0 %v228_v44  ;;  %8343 = vmatpush3.msra.mxu1 %v10659_v6  ;;  %13818 = vst [vmem:[#allocation21_spill] sm:$0xff] %v10876_v5  ;;  %v10878_v6 = vand.u32 4294901760, %v633_v2  ;;  %v10897_v14 = vand.u32 4294901760, %v764_v9  ;;  %13852 = vst [vmem:[#allocation55_spill] sm:$0xff] %v11007_v61  ;;  %v621_v9 = vld [vmem:[#allocation7] sm:$0xff] }
  0x66   :  { %8333 = vmatprep.subr.mxu0 %v13489_v0  ;;  %8344 = vmatprep.subr.mxu1 %v13489_v0  ;;  %13837 = vst [vmem:[#allocation40_spill] sm:$0xff] %v10950_v34  ;;  %v10964_v40 = vand.u32 4294901760, %v10950_v34  ;;  %v10975_v44 = vand.u32 4294901760, %v799_v39  ;;  %v11045_v39 = vsub.f32 %v622_v58, %v11023_v19 }
  0x67   :  { %8334 = vmatpush3.msra.mxu0 %v235_v48  ;;  %8335 = vmatprep.mubr.msk.f32.mxu0 %vm10601_vm0, %v13489_v0  ;;  %13819 = vst [vmem:[#allocation22_spill] sm:$0xff] %v10878_v6  ;;  %13824 = vst [vmem:[#allocation27_spill] sm:$0xff] %v10897_v14  ;;  %v10987_v48 = vsub.f32 %v627_v37, %v10971_v42 }
  0x68   :  { %8345 = vmatpush3.msra.mxu1 %v10661_v10  ;;  %8336 = vmatmul.mubr.f32.vlgmr.msra.gmra.mxu0 %v10693_v27  ;;  %v10887_v10 = vand.u32 4294901760, %v10876_v5  ;;  %13841 = vst [vmem:[#allocation44_spill] sm:$0xff] %v10964_v40  ;;  %13844 = vst [vmem:[#allocation47_spill] sm:$0xff] %v10975_v44  ;;  %v806_v45 = vsub.f32 %v10950_v34, %v10964_v40 }
  0x69   :  { %8346 = vmatprep.subr.mxu1 %v13489_v0  ;;  %8354 = vmatprep.mubr.msk.f32.mxu1 %vm10601_vm0, %v13489_v0  ;;  %13847 = vst [vmem:[#allocation50_spill] sm:$0xff] %v10987_v48  ;;  %v11003_v54 = vand.u32 4294901760, %v10987_v48  ;;  %13863 = vst [vmem:[#allocation66_spill] sm:$0xff] %v11045_v39 }
  0x6a   :  { %8347 = vmatpush3.msra.mxu1 %v10663_v11  ;;  %8357 = vmatprep.subr.mxu0 %v13489_v0  ;;  %13821 = vst [vmem:[#allocation24_spill] sm:$0xff] %v10887_v10  ;;  %v10890_v11 = vsub.f32 %v633_v2, %v10878_v6  ;;  %v771_v15 = vsub.f32 %v10876_v5, %v10887_v10  ;;  %v10991_v50 = vand.u32 4294901760, %v806_v45  ;;  %v11010_v2 = vand.u32 4294901760, %v10996_v52 }
  0x6b   :  { %8348 = vmatprep.subr.mxu1 %v13489_v0  ;;  %8389 = vmatprep.mubr.msk.f32.mxu0 %vm10601_vm0, %v13489_v0  ;;  %13851 = vst [vmem:[#allocation54_spill] sm:$0xff] %v11003_v54  ;;  %v820_v13 = vsub.f32 %v10987_v48, %v11003_v54 }
  0x6c   :  { %8349 = vmatpush3.msra.mxu1 %v10665_v12  ;;  %8358 = vmatpush3.msra.mxu0 %v10851_v57  ;;  %13822 = vst [vmem:[#allocation25_spill] sm:$0xff] %v10890_v11  ;;  %v10893_v12 = vand.u32 4294901760, %v632_v7  ;;  %v10902_v16 = vand.u32 4294901760, %v10890_v11  ;;  %13848 = vst [vmem:[#allocation51_spill] sm:$0xff] %v10991_v50  ;;  %v827_v25 = vsub.f32 %v10996_v52, %v11010_v2 }
  0x6d   :  { %8350 = vmatprep.subr.mxu1 %v13489_v0  ;;  %8359 = vmatprep.subr.mxu0 %v13489_v0  ;;  %13853 = vst [vmem:[#allocation56_spill] sm:$0xff] %v11010_v2 }
  0x6e   :  { %8351 = vmatpush3.msra.mxu1 %v10674_v18  ;;  %8360 = vmatpush3.msra.mxu0 %v10856_v60  ;;  %13823 = vst [vmem:[#allocation26_spill] sm:$0xff] %v10893_v12  ;;  %13825 = vst [vmem:[#allocation28_spill] sm:$0xff] %v10902_v16  ;;  %v10908_v18 = vsub.f32 %v632_v7, %v10893_v12  ;;  %v778_v21 = vsub.f32 %v10890_v11, %v10902_v16  ;;  %v11015_v7 = vand.u32 4294901760, %v624_v55 }
  0x6f   :  { %8352 = vmatprep.subr.mxu1 %v13489_v0  ;;  %8361 = vmatprep.subr.mxu0 %v13489_v0  ;;  %v11052_v45 = vand.u32 4294901760, %v827_v25 }
  0x70   :  { %8353 = vmatpush3.msra.mxu1 %v10680_v20  ;;  %8362 = vmatpush3.msra.mxu0 %v10866_v1  ;;  %13827 = vst [vmem:[#allocation30_spill] sm:$0xff] %v10908_v18  ;;  %v10912_v20 = vand.u32 4294901760, %v771_v15  ;;  %v10924_v24 = vand.u32 4294901760, %v10908_v18  ;;  %v10928_v26 = vand.u32 4294901760, %v778_v21  ;;  %13855 = vst [vmem:[#allocation58_spill] sm:$0xff] %v11015_v7  ;;  %v11021_v15 = vand.u32 4294901760, %v623_v56 }
  0x71   :  { %8355 = vmatmul.mubr.f32.vlgmr.msra.gmra.mxu1 %v10693_v27  ;;  %8392 = vmatprep.subr.mxu1 %v13489_v0  ;;  %v10931_v27 = vand.u32 4294901760, %v10917_v22  ;;  %v11026_v21 = vand.u32 4294901760, %v621_v9  ;;  %v11035_v31 = vsub.f32 %v624_v55, %v11015_v7  ;;  %13865 = vst [vmem:[#allocation68_spill] sm:$0xff] %v11052_v45 }
  0x72   :  { %8424 = vmatprep.mubr.msk.f32.mxu1 %vm10601_vm0, %v13489_v0  ;;  %8363 = vmatprep.subr.mxu0 %v13489_v0  ;;  %13828 = vst [vmem:[#allocation31_spill] sm:$0xff] %v10912_v20  ;;  %13831 = vst [vmem:[#allocation34_spill] sm:$0xff] %v10924_v24  ;;  %v785_v30 = vsub.f32 %v10908_v18, %v10924_v24  ;;  %v11042_v37 = vsub.f32 %v623_v56, %v11021_v15  ;;  %v11065_v56 = vand.u32 4294901760, %v11045_v39 }
  0x73   :  { %8364 = vmatpush3.msra.mxu0 %v10878_v6  ;;  %8393 = vmatpush3.msra.mxu1 %v10882_v8  ;;  %13832 = vst [vmem:[#allocation35_spill] sm:$0xff] %v10928_v26  ;;  %13833 = vst [vmem:[#allocation36_spill] sm:$0xff] %v10931_v27  ;;  %v792_v32 = vsub.f32 %v10917_v22, %v10931_v27  ;;  %v11048_v43 = vsub.f32 %v621_v9, %v11026_v21  ;;  %v11057_v51 = vand.u32 4294901760, %v11035_v31 }
  0x74   :  { %8365 = vmatprep.subr.mxu0 %v13489_v0  ;;  %8394 = vmatprep.subr.mxu1 %v13489_v0  ;;  %v10956_v36 = vand.u32 4294901760, %v785_v30  ;;  %13856 = vst [vmem:[#allocation59_spill] sm:$0xff] %v11021_v15  ;;  %13858 = vst [vmem:[#allocation61_spill] sm:$0xff] %v11026_v21  ;;  %v11032_v30 = vand.u32 4294901760, %v11013_v3  ;;  %v11062_v55 = vand.u32 4294901760, %v11042_v37 }
  0x75   :  { %8366 = vmatpush3.msra.mxu0 %v10893_v12  ;;  %8395 = vmatpush3.msra.mxu1 %v10897_v14  ;;  %v10959_v38 = vand.u32 4294901760, %v792_v32  ;;  %13860 = vst [vmem:[#allocation63_spill] sm:$0xff] %v11035_v31  ;;  %v11039_v32 = vand.u32 4294901760, %v820_v13  ;;  %13862 = vst [vmem:[#allocation65_spill] sm:$0xff] %v11042_v37  ;;  %v11068_v58 = vand.u32 4294901760, %v11048_v43  ;;  %v841_v13 = vsub.f32 %v11035_v31, %v11057_v51 }
  0x76   :  { %8367 = vmatprep.subr.mxu0 %v13489_v0  ;;  %8396 = vmatprep.subr.mxu1 %v13489_v0  ;;  %13839 = vst [vmem:[#allocation42_spill] sm:$0xff] %v10956_v36  ;;  %13859 = vst [vmem:[#allocation62_spill] sm:$0xff] %v11032_v30  ;;  %v834_v49 = vsub.f32 %v11013_v3, %v11032_v30  ;;  %v848_v25 = vsub.f32 %v11042_v37, %v11062_v55 }
  0x77   :  { %8368 = vmatpush3.msra.mxu0 %v10904_v17  ;;  %8397 = vmatpush3.msra.mxu1 %v10912_v20  ;;  %13840 = vst [vmem:[#allocation43_spill] sm:$0xff] %v10959_v38  ;;  %13861 = vst [vmem:[#allocation64_spill] sm:$0xff] %v11039_v32 }
  0x78   :  { %8369 = vmatprep.subr.mxu0 %v13489_v0  ;;  %8398 = vmatprep.subr.mxu1 %v13489_v0  ;;  %13864 = vst [vmem:[#allocation67_spill] sm:$0xff] %v11048_v43  ;;  %13866 = vst [vmem:[#allocation69_spill] sm:$0xff] %v11057_v51  ;;  %v11072_v9 = vand.u32 4294901760, %v834_v49  ;;  %v11088_v49 = vand.u32 4294901760, %v848_v25 }
  0x79   :  { %8370 = vmatpush3.msra.mxu0 %v10919_v23  ;;  %8399 = vmatpush3.msra.mxu1 %v10928_v26  ;;  %13867 = vst [vmem:[#allocation70_spill] sm:$0xff] %v11062_v55  ;;  %13868 = vst [vmem:[#allocation71_spill] sm:$0xff] %v11065_v56 }
  0x7a   :  { %8371 = vmatprep.subr.mxu0 %v13489_v0  ;;  %8400 = vmatprep.subr.mxu1 %v13489_v0  ;;  %13869 = vst [vmem:[#allocation72_spill] sm:$0xff] %v11068_v58  ;;  %13870 = vst [vmem:[#allocation73_spill] sm:$0xff] %v11072_v9 }
  0x7b   :  { %8372 = vmatpush3.msra.mxu0 %v10936_v29  ;;  %8401 = vmatpush3.msra.mxu1 %v10956_v36  ;;  %13872 = vst [vmem:[#allocation75_spill] sm:$0xff] %v11088_v49 }
  0x7c   :  { %8373 = vmatprep.subr.mxu0 %v13489_v0  ;;  %8402 = vmatprep.subr.mxu1 %v13489_v0 }
  0x7d   :  { %8374 = vmatpush3.msra.mxu0 %v10952_v35  ;;  %8403 = vmatpush3.msra.mxu1 %v10959_v38 }
  0x7e   :  { %8375 = vmatprep.subr.mxu0 %v13489_v0  ;;  %8404 = vmatprep.subr.mxu1 %v13489_v0 }
  0x7f   :  { %8376 = vmatpush3.msra.mxu0 %v10971_v42  ;;  %8405 = vmatpush3.msra.mxu1 %v10975_v44 }
  0x80   :  { %8377 = vmatprep.subr.mxu0 %v13489_v0  ;;  %8406 = vmatprep.subr.mxu1 %v13489_v0 }
  0x81   :  { %8378 = vmatpush3.msra.mxu0 %v10982_v47  ;;  %8407 = vmatpush3.msra.mxu1 %v10991_v50 }
  0x82   :  { %8379 = vmatprep.subr.mxu0 %v13489_v0  ;;  %8408 = vmatprep.subr.mxu1 %v13489_v0 }
  0x83   :  { %8380 = vmatpush3.msra.mxu0 %v10998_v53  ;;  %8409 = vmatpush3.msra.mxu1 %v11007_v61  ;;  %v11084_v61 = vand.u32 4294901760, %v841_v13 }
  0x84   :  { %8381 = vmatprep.subr.mxu0 %v13489_v0  ;;  %8410 = vmatprep.subr.mxu1 %v13489_v0 }
  0x85   :  { %8382 = vmatpush3.msra.mxu0 %v11015_v7  ;;  %8411 = vmatpush3.msra.mxu1 %v11039_v32  ;;  %v855_v32 = vsub.f32 %v11045_v39, %v11065_v56  ;;  %13871 = vst [vmem:[#allocation74_spill] sm:$0xff] %v11084_v61 }
  0x86   :  { %8383 = vmatprep.subr.mxu0 %v13489_v0  ;;  %8412 = vmatprep.subr.mxu1 %v13489_v0 }
  0x87   :  { %8384 = vmatpush3.msra.mxu0 %v11021_v15  ;;  %8413 = vmatpush3.msra.mxu1 %v11052_v45  ;;  %v862_v45 = vsub.f32 %v11048_v43, %v11068_v58  ;;  %v11096_v50 = vand.u32 4294901760, %v855_v32 }
  0x88   :  { %8385 = vmatprep.subr.mxu0 %v13489_v0  ;;  %8414 = vmatprep.subr.mxu1 %v13489_v0 }
  0x89   :  { %8386 = vmatpush3.msra.mxu0 %v11023_v19  ;;  %8415 = vmatpush3.msra.mxu1 %v11072_v9  ;;  %13873 = vst [vmem:[#allocation76_spill] sm:$0xff] %v11096_v50  ;;  %v11100_v13 = vand.u32 4294901760, %v862_v45 }
  0x8a   :  { %8387 = vmatprep.subr.mxu0 %v13489_v0  ;;  %8416 = vmatprep.subr.mxu1 %v13489_v0 }
  0x8b   :  { %8388 = vmatpush3.msra.mxu0 %v11026_v21  ;;  %8417 = vmatpush3.msra.mxu1 %v11084_v61  ;;  %13874 = vst [vmem:[#allocation77_spill] sm:$0xff] %v11100_v13 }
  0x8c   :  { %8427 = vmatprep.subr.mxu0 %v13489_v0  ;;  %8418 = vmatprep.subr.mxu1 %v13489_v0 }
  0x8d   :  { %8419 = vmatpush3.msra.mxu1 %v11088_v49 }
  0x8e   :  { %8420 = vmatprep.subr.mxu1 %v13489_v0 }
  0x8f   :  { %8421 = vmatpush3.msra.mxu1 %v11096_v50 }
  0x90   :  { %8422 = vmatprep.subr.mxu1 %v13489_v0 }
  0x91   :  { %8423 = vmatpush3.msra.mxu1 %v11100_v13 }
  0x92   :  { %8462 = vmatprep.subr.mxu1 %v13489_v0 }
 0x106   :  { %v163_v25 = vpop.f32.mrf.mxu0 }
 0x108   :  { %v8261_v61 = vpop.f32.mrf.mxu0 }
 0x10d   :  { %v274_v32 = vpop.f32.mrf.mxu1 }
 0x10e   :  { %v275_v26 = vadd.f32 %v274_v32, %v163_v25  ;;  %v13883_v25 = vld [vmem:[#allocation31_spill] sm:$0xff]  ;;  %v13884_v32 = vld [vmem:[#allocation72_spill] sm:$0xff] }
 0x10f   :  { %v8280_v9 = vpop.f32.mrf.mxu1 }
 0x116   :  { %v362_v44 = vpop.f32.mrf.mxu0 }
 0x117   :  { %v363_v20 = vadd.f32 %v362_v44, %v275_v26  ;;  %v13877_v44 = vld [vmem:[#allocation62_spill] sm:$0xff] }
 0x118   :  { %v8299_v38 = vpop.f32.mrf.mxu0 }
 0x11f   :  { %v443_v36 = vpop.f32.mrf.mxu1 }
 0x120   :  { %v444_v56 = vadd.f32 %v443_v36, %v363_v20 }
 0x121   :  { %v8318_v49 = vpop.f32.mrf.mxu1 }
 0x122   :  { %v13881_v49 = vld [vmem:[#allocation27_spill] sm:$0xff] }
 0x128   :  { %v538_v45 = vpop.f32.mrf.mxu0 }
 0x129   :  { %v539_v50 = vadd.f32 %v538_v45, %v444_v56  ;;  %v13880_v56 = vld [vmem:[#allocation70_spill] sm:$0xff]  ;;  %v13885_v45 = vld [vmem:[#allocation35_spill] sm:$0xff] }
 0x12a   :  { %v8337_v58 = vpop.f32.mrf.mxu0 }
 0x131   :  { %v617_v14 = vpop.f32.mrf.mxu1 }
 0x132   :  { %v11107_v55 = vadd.f32 %v617_v14, %v539_v50  ;;  %v13876_v14 = vmov 0.0   ;;  %v13878_v50 = vld [vmem:[#allocation69_spill] sm:$0xff] }
 0x133   :  { %v8356_v13 = vpop.f32.mrf.mxu1 }
 0x134   :  { %13875 = vst [vmem:[#allocation78_spill] sm:$0xff] %v11107_v55  ;;  %v653_v0 = vrot.slane %v11107_v55, 4  ;;  %v13882_v13 = vld [vmem:[#allocation71_spill] sm:$0xff] }
 0x136   :  { %v654_v61 = vadd.f32 %v653_v0, %v11107_v55 }
 0x138   :  { %v655_v8 = vrot.slane %v654_v61, 2 }
 0x13a   :  { %v656_v9 = vadd.f32 %v655_v8, %v654_v61  ;;  %v13886_v61 = vld [vmem:[#allocation42_spill] sm:$0xff] }
 0x13c   :  { %v657_v51 = vrot.slane %v656_v9, 1 }
 0x13e   :  { %v658_v38 = vadd.f32 %v657_v51, %v656_v9  ;;  %v13879_v51 = vld [vmem:[#allocation23_spill] sm:$0xff] }
 0x13f   :  { %v13887_v9 = vld [vmem:[#allocation43_spill] sm:$0xff] }
 0x140   :  { %v11111_v30 = vmul.f32 0.125, %v658_v38  ;;  %v13888_v38 = vld [vmem:[#allocation47_spill] sm:$0xff] }
 0x142   :  { %v661_v58 = vmul.f32 %v11111_v30, %v11107_v55 }
 0x144   :  { %v11115_v26 = vand.u32 4294901760, %v661_v58 }
 0x146   :  { %v11118_v20 = vsub.f32 %v661_v58, %v11115_v26  ;;  %8425 = vmatmul.mubr.f32.vlgmr.msra.gmra.mxu1 %v11115_v26  ;;  %v13889_v58 = vld [vmem:[#allocation51_spill] sm:$0xff] }
 0x147   :  { %8463 = vmatpush3.msra.mxu1 %v10851_v57  ;;  %8494 = vmatprep.mubr.msk.f32.mxu1 %vm10601_vm0, %v13876_v14 }
 0x148   :  { %8464 = vmatprep.subr.mxu1 %v13876_v14  ;;  %v745_v0 = vand.u32 4294901760, %v11118_v20 }
 0x149   :  { %8465 = vmatpush3.msra.mxu1 %v10856_v60 }
 0x14a   :  { %8466 = vmatprep.subr.mxu1 %v13876_v14  ;;  %v746_v8 = vsub.f32 %v11118_v20, %v745_v0 }
 0x14b   :  { %8467 = vmatpush3.msra.mxu1 %v10866_v1 }
 0x14c   :  { %8468 = vmatprep.subr.mxu1 %v13876_v14  ;;  %v747_v36 = vand.u32 4294901760, %v746_v8  ;;  %v13892_v8 = vld [vmem:[#allocation68_spill] sm:$0xff] }
 0x14d   :  { %8469 = vmatpush3.msra.mxu1 %v10878_v6 }
 0x14e   :  { %8470 = vmatprep.subr.mxu1 %v13876_v14  ;;  %8390 = vmatmul.mubr.f32.vlgmr.msra.gmra.mxu0 %v747_v36  ;;  %v13893_v36 = vld [vmem:[#allocation73_spill] sm:$0xff] }
 0x14f   :  { %8428 = vmatpush3.msra.mxu0 %v10854_v59  ;;  %8471 = vmatpush3.msra.mxu1 %v10893_v12 }
 0x150   :  { %8429 = vmatprep.subr.mxu0 %v13876_v14  ;;  %8472 = vmatprep.subr.mxu1 %v13876_v14 }
 0x151   :  { %8430 = vmatpush3.msra.mxu0 %v10864_v63  ;;  %8473 = vmatpush3.msra.mxu1 %v10904_v17 }
 0x152   :  { %8431 = vmatprep.subr.mxu0 %v13876_v14  ;;  %8474 = vmatprep.subr.mxu1 %v13876_v14 }
 0x153   :  { %8432 = vmatpush3.msra.mxu0 %v10876_v5  ;;  %8475 = vmatpush3.msra.mxu1 %v10919_v23 }
 0x154   :  { %8433 = vmatprep.subr.mxu0 %v13876_v14  ;;  %8476 = vmatprep.subr.mxu1 %v13876_v14 }
 0x155   :  { %8434 = vmatpush3.msra.mxu0 %v10890_v11  ;;  %8477 = vmatpush3.msra.mxu1 %v10936_v29 }
 0x156   :  { %8435 = vmatprep.subr.mxu0 %v13876_v14  ;;  %8478 = vmatprep.subr.mxu1 %v13876_v14 }
 0x157   :  { %8436 = vmatpush3.msra.mxu0 %v10908_v18  ;;  %8479 = vmatpush3.msra.mxu1 %v10952_v35 }
 0x158   :  { %8437 = vmatprep.subr.mxu0 %v13876_v14  ;;  %8480 = vmatprep.subr.mxu1 %v13876_v14 }
 0x159   :  { %8438 = vmatpush3.msra.mxu0 %v10917_v22  ;;  %8481 = vmatpush3.msra.mxu1 %v10971_v42 }
 0x15a   :  { %8439 = vmatprep.subr.mxu0 %v13876_v14  ;;  %8482 = vmatprep.subr.mxu1 %v13876_v14 }
 0x15b   :  { %8440 = vmatpush3.msra.mxu0 %v10934_v28  ;;  %8483 = vmatpush3.msra.mxu1 %v10982_v47 }
 0x15c   :  { %8441 = vmatprep.subr.mxu0 %v13876_v14  ;;  %8484 = vmatprep.subr.mxu1 %v13876_v14 }
 0x15d   :  { %8442 = vmatpush3.msra.mxu0 %v10950_v34  ;;  %8485 = vmatpush3.msra.mxu1 %v10998_v53 }
 0x15e   :  { %8443 = vmatprep.subr.mxu0 %v13876_v14  ;;  %8486 = vmatprep.subr.mxu1 %v13876_v14 }
 0x15f   :  { %8444 = vmatpush3.msra.mxu0 %v10967_v41  ;;  %8487 = vmatpush3.msra.mxu1 %v11015_v7 }
 0x160   :  { %8445 = vmatprep.subr.mxu0 %v13876_v14  ;;  %8488 = vmatprep.subr.mxu1 %v13876_v14 }
 0x161   :  { %8446 = vmatpush3.msra.mxu0 %v10987_v48  ;;  %8489 = vmatpush3.msra.mxu1 %v11021_v15 }
 0x162   :  { %8447 = vmatprep.subr.mxu0 %v13876_v14  ;;  %8490 = vmatprep.subr.mxu1 %v13876_v14 }
 0x163   :  { %8448 = vmatpush3.msra.mxu0 %v10996_v52  ;;  %8491 = vmatpush3.msra.mxu1 %v11023_v19 }
 0x164   :  { %8449 = vmatprep.subr.mxu0 %v13876_v14  ;;  %8492 = vmatprep.subr.mxu1 %v13876_v14 }
 0x165   :  { %8450 = vmatpush3.msra.mxu0 %v11013_v3  ;;  %8493 = vmatpush3.msra.mxu1 %v11026_v21 }
 0x166   :  { %8451 = vmatprep.subr.mxu0 %v13876_v14  ;;  %8495 = vmatmul.mubr.f32.vlgmr.msra.gmra.mxu1 %v745_v0  ;;  %v660_v0 = vmul.f32 %v11111_v30, %v11111_v30  ;;  %v13894_v30 = vld [vmem:[#allocation74_spill] sm:$0xff] }
 0x167   :  { %8532 = vmatprep.subr.mxu1 %v13876_v14  ;;  %8452 = vmatpush3.msra.mxu0 %v11035_v31 }
 0x168   :  { %8533 = vmatpush3.msra.mxu1 %v10851_v57  ;;  %8453 = vmatprep.subr.mxu0 %v13876_v14  ;;  %v11303_v55 = vand.u32 4294901760, %v660_v0 }
 0x169   :  { %8534 = vmatprep.subr.mxu1 %v13876_v14  ;;  %8454 = vmatpush3.msra.mxu0 %v11042_v37 }
 0x16a   :  { %8535 = vmatpush3.msra.mxu1 %v10856_v60  ;;  %8455 = vmatprep.subr.mxu0 %v13876_v14 }
 0x16b   :  { %8536 = vmatprep.subr.mxu1 %v13876_v14  ;;  %8456 = vmatpush3.msra.mxu0 %v11045_v39 }
 0x16c   :  { %8537 = vmatpush3.msra.mxu1 %v10866_v1  ;;  %8457 = vmatprep.subr.mxu0 %v13876_v14 }
 0x16d   :  { %8538 = vmatprep.subr.mxu1 %v13876_v14  ;;  %8458 = vmatpush3.msra.mxu0 %v11048_v43 }
 0x16e   :  { %8459 = vmatprep.mubr.msk.f32.mxu0 %vm10601_vm0, %v13876_v14  ;;  %8539 = vmatpush3.msra.mxu1 %v10878_v6 }
 0x16f   :  { %8460 = vmatmul.mubr.f32.vlgmr.msra.gmra.mxu0 %v11118_v20  ;;  %8497 = vmatprep.subr.mxu0 %v13876_v14  ;;  %v13891_v20 = vld [vmem:[#allocation64_spill] sm:$0xff] }
 0x170   :  { %8540 = vmatprep.subr.mxu1 %v13876_v14  ;;  %8498 = vmatpush3.msra.mxu0 %v10861_v62 }
 0x171   :  { %8541 = vmatpush3.msra.mxu1 %v10893_v12  ;;  %8499 = vmatprep.subr.mxu0 %v13876_v14 }
 0x172   :  { %8542 = vmatprep.subr.mxu1 %v13876_v14  ;;  %8500 = vmatpush3.msra.mxu0 %v10873_v4 }
 0x173   :  { %8543 = vmatpush3.msra.mxu1 %v10904_v17  ;;  %8501 = vmatprep.subr.mxu0 %v13876_v14 }
 0x174   :  { %8544 = vmatprep.subr.mxu1 %v13876_v14  ;;  %8502 = vmatpush3.msra.mxu0 %v10887_v10 }
 0x175   :  { %8545 = vmatpush3.msra.mxu1 %v10919_v23  ;;  %8503 = vmatprep.subr.mxu0 %v13876_v14 }
 0x176   :  { %8546 = vmatprep.subr.mxu1 %v13876_v14  ;;  %8504 = vmatpush3.msra.mxu0 %v10902_v16 }
 0x177   :  { %8547 = vmatpush3.msra.mxu1 %v10936_v29  ;;  %8505 = vmatprep.subr.mxu0 %v13876_v14 }
 0x178   :  { %8548 = vmatprep.subr.mxu1 %v13876_v14  ;;  %8506 = vmatpush3.msra.mxu0 %v10924_v24 }
 0x179   :  { %8549 = vmatpush3.msra.mxu1 %v10952_v35  ;;  %8507 = vmatprep.subr.mxu0 %v13876_v14 }
 0x17a   :  { %8550 = vmatprep.subr.mxu1 %v13876_v14  ;;  %8508 = vmatpush3.msra.mxu0 %v10931_v27 }
 0x17b   :  { %8551 = vmatpush3.msra.mxu1 %v10971_v42  ;;  %8509 = vmatprep.subr.mxu0 %v13876_v14 }
 0x17c   :  { %8552 = vmatprep.subr.mxu1 %v13876_v14  ;;  %8510 = vmatpush3.msra.mxu0 %v10947_v33 }
 0x17d   :  { %8553 = vmatpush3.msra.mxu1 %v10982_v47  ;;  %8511 = vmatprep.subr.mxu0 %v13876_v14 }
 0x17e   :  { %8554 = vmatprep.subr.mxu1 %v13876_v14  ;;  %8512 = vmatpush3.msra.mxu0 %v10964_v40 }
 0x17f   :  { %8555 = vmatpush3.msra.mxu1 %v10998_v53  ;;  %8513 = vmatprep.subr.mxu0 %v13876_v14 }
 0x180   :  { %8556 = vmatprep.subr.mxu1 %v13876_v14  ;;  %8514 = vmatpush3.msra.mxu0 %v10980_v46 }
 0x181   :  { %8557 = vmatpush3.msra.mxu1 %v11015_v7  ;;  %8515 = vmatprep.subr.mxu0 %v13876_v14 }
 0x182   :  { %8558 = vmatprep.subr.mxu1 %v13876_v14  ;;  %8516 = vmatpush3.msra.mxu0 %v11003_v54 }
 0x183   :  { %8559 = vmatpush3.msra.mxu1 %v11021_v15  ;;  %8517 = vmatprep.subr.mxu0 %v13876_v14 }
 0x184   :  { %8560 = vmatprep.subr.mxu1 %v13876_v14  ;;  %8518 = vmatpush3.msra.mxu0 %v11010_v2 }
 0x185   :  { %8561 = vmatpush3.msra.mxu1 %v11023_v19  ;;  %8519 = vmatprep.subr.mxu0 %v13876_v14 }
 0x186   :  { %8562 = vmatprep.subr.mxu1 %v13876_v14  ;;  %8520 = vmatpush3.msra.mxu0 %v13877_v44 }
 0x187   :  { %8563 = vmatpush3.msra.mxu1 %v11026_v21  ;;  %8564 = vmatprep.mubr.msk.f32.mxu1 %vm10601_vm0, %v13876_v14 }
 0x188   :  { %8521 = vmatprep.subr.mxu0 %v13876_v14  ;;  %8565 = vmatmul.mubr.f32.vlgmr.msra.gmra.mxu1 %v11115_v26 }
 0x189   :  { %8602 = vmatprep.subr.mxu1 %v13876_v14  ;;  %8522 = vmatpush3.msra.mxu0 %v13878_v50 }
 0x18a   :  { %8603 = vmatpush3.msra.mxu1 %v13879_v51  ;;  %8523 = vmatprep.subr.mxu0 %v13876_v14 }
 0x18b   :  { %8604 = vmatprep.subr.mxu1 %v13876_v14  ;;  %8524 = vmatpush3.msra.mxu0 %v13880_v56 }
 0x18c   :  { %8605 = vmatpush3.msra.mxu1 %v13881_v49  ;;  %8525 = vmatprep.subr.mxu0 %v13876_v14 }
 0x18d   :  { %8606 = vmatprep.subr.mxu1 %v13876_v14  ;;  %8526 = vmatpush3.msra.mxu0 %v13882_v13 }
 0x18e   :  { %8607 = vmatpush3.msra.mxu1 %v13883_v25  ;;  %8527 = vmatprep.subr.mxu0 %v13876_v14 }
 0x18f   :  { %8608 = vmatprep.subr.mxu1 %v13876_v14  ;;  %8528 = vmatpush3.msra.mxu0 %v13884_v32 }
 0x190   :  { %8529 = vmatprep.mubr.msk.f32.mxu0 %vm10601_vm0, %v13876_v14  ;;  %8609 = vmatpush3.msra.mxu1 %v13885_v45 }
 0x191   :  { %8530 = vmatmul.mubr.f32.vlgmr.msra.gmra.mxu0 %v11115_v26  ;;  %8567 = vmatprep.subr.mxu0 %v13876_v14  ;;  %v13890_v26 = vld [vmem:[#allocation55_spill] sm:$0xff] }
 0x192   :  { %8610 = vmatprep.subr.mxu1 %v13876_v14  ;;  %8568 = vmatpush3.msra.mxu0 %v10851_v57 }
 0x193   :  { %8611 = vmatpush3.msra.mxu1 %v13886_v61  ;;  %8569 = vmatprep.subr.mxu0 %v13876_v14 }
 0x194   :  { %8612 = vmatprep.subr.mxu1 %v13876_v14  ;;  %8570 = vmatpush3.msra.mxu0 %v10856_v60 }
 0x195   :  { %8613 = vmatpush3.msra.mxu1 %v13887_v9  ;;  %8571 = vmatprep.subr.mxu0 %v13876_v14 }
 0x196   :  { %8614 = vmatprep.subr.mxu1 %v13876_v14  ;;  %8572 = vmatpush3.msra.mxu0 %v10866_v1 }
 0x197   :  { %8615 = vmatpush3.msra.mxu1 %v13888_v38  ;;  %8573 = vmatprep.subr.mxu0 %v13876_v14 }
 0x198   :  { %8616 = vmatprep.subr.mxu1 %v13876_v14  ;;  %8574 = vmatpush3.msra.mxu0 %v10878_v6 }
 0x199   :  { %8617 = vmatpush3.msra.mxu1 %v13889_v58  ;;  %8575 = vmatprep.subr.mxu0 %v13876_v14 }
 0x19a   :  { %8618 = vmatprep.subr.mxu1 %v13876_v14  ;;  %8576 = vmatpush3.msra.mxu0 %v10893_v12 }
 0x19b   :  { %8619 = vmatpush3.msra.mxu1 %v13890_v26  ;;  %8577 = vmatprep.subr.mxu0 %v13876_v14 }
 0x19c   :  { %8620 = vmatprep.subr.mxu1 %v13876_v14  ;;  %8578 = vmatpush3.msra.mxu0 %v10904_v17 }
 0x19d   :  { %8621 = vmatpush3.msra.mxu1 %v13891_v20  ;;  %8579 = vmatprep.subr.mxu0 %v13876_v14  ;;  %v13896_v20 = vld [vmem:[#allocation76_spill] sm:$0xff] }
 0x19e   :  { %8622 = vmatprep.subr.mxu1 %v13876_v14  ;;  %8580 = vmatpush3.msra.mxu0 %v10919_v23 }
 0x19f   :  { %8623 = vmatpush3.msra.mxu1 %v13892_v8  ;;  %8581 = vmatprep.subr.mxu0 %v13876_v14  ;;  %v13895_v8 = vld [vmem:[#allocation75_spill] sm:$0xff] }
 0x1a0   :  { %8624 = vmatprep.subr.mxu1 %v13876_v14  ;;  %8582 = vmatpush3.msra.mxu0 %v10936_v29 }
 0x1a1   :  { %8625 = vmatpush3.msra.mxu1 %v13893_v36  ;;  %8583 = vmatprep.subr.mxu0 %v13876_v14  ;;  %v11314_v36 = vsub.f32 %v660_v0, %v11303_v55 }
 0x1a2   :  { %8626 = vmatprep.subr.mxu1 %v13876_v14  ;;  %8584 = vmatpush3.msra.mxu0 %v10952_v35 }
 0x1a3   :  { %8627 = vmatpush3.msra.mxu1 %v13894_v30  ;;  %8585 = vmatprep.subr.mxu0 %v13876_v14  ;;  %v13897_v30 = vld [vmem:[#allocation77_spill] sm:$0xff]  ;;  %v1386_v0 = vand.u32 4294901760, %v11314_v36 }
 0x1a4   :  { %8628 = vmatprep.subr.mxu1 %v13876_v14  ;;  %8586 = vmatpush3.msra.mxu0 %v10971_v42 }
 0x1a5   :  { %8629 = vmatpush3.msra.mxu1 %v13895_v8  ;;  %8587 = vmatprep.subr.mxu0 %v13876_v14  ;;  %v639_v8 = vld [vmem:[#allocation8 + $0x10] sm:$0xff] }
 0x1a6   :  { %8630 = vmatprep.subr.mxu1 %v13876_v14  ;;  %8588 = vmatpush3.msra.mxu0 %v10982_v47 }
 0x1a7   :  { %8631 = vmatpush3.msra.mxu1 %v13896_v20  ;;  %8589 = vmatprep.subr.mxu0 %v13876_v14 }
 0x1a8   :  { %8632 = vmatprep.subr.mxu1 %v13876_v14  ;;  %8590 = vmatpush3.msra.mxu0 %v10998_v53 }
 0x1a9   :  { %8633 = vmatpush3.msra.mxu1 %v13897_v30  ;;  %8634 = vmatprep.mubr.msk.f32.mxu1 %vm10601_vm0, %v13876_v14  ;;  %v1387_v30 = vsub.f32 %v11314_v36, %v1386_v0 }
 0x1aa   :  { %8591 = vmatprep.subr.mxu0 %v13876_v14  ;;  %8635 = vmatmul.mubr.f32.vlgmr.msra.gmra.mxu1 %v11303_v55 }
 0x1ab   :  { %8672 = vmatprep.subr.mxu1 %v13876_v14  ;;  %8592 = vmatpush3.msra.mxu0 %v11015_v7  ;;  %v1388_v20 = vand.u32 4294901760, %v1387_v30 }
 0x1ac   :  { %8673 = vmatpush3.msra.mxu1 %v10851_v57  ;;  %8593 = vmatprep.subr.mxu0 %v13876_v14 }
 0x1ad   :  { %8674 = vmatprep.subr.mxu1 %v13876_v14  ;;  %8594 = vmatpush3.msra.mxu0 %v11021_v15 }
 0x1ae   :  { %8675 = vmatpush3.msra.mxu1 %v10856_v60  ;;  %8595 = vmatprep.subr.mxu0 %v13876_v14 }
 0x1af   :  { %8676 = vmatprep.subr.mxu1 %v13876_v14  ;;  %8596 = vmatpush3.msra.mxu0 %v11023_v19 }
 0x1b0   :  { %8677 = vmatpush3.msra.mxu1 %v10866_v1  ;;  %8597 = vmatprep.subr.mxu0 %v13876_v14 }
 0x1b1   :  { %8678 = vmatprep.subr.mxu1 %v13876_v14  ;;  %8598 = vmatpush3.msra.mxu0 %v11026_v21 }
 0x1b2   :  { %8599 = vmatprep.mubr.msk.f32.mxu0 %vm10601_vm0, %v13876_v14  ;;  %8679 = vmatpush3.msra.mxu1 %v10878_v6 }
 0x1b3   :  { %8600 = vmatmul.mubr.f32.vlgmr.msra.gmra.mxu0 %v1388_v20  ;;  %8637 = vmatprep.subr.mxu0 %v13876_v14 }
 0x1b4   :  { %8680 = vmatprep.subr.mxu1 %v13876_v14  ;;  %8638 = vmatpush3.msra.mxu0 %v10854_v59 }
 0x1b5   :  { %8681 = vmatpush3.msra.mxu1 %v10893_v12  ;;  %8639 = vmatprep.subr.mxu0 %v13876_v14 }
 0x1b6   :  { %8682 = vmatprep.subr.mxu1 %v13876_v14  ;;  %8640 = vmatpush3.msra.mxu0 %v10864_v63 }
 0x1b7   :  { %8683 = vmatpush3.msra.mxu1 %v10904_v17  ;;  %8641 = vmatprep.subr.mxu0 %v13876_v14 }
 0x1b8   :  { %8684 = vmatprep.subr.mxu1 %v13876_v14  ;;  %8642 = vmatpush3.msra.mxu0 %v10876_v5 }
 0x1b9   :  { %8685 = vmatpush3.msra.mxu1 %v10919_v23  ;;  %8643 = vmatprep.subr.mxu0 %v13876_v14 }
 0x1ba   :  { %8686 = vmatprep.subr.mxu1 %v13876_v14  ;;  %8644 = vmatpush3.msra.mxu0 %v10890_v11 }
 0x1bb   :  { %8687 = vmatpush3.msra.mxu1 %v10936_v29  ;;  %8645 = vmatprep.subr.mxu0 %v13876_v14 }
 0x1bc   :  { %8688 = vmatprep.subr.mxu1 %v13876_v14  ;;  %8646 = vmatpush3.msra.mxu0 %v10908_v18 }
 0x1bd   :  { %8689 = vmatpush3.msra.mxu1 %v10952_v35  ;;  %8647 = vmatprep.subr.mxu0 %v13876_v14 }
 0x1be   :  { %8690 = vmatprep.subr.mxu1 %v13876_v14  ;;  %8648 = vmatpush3.msra.mxu0 %v10917_v22 }
 0x1bf   :  { %8691 = vmatpush3.msra.mxu1 %v10971_v42  ;;  %8649 = vmatprep.subr.mxu0 %v13876_v14 }
 0x1c0   :  { %8692 = vmatprep.subr.mxu1 %v13876_v14  ;;  %8650 = vmatpush3.msra.mxu0 %v10934_v28 }
 0x1c1   :  { %8693 = vmatpush3.msra.mxu1 %v10982_v47  ;;  %8651 = vmatprep.subr.mxu0 %v13876_v14 }
 0x1c2   :  { %8694 = vmatprep.subr.mxu1 %v13876_v14  ;;  %8652 = vmatpush3.msra.mxu0 %v10950_v34 }
 0x1c3   :  { %8695 = vmatpush3.msra.mxu1 %v10998_v53  ;;  %8653 = vmatprep.subr.mxu0 %v13876_v14 }
 0x1c4   :  { %8696 = vmatprep.subr.mxu1 %v13876_v14  ;;  %8654 = vmatpush3.msra.mxu0 %v10967_v41 }
 0x1c5   :  { %8697 = vmatpush3.msra.mxu1 %v11015_v7  ;;  %8655 = vmatprep.subr.mxu0 %v13876_v14 }
 0x1c6   :  { %8698 = vmatprep.subr.mxu1 %v13876_v14  ;;  %8656 = vmatpush3.msra.mxu0 %v10987_v48 }
 0x1c7   :  { %8699 = vmatpush3.msra.mxu1 %v11021_v15  ;;  %8657 = vmatprep.subr.mxu0 %v13876_v14 }
 0x1c8   :  { %8700 = vmatprep.subr.mxu1 %v13876_v14  ;;  %8658 = vmatpush3.msra.mxu0 %v10996_v52 }
 0x1c9   :  { %8701 = vmatpush3.msra.mxu1 %v11023_v19  ;;  %8659 = vmatprep.subr.mxu0 %v13876_v14 }
 0x1ca   :  { %8702 = vmatprep.subr.mxu1 %v13876_v14  ;;  %8660 = vmatpush3.msra.mxu0 %v11013_v3 }
 0x1cb   :  { %8703 = vmatpush3.msra.mxu1 %v11026_v21  ;;  %8704 = vmatprep.mubr.msk.f32.mxu1 %vm10601_vm0, %v13876_v14 }
 0x1cc   :  { %8661 = vmatprep.subr.mxu0 %v13876_v14  ;;  %8705 = vmatmul.mubr.f32.vlgmr.msra.gmra.mxu1 %v1386_v0 }
 0x1cd   :  { %8742 = vmatprep.subr.mxu1 %v13876_v14  ;;  %8662 = vmatpush3.msra.mxu0 %v11035_v31 }
 0x1ce   :  { %8743 = vmatpush3.msra.mxu1 %v10851_v57  ;;  %8663 = vmatprep.subr.mxu0 %v13876_v14 }
 0x1cf   :  { %8744 = vmatprep.subr.mxu1 %v13876_v14  ;;  %8664 = vmatpush3.msra.mxu0 %v11042_v37 }
 0x1d0   :  { %8745 = vmatpush3.msra.mxu1 %v10856_v60  ;;  %8665 = vmatprep.subr.mxu0 %v13876_v14 }
 0x1d1   :  { %8746 = vmatprep.subr.mxu1 %v13876_v14  ;;  %8666 = vmatpush3.msra.mxu0 %v11045_v39 }
 0x1d2   :  { %8747 = vmatpush3.msra.mxu1 %v10866_v1  ;;  %8667 = vmatprep.subr.mxu0 %v13876_v14 }
 0x1d3   :  { %8748 = vmatprep.subr.mxu1 %v13876_v14  ;;  %8668 = vmatpush3.msra.mxu0 %v11048_v43 }
 0x1d4   :  { %8669 = vmatprep.mubr.msk.f32.mxu0 %vm10601_vm0, %v13876_v14  ;;  %8749 = vmatpush3.msra.mxu1 %v10878_v6 }
 0x1d5   :  { %8670 = vmatmul.mubr.f32.vlgmr.msra.gmra.mxu0 %v11314_v36  ;;  %8707 = vmatprep.subr.mxu0 %v13876_v14 }
 0x1d6   :  { %8750 = vmatprep.subr.mxu1 %v13876_v14  ;;  %8708 = vmatpush3.msra.mxu0 %v10861_v62 }
 0x1d7   :  { %8751 = vmatpush3.msra.mxu1 %v10893_v12  ;;  %8709 = vmatprep.subr.mxu0 %v13876_v14 }
 0x1d8   :  { %8752 = vmatprep.subr.mxu1 %v13876_v14  ;;  %8710 = vmatpush3.msra.mxu0 %v10873_v4 }
 0x1d9   :  { %8753 = vmatpush3.msra.mxu1 %v10904_v17  ;;  %8711 = vmatprep.subr.mxu0 %v13876_v14 }
 0x1da   :  { %8754 = vmatprep.subr.mxu1 %v13876_v14  ;;  %8712 = vmatpush3.msra.mxu0 %v10887_v10 }
 0x1db   :  { %8755 = vmatpush3.msra.mxu1 %v10919_v23  ;;  %8713 = vmatprep.subr.mxu0 %v13876_v14 }
 0x1dc   :  { %8756 = vmatprep.subr.mxu1 %v13876_v14  ;;  %8714 = vmatpush3.msra.mxu0 %v10902_v16 }
 0x1dd   :  { %8757 = vmatpush3.msra.mxu1 %v10936_v29  ;;  %8715 = vmatprep.subr.mxu0 %v13876_v14  ;;  %v637_v29 = vld [vmem:[#allocation8] sm:$0xff] }
 0x1de   :  { %8758 = vmatprep.subr.mxu1 %v13876_v14  ;;  %8716 = vmatpush3.msra.mxu0 %v10924_v24 }
 0x1df   :  { %8759 = vmatpush3.msra.mxu1 %v10952_v35  ;;  %8717 = vmatprep.subr.mxu0 %v13876_v14  ;;  %v638_v35 = vld [vmem:[#allocation8 + $0x8] sm:$0xff] }
 0x1e0   :  { %8760 = vmatprep.subr.mxu1 %v13876_v14  ;;  %8718 = vmatpush3.msra.mxu0 %v10931_v27  ;;  %v650_v27 = vld [vmem:[#allocation8 + $0x68] sm:$0xff] }
 0x1e1   :  { %8761 = vmatpush3.msra.mxu1 %v10971_v42  ;;  %8719 = vmatprep.subr.mxu0 %v13876_v14  ;;  %v11491_v10 = vand.u32 4294901760, %v650_v27  ;;  %v11674_v42 = vand.u32 4294901760, %v639_v8 }
 0x1e2   :  { %8762 = vmatprep.subr.mxu1 %v13876_v14  ;;  %8720 = vmatpush3.msra.mxu0 %v10947_v33  ;;  %v652_v33 = vld [vmem:[#allocation8 + $0x78] sm:$0xff] }
 0x1e3   :  { %8763 = vmatpush3.msra.mxu1 %v10982_v47  ;;  %8721 = vmatprep.subr.mxu0 %v13876_v14  ;;  %v11487_v24 = vand.u32 4294901760, %v652_v33  ;;  %13900 = vst [vmem:[#allocation35_spill] sm:$0xff] %v11491_v10  ;;  %13947 = vst [vmem:[#allocation124_spill] sm:$0xff] %v11674_v42  ;;  %v11692_v26 = vsub.f32 %v639_v8, %v11674_v42 }
 0x1e4   :  { %8764 = vmatprep.subr.mxu1 %v13876_v14  ;;  %8722 = vmatpush3.msra.mxu0 %v10964_v40 }
 0x1e5   :  { %8765 = vmatpush3.msra.mxu1 %v10998_v53  ;;  %8723 = vmatprep.subr.mxu0 %v13876_v14  ;;  %13898 = vst [vmem:[#allocation27_spill] sm:$0xff] %v11487_v24  ;;  %13951 = vst [vmem:[#allocation128_spill] sm:$0xff] %v11692_v26  ;;  %v11710_v38 = vand.u32 4294901760, %v11692_v26 }
 0x1e6   :  { %8766 = vmatprep.subr.mxu1 %v13876_v14  ;;  %8724 = vmatpush3.msra.mxu0 %v10980_v46 }
 0x1e7   :  { %8767 = vmatpush3.msra.mxu1 %v11015_v7  ;;  %8725 = vmatprep.subr.mxu0 %v13876_v14  ;;  %v640_v7 = vld [vmem:[#allocation8 + $0x18] sm:$0xff]  ;;  %13956 = vst [vmem:[#allocation133_spill] sm:$0xff] %v11710_v38 }
 0x1e8   :  { %8768 = vmatprep.subr.mxu1 %v13876_v14  ;;  %8726 = vmatpush3.msra.mxu0 %v11003_v54  ;;  %v11657_v47 = vand.u32 4294901760, %v640_v7 }
 0x1e9   :  { %8769 = vmatpush3.msra.mxu1 %v11021_v15  ;;  %8727 = vmatprep.subr.mxu0 %v13876_v14 }
 0x1ea   :  { %8770 = vmatprep.subr.mxu1 %v13876_v14  ;;  %8728 = vmatpush3.msra.mxu0 %v11010_v2  ;;  %13942 = vst [vmem:[#allocation119_spill] sm:$0xff] %v11657_v47 }
 0x1eb   :  { %8771 = vmatpush3.msra.mxu1 %v11023_v19  ;;  %8729 = vmatprep.subr.mxu0 %v13876_v14 }
 0x1ec   :  { %8772 = vmatprep.subr.mxu1 %v13876_v14  ;;  %8730 = vmatpush3.msra.mxu0 %v13877_v44 }
 0x1ed   :  { %8773 = vmatpush3.msra.mxu1 %v11026_v21  ;;  %8774 = vmatprep.mubr.msk.f32.mxu1 %vm10601_vm0, %v13876_v14  ;;  %v1945_v21 = vlaneseq }
 0x1ee   :  { %8731 = vmatprep.subr.mxu0 %v13876_v14  ;;  %8775 = vmatmul.mubr.f32.vlgmr.msra.gmra.mxu1 %v11303_v55 }
 0x1ef   :  { %8732 = vmatpush3.msra.mxu0 %v13878_v50  ;;  %8739 = vmatprep.mubr.msk.f32.mxu0 %vm10601_vm0, %v13876_v14  ;;  %v1946_v19 = vshrl.u32 %v1945_v21, 7 }
 0x1f0   :  { %8733 = vmatprep.subr.mxu0 %v13876_v14  ;;  %8812 = vmatprep.subr.mxu1 %v13876_v14 }
 0x1f1   :  { %8734 = vmatpush3.msra.mxu0 %v13880_v56  ;;  %8844 = vmatprep.mubr.msk.f32.mxu1 %vm10601_vm0, %v13876_v14 }
 0x1f2   :  { %8735 = vmatprep.subr.mxu0 %v13876_v14 }
 0x1f3   :  { %8736 = vmatpush3.msra.mxu0 %v13882_v13 }
 0x1f4   :  { %8737 = vmatprep.subr.mxu0 %v13876_v14 }
 0x1f5   :  { %8738 = vmatpush3.msra.mxu0 %v13884_v32 }
 0x1f6   :  { %8740 = vmatmul.mubr.f32.vlgmr.msra.gmra.mxu0 %v11303_v55  ;;  %8777 = vmatprep.subr.mxu0 %v13876_v14  ;;  %v651_v55 = vld [vmem:[#allocation8 + $0x70] sm:$0xff] }
 0x1f7   :  { %8809 = vmatprep.mubr.msk.f32.mxu0 %vm10601_vm0, %v13876_v14  ;;  %v11489_v16 = vand.u32 4294901760, %v651_v55  ;;  %8778 = vmatpush3.msra.mxu0 %v11487_v24 }
 0x1f8   :  { %8779 = vmatprep.subr.mxu0 %v13876_v14 }
 0x1f9   :  { %13899 = vst [vmem:[#allocation31_spill] sm:$0xff] %v11489_v16  ;;  %8780 = vmatpush3.msra.mxu0 %v11489_v16 }
 0x1fa   :  { %8781 = vmatprep.subr.mxu0 %v13876_v14 }
 0x1fb   :  { %8782 = vmatpush3.msra.mxu0 %v11491_v10 }
 0x1fc   :  { %8783 = vmatprep.subr.mxu0 %v13876_v14 }
 0x206   :  { %v900_v20 = vpop.f32.mrf.mxu1 }
 0x208   :  { %v8426_v36 = vpop.f32.mrf.mxu1 }
 0x209   :  { %v649_v36 = vld [vmem:[#allocation8 + $0x60] sm:$0xff] }
 0x20e   :  { %v749_v30 = vpop.f32.mrf.mxu0 }
 0x20f   :  { %v901_v0 = vadd.f32 %v900_v20, %v749_v30  ;;  %v648_v20 = vld [vmem:[#allocation8 + $0x58] sm:$0xff]  ;;  %v11493_v30 = vand.u32 4294901760, %v649_v36 }
 0x210   :  { %v8391_v56 = vpop.f32.mrf.mxu0 }
 0x211   :  { %v647_v56 = vld [vmem:[#allocation8 + $0x50] sm:$0xff]  ;;  %13901 = vst [vmem:[#allocation42_spill] sm:$0xff] %v11493_v30  ;;  %8784 = vmatpush3.msra.mxu0 %v11493_v30 }
 0x212   :  { %8785 = vmatprep.subr.mxu0 %v13876_v14 }
 0x226   :  { %v1093_v50 = vpop.f32.mrf.mxu1 }
 0x228   :  { %v8496_v44 = vpop.f32.mrf.mxu1 }
 0x229   :  { %v11495_v44 = vand.u32 4294901760, %v648_v20 }
 0x22b   :  { %13902 = vst [vmem:[#allocation79_spill] sm:$0xff] %v11495_v44  ;;  %v11513_v4 = vsub.f32 %v648_v20, %v11495_v44  ;;  %8786 = vmatpush3.msra.mxu0 %v11495_v44 }
 0x22c   :  { %8787 = vmatprep.subr.mxu0 %v13876_v14 }
 0x22d   :  { %13908 = vst [vmem:[#allocation85_spill] sm:$0xff] %v11513_v4  ;;  %v11533_v39 = vand.u32 4294901760, %v11513_v4 }
 0x22f   :  { %v1004_v2 = vpop.f32.mrf.mxu0  ;;  %13914 = vst [vmem:[#allocation91_spill] sm:$0xff] %v11533_v39 }
 0x230   :  { %v1005_v13 = vadd.f32 %v1004_v2, %v901_v0  ;;  %v11500_v2 = vsub.f32 %v652_v33, %v11487_v24  ;;  %v11510_v0 = vsub.f32 %v649_v36, %v11493_v30 }
 0x231   :  { %v8461_v54 = vpop.f32.mrf.mxu0 }
 0x232   :  { %v1094_v46 = vadd.f32 %v1093_v50, %v1005_v13  ;;  %v11497_v54 = vand.u32 4294901760, %v647_v56  ;;  %13904 = vst [vmem:[#allocation81_spill] sm:$0xff] %v11500_v2  ;;  %v11503_v50 = vsub.f32 %v651_v55, %v11489_v16  ;;  %v11506_v13 = vsub.f32 %v650_v27, %v11491_v10  ;;  %13907 = vst [vmem:[#allocation84_spill] sm:$0xff] %v11510_v0 }
 0x233   :  { %v11520_v55 = vand.u32 4294901760, %v11500_v2  ;;  %v11530_v20 = vand.u32 4294901760, %v11510_v0 }
 0x234   :  { %13903 = vst [vmem:[#allocation80_spill] sm:$0xff] %v11497_v54  ;;  %13905 = vst [vmem:[#allocation82_spill] sm:$0xff] %v11503_v50  ;;  %v11517_v33 = vsub.f32 %v647_v56, %v11497_v54  ;;  %v11523_v27 = vand.u32 4294901760, %v11503_v50  ;;  %v11526_v43 = vand.u32 4294901760, %v11506_v13  ;;  %8788 = vmatpush3.msra.mxu0 %v11497_v54 }
 0x235   :  { %13906 = vst [vmem:[#allocation83_spill] sm:$0xff] %v11506_v13  ;;  %13910 = vst [vmem:[#allocation87_spill] sm:$0xff] %v11520_v55  ;;  %v2050_v56 = vsub.f32 %v11500_v2, %v11520_v55  ;;  %8789 = vmatprep.subr.mxu0 %v13876_v14 }
 0x236   :  { %13909 = vst [vmem:[#allocation86_spill] sm:$0xff] %v11517_v33  ;;  %13911 = vst [vmem:[#allocation88_spill] sm:$0xff] %v11523_v27  ;;  %v2064_v37 = vsub.f32 %v11506_v13, %v11526_v43 }
 0x237   :  { %13912 = vst [vmem:[#allocation89_spill] sm:$0xff] %v11526_v43  ;;  %13913 = vst [vmem:[#allocation90_spill] sm:$0xff] %v11530_v20 }
 0x238   :  { %v11556_v3 = vand.u32 4294901760, %v2064_v37 }
 0x23a   :  { %13918 = vst [vmem:[#allocation95_spill] sm:$0xff] %v11556_v3 }
 0x248   :  { %v1299_v40 = vpop.f32.mrf.mxu1 }
 0x24a   :  { %v8566_v32 = vpop.f32.mrf.mxu1 }
 0x251   :  { %v1212_v32 = vpop.f32.mrf.mxu0 }
 0x252   :  { %v1213_v62 = vadd.f32 %v1212_v32, %v1094_v46  ;;  %v2057_v32 = vsub.f32 %v11503_v50, %v11523_v27 }
 0x253   :  { %v8531_v36 = vpop.f32.mrf.mxu0 }
 0x254   :  { %v1300_v46 = vadd.f32 %v1299_v40, %v1213_v62  ;;  %v11544_v36 = vand.u32 4294901760, %v2050_v56  ;;  %v11546_v31 = vand.u32 4294901760, %v2057_v32  ;;  %v2071_v62 = vsub.f32 %v11510_v0, %v11530_v20 }
 0x255   :  { %v11551_v40 = vand.u32 4294901760, %v11517_v33  ;;  %v2078_v56 = vsub.f32 %v11513_v4, %v11533_v39 }
 0x256   :  { %13915 = vst [vmem:[#allocation92_spill] sm:$0xff] %v11544_v36  ;;  %13916 = vst [vmem:[#allocation93_spill] sm:$0xff] %v11546_v31  ;;  %8813 = vmatpush3.msra.mxu1 %v11544_v36  ;;  %v11564_v32 = vand.u32 4294901760, %v2071_v62 }
 0x257   :  { %13917 = vst [vmem:[#allocation94_spill] sm:$0xff] %v11551_v40  ;;  %8814 = vmatprep.subr.mxu1 %v13876_v14  ;;  %v2085_v52 = vsub.f32 %v11517_v33, %v11551_v40  ;;  %v11572_v37 = vand.u32 4294901760, %v2078_v56 }
 0x258   :  { %8815 = vmatpush3.msra.mxu1 %v11546_v31  ;;  %13919 = vst [vmem:[#allocation96_spill] sm:$0xff] %v11564_v32 }
 0x259   :  { %8816 = vmatprep.subr.mxu1 %v13876_v14  ;;  %13920 = vst [vmem:[#allocation97_spill] sm:$0xff] %v11572_v37  ;;  %v11576_v31 = vand.u32 4294901760, %v2085_v52 }
 0x25a   :  { %8817 = vmatpush3.msra.mxu1 %v11556_v3 }
 0x25b   :  { %8818 = vmatprep.subr.mxu1 %v13876_v14  ;;  %13921 = vst [vmem:[#allocation98_spill] sm:$0xff] %v11576_v31 }
 0x25c   :  { %8819 = vmatpush3.msra.mxu1 %v11564_v32 }
 0x25d   :  { %8820 = vmatprep.subr.mxu1 %v13876_v14 }
 0x25e   :  { %8821 = vmatpush3.msra.mxu1 %v11572_v37 }
 0x25f   :  { %8822 = vmatprep.subr.mxu1 %v13876_v14 }
 0x260   :  { %8823 = vmatpush3.msra.mxu1 %v11576_v31 }
 0x261   :  { %8824 = vmatprep.subr.mxu1 %v13876_v14 }
 0x26a   :  { %v1541_v62 = vpop.f32.mrf.mxu1 }
 0x26c   :  { %v8636_v3 = vpop.f32.mrf.mxu1 }
 0x26d   :  { %v11583_v3 = vsub.s32 0, %v1946_v19 }
 0x26f   :  { %13922 = vst [vmem:[#allocation99_spill] sm:$0xff] %v11583_v3 }
 0x273   :  { %v1390_v56 = vpop.f32.mrf.mxu0 }
 0x274   :  { %v1391_v52 = vadd.f32 1e-08, %v1390_v56 }
 0x275   :  { %v8601_v36 = vpop.f32.mrf.mxu0 }
 0x276   :  { %v1542_v22 = vadd.f32 %v1541_v62, %v1391_v52 }
 0x28c   :  { %v1734_v48 = vpop.f32.mrf.mxu1 }
 0x28e   :  { %v8706_v41 = vpop.f32.mrf.mxu1 }
 0x295   :  { %v1645_v34 = vpop.f32.mrf.mxu0 }
 0x296   :  { %v1646_v11 = vadd.f32 %v1645_v34, %v1542_v22 }
 0x297   :  { %v8671_v32 = vpop.f32.mrf.mxu0 }
 0x298   :  { %v1735_v37 = vadd.f32 %v1734_v48, %v1646_v11  ;;  %v646_v32 = vld [vmem:[#allocation8 + $0x48] sm:$0xff]  ;;  %v645_v11 = vld [vmem:[#allocation8 + $0x40] sm:$0xff]  ;;  %v643_v48 = vld [vmem:[#allocation8 + $0x30] sm:$0xff] }
 0x2ae   :  { %v1940_v28 = vpop.f32.mrf.mxu1 }
 0x2b0   :  { %v8776_v18 = vpop.f32.mrf.mxu1 }
 0x2b1   :  { %v11589_v18 = vand.u32 4294901760, %v646_v32 }
 0x2b3   :  { %13923 = vst [vmem:[#allocation100_spill] sm:$0xff] %v11589_v18  ;;  %8790 = vmatpush3.msra.mxu0 %v11589_v18 }
 0x2b4   :  { %8791 = vmatprep.subr.mxu0 %v13876_v14 }
 0x2b6   :  { %v1853_v5 = vpop.f32.mrf.mxu0 }
 0x2b7   :  { %v1854_v63 = vadd.f32 %v1853_v5, %v1735_v37  ;;  %v11592_v5 = vsub.f32 %v646_v32, %v11589_v18  ;;  %v642_v37 = vld [vmem:[#allocation8 + $0x28] sm:$0xff]  ;;  %v641_v32 = vld [vmem:[#allocation8 + $0x20] sm:$0xff] }
 0x2b8   :  { %v8741_v59 = vpop.f32.mrf.mxu0 }
 0x2b9   :  { %v1941_v31 = vadd.f32 %v1940_v28, %v1854_v63  ;;  %13924 = vst [vmem:[#allocation101_spill] sm:$0xff] %v11592_v5  ;;  %v11594_v59 = vand.u32 4294901760, %v645_v11  ;;  %v644_v63 = vld [vmem:[#allocation8 + $0x38] sm:$0xff]  ;;  %v11599_v22 = vand.u32 4294901760, %v11592_v5 }
 0x2ba   :  { %v11604_v34 = vand.u32 4294901760, %v644_v63 }
 0x2bb   :  { %10466 = vrsqrt.f32 %v1941_v31  ;;  %13925 = vst [vmem:[#allocation102_spill] sm:$0xff] %v11594_v59  ;;  %13926 = vst [vmem:[#allocation103_spill] sm:$0xff] %v11599_v22  ;;  %v11602_v28 = vsub.f32 %v645_v11, %v11594_v59  ;;  %8792 = vmatpush3.msra.mxu0 %v11594_v59  ;;  %v2092_v19 = vsub.f32 %v11592_v5, %v11599_v22 }
 0x2bc   :  { %13928 = vst [vmem:[#allocation105_spill] sm:$0xff] %v11604_v34  ;;  %8793 = vmatprep.subr.mxu0 %v13876_v14  ;;  %v11614_v31 = vsub.f32 %v644_v63, %v11604_v34 }
 0x2bd   :  { %13927 = vst [vmem:[#allocation104_spill] sm:$0xff] %v11602_v28  ;;  %v11611_v21 = vand.u32 4294901760, %v11602_v28  ;;  %8794 = vmatpush3.msra.mxu0 %v11604_v34  ;;  %v11620_v62 = vand.u32 4294901760, %v2092_v19 }
 0x2be   :  { %13930 = vst [vmem:[#allocation107_spill] sm:$0xff] %v11614_v31  ;;  %8795 = vmatprep.subr.mxu0 %v13876_v14  ;;  %v11625_v52 = vand.u32 4294901760, %v11614_v31 }
 0x2bf   :  { %13929 = vst [vmem:[#allocation106_spill] sm:$0xff] %v11611_v21  ;;  %13932 = vst [vmem:[#allocation109_spill] sm:$0xff] %v11620_v62  ;;  %v2099_v56 = vsub.f32 %v11602_v28, %v11611_v21  ;;  %8825 = vmatpush3.msra.mxu1 %v11620_v62 }
 0x2c0   :  { %13933 = vst [vmem:[#allocation110_spill] sm:$0xff] %v11625_v52  ;;  %v2106_v63 = vsub.f32 %v11614_v31, %v11625_v52  ;;  %8826 = vmatprep.subr.mxu1 %v13876_v14 }
 0x2c1   :  { %v11635_v11 = vand.u32 4294901760, %v2099_v56 }
 0x2c2   :  { %v11650_v56 = vand.u32 4294901760, %v2106_v63 }
 0x2c3   :  { %13936 = vst [vmem:[#allocation113_spill] sm:$0xff] %v11635_v11  ;;  %8827 = vmatpush3.msra.mxu1 %v11635_v11 }
 0x2c4   :  { %13940 = vst [vmem:[#allocation117_spill] sm:$0xff] %v11650_v56  ;;  %8828 = vmatprep.subr.mxu1 %v13876_v14 }
 0x2c5   :  { %8829 = vmatpush3.msra.mxu1 %v11650_v56  ;;  %v11680_v56 = vand.u32 4294901760, %v638_v35 }
 0x2c6   :  { %8830 = vmatprep.subr.mxu1 %v13876_v14 }
 0x2c7   :  { %13948 = vst [vmem:[#allocation125_spill] sm:$0xff] %v11680_v56  ;;  %v11699_v58 = vsub.f32 %v638_v35, %v11680_v56 }
 0x2c8   :  { %v10467_v36 = vpop.eup %10466 }
 0x2c9   :  { %v1948_v41 = vrot.slane %v10467_v36, %v11583_v3  ;;  %v11642_v3 = vand.u32 4294901760, %v641_v32  ;;  %13953 = vst [vmem:[#allocation130_spill] sm:$0xff] %v11699_v58 }
 0x2cb   :  { %v11586_v15 = vmul.f32 %v1948_v41, %v1300_v46  ;;  %v11616_v46 = vand.u32 4294901760, %v643_v48  ;;  %v11631_v41 = vand.u32 4294901760, %v642_v37  ;;  %13938 = vst [vmem:[#allocation115_spill] sm:$0xff] %v11642_v3  ;;  %v11655_v53 = vsub.f32 %v641_v32, %v11642_v3 }
 0x2cc   :  { %v11672_v32 = vsub.f32 %v640_v7, %v11657_v47 }
 0x2cd   :  { %1950 = vmax.xlane.f32.xlu0 %v11586_v15  ;;  %13931 = vst [vmem:[#allocation108_spill] sm:$0xff] %v11616_v46  ;;  %v11628_v36 = vsub.f32 %v643_v48, %v11616_v46  ;;  %8796 = vmatpush3.msra.mxu0 %v11616_v46  ;;  %13935 = vst [vmem:[#allocation112_spill] sm:$0xff] %v11631_v41  ;;  %v11646_v48 = vsub.f32 %v642_v37, %v11631_v41  ;;  %v11669_v11 = vand.u32 4294901760, %v11655_v53 }
 0x2ce   :  { %8797 = vmatprep.subr.mxu0 %v13876_v14  ;;  %13941 = vst [vmem:[#allocation118_spill] sm:$0xff] %v11655_v53  ;;  %13946 = vst [vmem:[#allocation123_spill] sm:$0xff] %v11672_v32  ;;  %v11689_v17 = vand.u32 4294901760, %v11672_v32 }
 0x2cf   :  { %13934 = vst [vmem:[#allocation111_spill] sm:$0xff] %v11628_v36  ;;  %v11640_v19 = vand.u32 4294901760, %v11628_v36  ;;  %13939 = vst [vmem:[#allocation116_spill] sm:$0xff] %v11646_v48  ;;  %8798 = vmatpush3.msra.mxu0 %v11631_v41  ;;  %v11662_v37 = vand.u32 4294901760, %v11646_v48  ;;  %v2127_v7 = vsub.f32 %v11655_v53, %v11669_v11 }
 0x2d0   :  { %8799 = vmatprep.subr.mxu0 %v13876_v14  ;;  %13945 = vst [vmem:[#allocation122_spill] sm:$0xff] %v11669_v11  ;;  %13950 = vst [vmem:[#allocation127_spill] sm:$0xff] %v11689_v17  ;;  %v2134_v8 = vsub.f32 %v11672_v32, %v11689_v17 }
 0x2d1   :  { %13937 = vst [vmem:[#allocation114_spill] sm:$0xff] %v11640_v19  ;;  %v2113_v62 = vsub.f32 %v11628_v36, %v11640_v19  ;;  %13943 = vst [vmem:[#allocation120_spill] sm:$0xff] %v11662_v37  ;;  %8800 = vmatpush3.msra.mxu0 %v11642_v3  ;;  %v2120_v23 = vsub.f32 %v11646_v48, %v11662_v37  ;;  %v11705_v6 = vand.u32 4294901760, %v2127_v7 }
 0x2d2   :  { %8801 = vmatprep.subr.mxu0 %v13876_v14  ;;  %v11722_v35 = vand.u32 4294901760, %v2134_v8  ;;  %v2141_v7 = vsub.f32 %v11692_v26, %v11710_v38 }
 0x2d3   :  { %v11666_v63 = vand.u32 4294901760, %v2113_v62  ;;  %v11682_v62 = vand.u32 4294901760, %v637_v29  ;;  %8802 = vmatpush3.msra.mxu0 %v11657_v47  ;;  %v11696_v12 = vand.u32 4294901760, %v2120_v23  ;;  %13955 = vst [vmem:[#allocation132_spill] sm:$0xff] %v11705_v6  ;;  %v11715_v23 = vand.u32 4294901760, %v11699_v58 }
 0x2d4   :  { %8803 = vmatprep.subr.mxu0 %v13876_v14  ;;  %13959 = vst [vmem:[#allocation136_spill] sm:$0xff] %v11722_v35  ;;  %v11734_v9 = vand.u32 4294901760, %v2141_v7 }
 0x2d5   :  { %13944 = vst [vmem:[#allocation121_spill] sm:$0xff] %v11666_v63  ;;  %13949 = vst [vmem:[#allocation126_spill] sm:$0xff] %v11682_v62  ;;  %8831 = vmatpush3.msra.mxu1 %v11666_v63  ;;  %v11702_v63 = vsub.f32 %v637_v29, %v11682_v62  ;;  %8804 = vmatpush3.msra.mxu0 %v11674_v42 }
 0x2d6   :  { %8832 = vmatprep.subr.mxu1 %v13876_v14  ;;  %13952 = vst [vmem:[#allocation129_spill] sm:$0xff] %v11696_v12  ;;  %8805 = vmatprep.subr.mxu0 %v13876_v14  ;;  %13957 = vst [vmem:[#allocation134_spill] sm:$0xff] %v11715_v23 }
 0x2d7   :  { %13954 = vst [vmem:[#allocation131_spill] sm:$0xff] %v11702_v63  ;;  %8833 = vmatpush3.msra.mxu1 %v11696_v12  ;;  %v11718_v29 = vand.u32 4294901760, %v11702_v63  ;;  %8806 = vmatpush3.msra.mxu0 %v11680_v56  ;;  %v2148_v12 = vsub.f32 %v11699_v58, %v11715_v23  ;;  %13960 = vst [vmem:[#allocation137_spill] sm:$0xff] %v11734_v9 }
 0x2d8   :  { %8834 = vmatprep.subr.mxu1 %v13876_v14  ;;  %8807 = vmatprep.subr.mxu0 %v13876_v14 }
 0x2d9   :  { %13958 = vst [vmem:[#allocation135_spill] sm:$0xff] %v11718_v29  ;;  %8835 = vmatpush3.msra.mxu1 %v11705_v6  ;;  %v2155_v1 = vsub.f32 %v11702_v63, %v11718_v29  ;;  %8808 = vmatpush3.msra.mxu0 %v11682_v62  ;;  %v11738_v8 = vand.u32 4294901760, %v2148_v12 }
 0x2da   :  { %8836 = vmatprep.subr.mxu1 %v13876_v14  ;;  %8847 = vmatprep.subr.mxu0 %v13876_v14 }
 0x2db   :  { %8837 = vmatpush3.msra.mxu1 %v11722_v35  ;;  %13961 = vst [vmem:[#allocation138_spill] sm:$0xff] %v11738_v8  ;;  %v11742_v6 = vand.u32 4294901760, %v2155_v1 }
 0x2dc   :  { %8838 = vmatprep.subr.mxu1 %v13876_v14 }
 0x2dd   :  { %8839 = vmatpush3.msra.mxu1 %v11734_v9  ;;  %13962 = vst [vmem:[#allocation139_spill] sm:$0xff] %v11742_v6 }
 0x2de   :  { %8840 = vmatprep.subr.mxu1 %v13876_v14 }
 0x2df   :  { %8841 = vmatpush3.msra.mxu1 %v11738_v8 }
 0x2e0   :  { %8842 = vmatprep.subr.mxu1 %v13876_v14 }
 0x2e1   :  { %8843 = vmatpush3.msra.mxu1 %v11742_v6 }
 0x2e2   :  { %8882 = vmatprep.subr.mxu1 %v13876_v14 }
 0x356   :  { %v1951_v7 = vpop.xlane.xlu0 %1950 }
 0x357   :  { %v1952_v12 = vsub.f32 %v11586_v15, %v1951_v7 }
 0x359   :  { %v1953_v35 = vmul.f32 1.442695, %v1952_v12  ;;  %v13964_v12 = vld [vmem:[#allocation43_spill] sm:$0xff] }
 0x35b   :  { %10468 = vpow2.f32 %v1953_v35 }
 0x368   :  { %v11750_v60 = vpop.eup %10468 }
 0x369   :  { %v11753_v1 = vand.u32 4294901760, %v11750_v60 }
 0x36b   :  { %8845 = vmatmul.mubr.f32.vlgmr.msra.gmra.mxu1 %v11753_v1  ;;  %v11758_v8 = vsub.f32 %v11750_v60, %v11753_v1 }
 0x36c   :  { %8883 = vmatpush3.msra.mxu1 %v11487_v24  ;;  %8914 = vmatprep.mubr.msk.f32.mxu1 %vm10601_vm0, %v13876_v14 }
 0x36d   :  { %8884 = vmatprep.subr.mxu1 %v13876_v14  ;;  %v2038_v15 = vand.u32 4294901760, %v11758_v8 }
 0x36e   :  { %8885 = vmatpush3.msra.mxu1 %v11489_v16 }
 0x36f   :  { %8886 = vmatprep.subr.mxu1 %v13876_v14  ;;  %v2039_v35 = vsub.f32 %v11758_v8, %v2038_v15 }
 0x370   :  { %8887 = vmatpush3.msra.mxu1 %v11491_v10 }
 0x371   :  { %8888 = vmatprep.subr.mxu1 %v13876_v14  ;;  %v2040_v7 = vand.u32 4294901760, %v2039_v35  ;;  %v13967_v35 = vld [vmem:[#allocation22_spill] sm:$0xff] }
 0x372   :  { %8889 = vmatpush3.msra.mxu1 %v11493_v30 }
 0x373   :  { %8890 = vmatprep.subr.mxu1 %v13876_v14  ;;  %8810 = vmatmul.mubr.f32.vlgmr.msra.gmra.mxu0 %v2040_v7  ;;  %v13968_v7 = vld [vmem:[#allocation51_spill] sm:$0xff] }
 0x374   :  { %8848 = vmatpush3.msra.mxu0 %v11500_v2  ;;  %8891 = vmatpush3.msra.mxu1 %v11495_v44 }
 0x375   :  { %8849 = vmatprep.subr.mxu0 %v13876_v14  ;;  %8892 = vmatprep.subr.mxu1 %v13876_v14 }
 0x376   :  { %8850 = vmatpush3.msra.mxu0 %v11503_v50  ;;  %8893 = vmatpush3.msra.mxu1 %v11497_v54 }
 0x377   :  { %8851 = vmatprep.subr.mxu0 %v13876_v14  ;;  %8894 = vmatprep.subr.mxu1 %v13876_v14 }
 0x378   :  { %8852 = vmatpush3.msra.mxu0 %v11506_v13  ;;  %8895 = vmatpush3.msra.mxu1 %v11589_v18 }
 0x379   :  { %8853 = vmatprep.subr.mxu0 %v13876_v14  ;;  %8896 = vmatprep.subr.mxu1 %v13876_v14 }
 0x37a   :  { %8854 = vmatpush3.msra.mxu0 %v11510_v0  ;;  %8897 = vmatpush3.msra.mxu1 %v11594_v59 }
 0x37b   :  { %8855 = vmatprep.subr.mxu0 %v13876_v14  ;;  %8898 = vmatprep.subr.mxu1 %v13876_v14 }
 0x37c   :  { %8856 = vmatpush3.msra.mxu0 %v11513_v4  ;;  %8899 = vmatpush3.msra.mxu1 %v11604_v34 }
 0x37d   :  { %8857 = vmatprep.subr.mxu0 %v13876_v14  ;;  %8900 = vmatprep.subr.mxu1 %v13876_v14 }
 0x37e   :  { %8858 = vmatpush3.msra.mxu0 %v11517_v33  ;;  %8901 = vmatpush3.msra.mxu1 %v11616_v46 }
 0x37f   :  { %8859 = vmatprep.subr.mxu0 %v13876_v14  ;;  %8902 = vmatprep.subr.mxu1 %v13876_v14 }
 0x380   :  { %8860 = vmatpush3.msra.mxu0 %v11592_v5  ;;  %8903 = vmatpush3.msra.mxu1 %v11631_v41 }
 0x381   :  { %8861 = vmatprep.subr.mxu0 %v13876_v14  ;;  %8904 = vmatprep.subr.mxu1 %v13876_v14 }
 0x382   :  { %8862 = vmatpush3.msra.mxu0 %v11602_v28  ;;  %8905 = vmatpush3.msra.mxu1 %v11642_v3 }
 0x383   :  { %8863 = vmatprep.subr.mxu0 %v13876_v14  ;;  %8906 = vmatprep.subr.mxu1 %v13876_v14 }
 0x384   :  { %8864 = vmatpush3.msra.mxu0 %v11614_v31  ;;  %8907 = vmatpush3.msra.mxu1 %v11657_v47 }
 0x385   :  { %8865 = vmatprep.subr.mxu0 %v13876_v14  ;;  %8908 = vmatprep.subr.mxu1 %v13876_v14 }
 0x386   :  { %8866 = vmatpush3.msra.mxu0 %v11628_v36  ;;  %8909 = vmatpush3.msra.mxu1 %v11674_v42 }
 0x387   :  { %8867 = vmatprep.subr.mxu0 %v13876_v14  ;;  %8910 = vmatprep.subr.mxu1 %v13876_v14 }
 0x388   :  { %8868 = vmatpush3.msra.mxu0 %v11646_v48  ;;  %8911 = vmatpush3.msra.mxu1 %v11680_v56 }
 0x389   :  { %8869 = vmatprep.subr.mxu0 %v13876_v14  ;;  %8912 = vmatprep.subr.mxu1 %v13876_v14 }
 0x38a   :  { %8870 = vmatpush3.msra.mxu0 %v11655_v53  ;;  %8913 = vmatpush3.msra.mxu1 %v11682_v62 }
 0x38b   :  { %8871 = vmatprep.subr.mxu0 %v13876_v14  ;;  %8915 = vmatmul.mubr.f32.vlgmr.msra.gmra.mxu1 %v2038_v15  ;;  %v13966_v15 = vld [vmem:[#allocation47_spill] sm:$0xff] }
 0x38c   :  { %8952 = vmatprep.subr.mxu1 %v13876_v14  ;;  %8872 = vmatpush3.msra.mxu0 %v11672_v32  ;;  %v13988_v32 = vld [vmem:[#allocation61_spill] sm:$0xff] }
 0x38d   :  { %8953 = vmatpush3.msra.mxu1 %v11487_v24  ;;  %8873 = vmatprep.subr.mxu0 %v13876_v14  ;;  %v14018_v24 = vld [vmem:[#allocation69_spill] sm:$0xff] }
 0x38e   :  { %8954 = vmatprep.subr.mxu1 %v13876_v14  ;;  %8874 = vmatpush3.msra.mxu0 %v11692_v26  ;;  %v13987_v26 = vld [vmem:[#allocation60_spill] sm:$0xff] }
 0x38f   :  { %8955 = vmatpush3.msra.mxu1 %v11489_v16  ;;  %8875 = vmatprep.subr.mxu0 %v13876_v14  ;;  %v14017_v16 = vld [vmem:[#allocation62_spill] sm:$0xff] }
 0x390   :  { %8956 = vmatprep.subr.mxu1 %v13876_v14  ;;  %8876 = vmatpush3.msra.mxu0 %v11699_v58  ;;  %v13986_v58 = vld [vmem:[#allocation59_spill] sm:$0xff] }
 0x391   :  { %8957 = vmatpush3.msra.mxu1 %v11491_v10  ;;  %8877 = vmatprep.subr.mxu0 %v13876_v14  ;;  %v14016_v10 = vld [vmem:[#allocation56_spill] sm:$0xff] }
 0x392   :  { %8958 = vmatprep.subr.mxu1 %v13876_v14  ;;  %8878 = vmatpush3.msra.mxu0 %v11702_v63  ;;  %v13985_v63 = vld [vmem:[#allocation58_spill] sm:$0xff] }
 0x393   :  { %8879 = vmatprep.mubr.msk.f32.mxu0 %vm10601_vm0, %v13876_v14  ;;  %8959 = vmatpush3.msra.mxu1 %v11493_v30  ;;  %v14015_v30 = vld [vmem:[#allocation54_spill] sm:$0xff] }
 0x394   :  { %8880 = vmatmul.mubr.f32.vlgmr.msra.gmra.mxu0 %v11758_v8  ;;  %8917 = vmatprep.subr.mxu0 %v13876_v14  ;;  %v13963_v8 = vld [vmem:[#allocation16_spill] sm:$0xff] }
 0x395   :  { %8960 = vmatprep.subr.mxu1 %v13876_v14  ;;  %8918 = vmatpush3.msra.mxu0 %v11520_v55  ;;  %v13984_v55 = vld [vmem:[#allocation77_spill] sm:$0xff] }
 0x396   :  { %8961 = vmatpush3.msra.mxu1 %v11495_v44  ;;  %8919 = vmatprep.subr.mxu0 %v13876_v14  ;;  %v14014_v44 = vld [vmem:[#allocation48_spill] sm:$0xff] }
 0x397   :  { %8962 = vmatprep.subr.mxu1 %v13876_v14  ;;  %8920 = vmatpush3.msra.mxu0 %v11523_v27  ;;  %v13983_v27 = vld [vmem:[#allocation53_spill] sm:$0xff] }
 0x398   :  { %8963 = vmatpush3.msra.mxu1 %v11497_v54  ;;  %8921 = vmatprep.subr.mxu0 %v13876_v14  ;;  %v14013_v54 = vld [vmem:[#allocation44_spill] sm:$0xff] }
 0x399   :  { %8964 = vmatprep.subr.mxu1 %v13876_v14  ;;  %8922 = vmatpush3.msra.mxu0 %v11526_v43  ;;  %v13982_v43 = vld [vmem:[#allocation76_spill] sm:$0xff] }
 0x39a   :  { %8965 = vmatpush3.msra.mxu1 %v11589_v18  ;;  %8923 = vmatprep.subr.mxu0 %v13876_v14  ;;  %v14012_v18 = vld [vmem:[#allocation39_spill] sm:$0xff] }
 0x39b   :  { %8966 = vmatprep.subr.mxu1 %v13876_v14  ;;  %8924 = vmatpush3.msra.mxu0 %v11530_v20  ;;  %v13981_v20 = vld [vmem:[#allocation49_spill] sm:$0xff] }
 0x39c   :  { %8967 = vmatpush3.msra.mxu1 %v11594_v59  ;;  %8925 = vmatprep.subr.mxu0 %v13876_v14 }
 0x39d   :  { %8968 = vmatprep.subr.mxu1 %v13876_v14  ;;  %8926 = vmatpush3.msra.mxu0 %v11533_v39  ;;  %v13980_v39 = vld [vmem:[#allocation75_spill] sm:$0xff] }
 0x39e   :  { %8969 = vmatpush3.msra.mxu1 %v11604_v34  ;;  %8927 = vmatprep.subr.mxu0 %v13876_v14 }
 0x39f   :  { %8970 = vmatprep.subr.mxu1 %v13876_v14  ;;  %8928 = vmatpush3.msra.mxu0 %v11551_v40  ;;  %v13979_v40 = vld [vmem:[#allocation46_spill] sm:$0xff] }
 0x3a0   :  { %8971 = vmatpush3.msra.mxu1 %v11616_v46  ;;  %8929 = vmatprep.subr.mxu0 %v13876_v14 }
 0x3a1   :  { %8972 = vmatprep.subr.mxu1 %v13876_v14  ;;  %8930 = vmatpush3.msra.mxu0 %v11599_v22  ;;  %v13978_v22 = vld [vmem:[#allocation74_spill] sm:$0xff] }
 0x3a2   :  { %8973 = vmatpush3.msra.mxu1 %v11631_v41  ;;  %8931 = vmatprep.subr.mxu0 %v13876_v14 }
 0x3a3   :  { %8974 = vmatprep.subr.mxu1 %v13876_v14  ;;  %8932 = vmatpush3.msra.mxu0 %v11611_v21  ;;  %v13977_v21 = vld [vmem:[#allocation41_spill] sm:$0xff] }
 0x3a4   :  { %8975 = vmatpush3.msra.mxu1 %v11642_v3  ;;  %8933 = vmatprep.subr.mxu0 %v13876_v14 }
 0x3a5   :  { %8976 = vmatprep.subr.mxu1 %v13876_v14  ;;  %8934 = vmatpush3.msra.mxu0 %v11625_v52  ;;  %v13976_v52 = vld [vmem:[#allocation73_spill] sm:$0xff] }
 0x3a6   :  { %8977 = vmatpush3.msra.mxu1 %v11657_v47  ;;  %8935 = vmatprep.subr.mxu0 %v13876_v14 }
 0x3a7   :  { %8978 = vmatprep.subr.mxu1 %v13876_v14  ;;  %8936 = vmatpush3.msra.mxu0 %v11640_v19  ;;  %v13975_v19 = vld [vmem:[#allocation38_spill] sm:$0xff] }
 0x3a8   :  { %8979 = vmatpush3.msra.mxu1 %v11674_v42  ;;  %8937 = vmatprep.subr.mxu0 %v13876_v14 }
 0x3a9   :  { %8980 = vmatprep.subr.mxu1 %v13876_v14  ;;  %8938 = vmatpush3.msra.mxu0 %v11662_v37  ;;  %v13974_v37 = vld [vmem:[#allocation68_spill] sm:$0xff] }
 0x3aa   :  { %8981 = vmatpush3.msra.mxu1 %v11680_v56  ;;  %8939 = vmatprep.subr.mxu0 %v13876_v14 }
 0x3ab   :  { %8982 = vmatprep.subr.mxu1 %v13876_v14  ;;  %8940 = vmatpush3.msra.mxu0 %v11669_v11  ;;  %v13973_v11 = vld [vmem:[#allocation33_spill] sm:$0xff] }
 0x3ac   :  { %8983 = vmatpush3.msra.mxu1 %v11682_v62  ;;  %8984 = vmatprep.mubr.msk.f32.mxu1 %vm10601_vm0, %v13876_v14 }
 0x3ad   :  { %8941 = vmatprep.subr.mxu0 %v13876_v14  ;;  %8985 = vmatmul.mubr.f32.vlgmr.msra.gmra.mxu1 %v11753_v1 }
 0x3ae   :  { %8942 = vmatpush3.msra.mxu0 %v11689_v17  ;;  %8949 = vmatprep.mubr.msk.f32.mxu0 %vm10601_vm0, %v13876_v14  ;;  %v13972_v17 = vld [vmem:[#allocation64_spill] sm:$0xff] }
 0x3af   :  { %8943 = vmatprep.subr.mxu0 %v13876_v14  ;;  %9022 = vmatprep.subr.mxu1 %v13876_v14 }
 0x3b0   :  { %8944 = vmatpush3.msra.mxu0 %v11710_v38  ;;  %9023 = vmatpush3.msra.mxu1 %v13879_v51  ;;  %v13971_v38 = vld [vmem:[#allocation29_spill] sm:$0xff] }
 0x3b1   :  { %8945 = vmatprep.subr.mxu0 %v13876_v14  ;;  %9024 = vmatprep.subr.mxu1 %v13876_v14 }
 0x3b2   :  { %8946 = vmatpush3.msra.mxu0 %v11715_v23  ;;  %9025 = vmatpush3.msra.mxu1 %v13881_v49  ;;  %v13970_v23 = vld [vmem:[#allocation55_spill] sm:$0xff] }
 0x3b3   :  { %8947 = vmatprep.subr.mxu0 %v13876_v14  ;;  %9026 = vmatprep.subr.mxu1 %v13876_v14 }
 0x3b4   :  { %8948 = vmatpush3.msra.mxu0 %v11718_v29  ;;  %9027 = vmatpush3.msra.mxu1 %v13883_v25  ;;  %v13969_v29 = vld [vmem:[#allocation26_spill] sm:$0xff] }
 0x3b5   :  { %8950 = vmatmul.mubr.f32.vlgmr.msra.gmra.mxu0 %v11753_v1  ;;  %9028 = vmatprep.subr.mxu1 %v13876_v14  ;;  %v13965_v1 = vld [vmem:[#allocation19_spill] sm:$0xff] }
 0x3b6   :  { %9029 = vmatpush3.msra.mxu1 %v13885_v45  ;;  %8987 = vmatprep.subr.mxu0 %v13876_v14 }
 0x3b7   :  { %9030 = vmatprep.subr.mxu1 %v13876_v14  ;;  %8988 = vmatpush3.msra.mxu0 %v10851_v57 }
 0x3b8   :  { %9031 = vmatpush3.msra.mxu1 %v13886_v61  ;;  %8989 = vmatprep.subr.mxu0 %v13876_v14 }
 0x3b9   :  { %9032 = vmatprep.subr.mxu1 %v13876_v14  ;;  %8990 = vmatpush3.msra.mxu0 %v13963_v8 }
 0x3ba   :  { %9033 = vmatpush3.msra.mxu1 %v13964_v12  ;;  %8991 = vmatprep.subr.mxu0 %v13876_v14 }
 0x3bb   :  { %9034 = vmatprep.subr.mxu1 %v13876_v14  ;;  %8992 = vmatpush3.msra.mxu0 %v13965_v1 }
 0x3bc   :  { %9035 = vmatpush3.msra.mxu1 %v13966_v15  ;;  %8993 = vmatprep.subr.mxu0 %v13876_v14 }
 0x3bd   :  { %9036 = vmatprep.subr.mxu1 %v13876_v14  ;;  %8994 = vmatpush3.msra.mxu0 %v13967_v35 }
 0x3be   :  { %9037 = vmatpush3.msra.mxu1 %v13968_v7  ;;  %8995 = vmatprep.subr.mxu0 %v13876_v14 }
 0x3bf   :  { %9038 = vmatprep.subr.mxu1 %v13876_v14  ;;  %8996 = vmatpush3.msra.mxu0 %v13969_v29 }
 0x3c0   :  { %9039 = vmatpush3.msra.mxu1 %v13970_v23  ;;  %8997 = vmatprep.subr.mxu0 %v13876_v14 }
 0x3c1   :  { %9040 = vmatprep.subr.mxu1 %v13876_v14  ;;  %8998 = vmatpush3.msra.mxu0 %v13971_v38 }
 0x3c2   :  { %9041 = vmatpush3.msra.mxu1 %v13972_v17  ;;  %8999 = vmatprep.subr.mxu0 %v13876_v14 }
 0x3c3   :  { %9042 = vmatprep.subr.mxu1 %v13876_v14  ;;  %9000 = vmatpush3.msra.mxu0 %v13973_v11 }
 0x3c4   :  { %9043 = vmatpush3.msra.mxu1 %v13974_v37  ;;  %9001 = vmatprep.subr.mxu0 %v13876_v14 }
 0x3c5   :  { %9044 = vmatprep.subr.mxu1 %v13876_v14  ;;  %9002 = vmatpush3.msra.mxu0 %v13975_v19 }
 0x3c6   :  { %9045 = vmatpush3.msra.mxu1 %v13976_v52  ;;  %9003 = vmatprep.subr.mxu0 %v13876_v14 }
 0x3c7   :  { %9046 = vmatprep.subr.mxu1 %v13876_v14  ;;  %9004 = vmatpush3.msra.mxu0 %v13977_v21 }
 0x3c8   :  { %9047 = vmatpush3.msra.mxu1 %v13978_v22  ;;  %9005 = vmatprep.subr.mxu0 %v13876_v14 }
 0x3c9   :  { %9048 = vmatprep.subr.mxu1 %v13876_v14  ;;  %9006 = vmatpush3.msra.mxu0 %v13979_v40 }
 0x3ca   :  { %9049 = vmatpush3.msra.mxu1 %v13980_v39  ;;  %9007 = vmatprep.subr.mxu0 %v13876_v14 }
 0x3cb   :  { %9050 = vmatprep.subr.mxu1 %v13876_v14  ;;  %9008 = vmatpush3.msra.mxu0 %v13981_v20 }
 0x3cc   :  { %9051 = vmatpush3.msra.mxu1 %v13982_v43  ;;  %9009 = vmatprep.subr.mxu0 %v13876_v14 }
 0x3cd   :  { %9052 = vmatprep.subr.mxu1 %v13876_v14  ;;  %9010 = vmatpush3.msra.mxu0 %v13983_v27 }
 0x3ce   :  { %9053 = vmatpush3.msra.mxu1 %v13984_v55  ;;  %9011 = vmatprep.subr.mxu0 %v13876_v14 }
 0x3cf   :  { %9054 = vmatprep.mubr.msk.f32.mxu1 %vm10601_vm0, %v13876_v14  ;;  %9092 = vmatprep.subr.mxu1 %v13876_v14 }
 0x3d0   :  { %9012 = vmatpush3.msra.mxu0 %v13985_v63  ;;  %9019 = vmatprep.mubr.msk.f32.mxu0 %vm10601_vm0, %v13876_v14 }
 0x3d1   :  { %9013 = vmatprep.subr.mxu0 %v13876_v14 }
 0x3d2   :  { %9014 = vmatpush3.msra.mxu0 %v13986_v58 }
 0x3d3   :  { %9015 = vmatprep.subr.mxu0 %v13876_v14 }
 0x3d4   :  { %9016 = vmatpush3.msra.mxu0 %v13987_v26 }
 0x3d5   :  { %9017 = vmatprep.subr.mxu0 %v13876_v14 }
 0x3d6   :  { %9018 = vmatpush3.msra.mxu0 %v13988_v32 }
 0x3d7   :  { %9057 = vmatprep.subr.mxu0 %v13876_v14 }
 0x42b   :  { %v2193_v53 = vpop.f32.mrf.mxu1 }
 0x42d   :  { %v8846_v48 = vpop.f32.mrf.mxu1 }
 0x433   :  { %v2042_v36 = vpop.f32.mrf.mxu0 }
 0x434   :  { %v2194_v13 = vadd.f32 %v2193_v53, %v2042_v36  ;;  %v13996_v36 = vld [vmem:[#allocation37_spill] sm:$0xff] }
 0x435   :  { %v8811_v31 = vpop.f32.mrf.mxu0 }
 0x44b   :  { %v2386_v28 = vpop.f32.mrf.mxu1 }
 0x44d   :  { %v8916_v5 = vpop.f32.mrf.mxu1 }
 0x44e   :  { %v13989_v5 = vld [vmem:[#allocation78_spill] sm:$0xff] }
 0x454   :  { %v2297_v33 = vpop.f32.mrf.mxu0 }
 0x455   :  { %v2298_v2 = vadd.f32 %v2297_v33, %v2194_v13  ;;  %v13990_v33 = vld [vmem:[#allocation15_spill] sm:$0xff] }
 0x456   :  { %v8881_v4 = vpop.f32.mrf.mxu0 }
 0x457   :  { %v2387_v62 = vadd.f32 %v2386_v28, %v2298_v2  ;;  %v13993_v28 = vld [vmem:[#allocation25_spill] sm:$0xff] }
 0x46d   :  { %v2592_v0 = vpop.f32.mrf.mxu1 }
 0x46f   :  { %v8986_v50 = vpop.f32.mrf.mxu1 }
 0x475   :  { %v2505_v56 = vpop.f32.mrf.mxu0 }
 0x476   :  { %v2506_v42 = vadd.f32 %v2505_v56, %v2387_v62  ;;  %v13998_v56 = vld [vmem:[#allocation45_spill] sm:$0xff]  ;;  %v13999_v62 = vld [vmem:[#allocation50_spill] sm:$0xff] }
 0x477   :  { %v8951_v47 = vpop.f32.mrf.mxu0 }
 0x478   :  { %v2593_v6 = vadd.f32 %v2592_v0, %v2506_v42 }
 0x47a   :  { %10470 = vrcp.f32 %v2593_v6 }
 0x487   :  { %v10471_v3 = vpop.eup %10470 }
 0x488   :  { %v2597_v41 = vmul.f32 %v10471_v3, %v2593_v6 }
 0x48a   :  { %v2598_v9 = vsub.f32 2.0, %v2597_v41  ;;  %v13997_v41 = vld [vmem:[#allocation40_spill] sm:$0xff] }
 0x48c   :  { %v2599_v48 = vmul.f32 %v10471_v3, %v2598_v9  ;;  %v13991_v3 = vld [vmem:[#allocation18_spill] sm:$0xff] }
 0x48e   :  { %v2600_v46 = vmul.f32 8.0, %v2599_v48  ;;  %v14000_v48 = vld [vmem:[#allocation52_spill] sm:$0xff] }
 0x490   :  { %v2601_v31 = vmul.f32 %v11750_v60, %v2600_v46  ;;  %v13995_v46 = vld [vmem:[#allocation32_spill] sm:$0xff] }
 0x492   :  { %v2602_v34 = vmul.f32 %v2601_v31, %v13989_v5  ;;  %v14001_v31 = vld [vmem:[#allocation57_spill] sm:$0xff] }
 0x494   :  { %v2603_v4 = vrot.slane %v2602_v34, 4 }
 0x496   :  { %v2604_v59 = vadd.f32 %v2603_v4, %v2602_v34  ;;  %v13994_v34 = vld [vmem:[#allocation30_spill] sm:$0xff]  ;;  %v14002_v4 = vld [vmem:[#allocation63_spill] sm:$0xff] }
 0x498   :  { %v2605_v53 = vrot.slane %v2604_v59, 2 }
 0x49a   :  { %v2606_v50 = vadd.f32 %v2605_v53, %v2604_v59  ;;  %v13992_v59 = vld [vmem:[#allocation21_spill] sm:$0xff] }
 0x49b   :  { %v14003_v53 = vld [vmem:[#allocation65_spill] sm:$0xff] }
 0x49c   :  { %v2607_v13 = vrot.slane %v2606_v50, 1 }
 0x49e   :  { %v11971_v2 = vadd.f32 %v2607_v13, %v2606_v50  ;;  %v14004_v50 = vld [vmem:[#allocation66_spill] sm:$0xff]  ;;  %v14005_v13 = vld [vmem:[#allocation67_spill] sm:$0xff] }
 0x4a0   :  { %v2610_v42 = vmul.f32 %v11971_v2, %v13989_v5  ;;  %v14011_v5 = vld [vmem:[#allocation36_spill] sm:$0xff] }
 0x4a2   :  { %v11975_v47 = vand.u32 4294901760, %v2610_v42 }
 0x4a4   :  { %v11978_v6 = vsub.f32 %v2610_v42, %v11975_v47  ;;  %9055 = vmatmul.mubr.f32.vlgmr.msra.gmra.mxu1 %v11975_v47  ;;  %v14006_v42 = vld [vmem:[#allocation17_spill] sm:$0xff] }
 0x4a5   :  { %9093 = vmatpush3.msra.mxu1 %v10851_v57  ;;  %9124 = vmatprep.mubr.msk.f32.mxu1 %vm10601_vm0, %v13876_v14 }
 0x4a6   :  { %9094 = vmatprep.subr.mxu1 %v13876_v14  ;;  %v2694_v60 = vand.u32 4294901760, %v11978_v6 }
 0x4a7   :  { %9095 = vmatpush3.msra.mxu1 %v13963_v8 }
 0x4a8   :  { %9096 = vmatprep.subr.mxu1 %v13876_v14  ;;  %v2695_v9 = vsub.f32 %v11978_v6, %v2694_v60 }
 0x4a9   :  { %9097 = vmatpush3.msra.mxu1 %v13965_v1 }
 0x4aa   :  { %9098 = vmatprep.subr.mxu1 %v13876_v14  ;;  %v2696_v0 = vand.u32 4294901760, %v2695_v9  ;;  %v14009_v9 = vld [vmem:[#allocation28_spill] sm:$0xff] }
 0x4ab   :  { %9099 = vmatpush3.msra.mxu1 %v13967_v35 }
 0x4ac   :  { %9100 = vmatprep.subr.mxu1 %v13876_v14  ;;  %9020 = vmatmul.mubr.f32.vlgmr.msra.gmra.mxu0 %v2696_v0  ;;  %v14010_v0 = vld [vmem:[#allocation34_spill] sm:$0xff] }
 0x4ad   :  { %9058 = vmatpush3.msra.mxu0 %v13990_v33  ;;  %9101 = vmatpush3.msra.mxu1 %v13969_v29 }
 0x4ae   :  { %9059 = vmatprep.subr.mxu0 %v13876_v14  ;;  %9102 = vmatprep.subr.mxu1 %v13876_v14 }
 0x4af   :  { %9060 = vmatpush3.msra.mxu0 %v13991_v3  ;;  %9103 = vmatpush3.msra.mxu1 %v13971_v38 }
 0x4b0   :  { %9061 = vmatprep.subr.mxu0 %v13876_v14  ;;  %9104 = vmatprep.subr.mxu1 %v13876_v14 }
 0x4b1   :  { %9062 = vmatpush3.msra.mxu0 %v13992_v59  ;;  %9105 = vmatpush3.msra.mxu1 %v13973_v11 }
 0x4b2   :  { %9063 = vmatprep.subr.mxu0 %v13876_v14  ;;  %9106 = vmatprep.subr.mxu1 %v13876_v14 }
 0x4b3   :  { %9064 = vmatpush3.msra.mxu0 %v13993_v28  ;;  %9107 = vmatpush3.msra.mxu1 %v13975_v19 }
 0x4b4   :  { %9065 = vmatprep.subr.mxu0 %v13876_v14  ;;  %9108 = vmatprep.subr.mxu1 %v13876_v14 }
 0x4b5   :  { %9066 = vmatpush3.msra.mxu0 %v13994_v34  ;;  %9109 = vmatpush3.msra.mxu1 %v13977_v21 }
 0x4b6   :  { %9067 = vmatprep.subr.mxu0 %v13876_v14  ;;  %9110 = vmatprep.subr.mxu1 %v13876_v14 }
 0x4b7   :  { %9068 = vmatpush3.msra.mxu0 %v13995_v46  ;;  %9111 = vmatpush3.msra.mxu1 %v13979_v40 }
 0x4b8   :  { %9069 = vmatprep.subr.mxu0 %v13876_v14  ;;  %9112 = vmatprep.subr.mxu1 %v13876_v14 }
 0x4b9   :  { %9070 = vmatpush3.msra.mxu0 %v13996_v36  ;;  %9113 = vmatpush3.msra.mxu1 %v13981_v20 }
 0x4ba   :  { %9071 = vmatprep.subr.mxu0 %v13876_v14  ;;  %9114 = vmatprep.subr.mxu1 %v13876_v14 }
 0x4bb   :  { %9072 = vmatpush3.msra.mxu0 %v13997_v41  ;;  %9115 = vmatpush3.msra.mxu1 %v13983_v27 }
 0x4bc   :  { %9073 = vmatprep.subr.mxu0 %v13876_v14  ;;  %9116 = vmatprep.subr.mxu1 %v13876_v14 }
 0x4bd   :  { %9074 = vmatpush3.msra.mxu0 %v13998_v56  ;;  %9117 = vmatpush3.msra.mxu1 %v13985_v63 }
 0x4be   :  { %9075 = vmatprep.subr.mxu0 %v13876_v14  ;;  %9118 = vmatprep.subr.mxu1 %v13876_v14 }
 0x4bf   :  { %9076 = vmatpush3.msra.mxu0 %v13999_v62  ;;  %9119 = vmatpush3.msra.mxu1 %v13986_v58 }
 0x4c0   :  { %9077 = vmatprep.subr.mxu0 %v13876_v14  ;;  %9120 = vmatprep.subr.mxu1 %v13876_v14 }
 0x4c1   :  { %9078 = vmatpush3.msra.mxu0 %v14000_v48  ;;  %9121 = vmatpush3.msra.mxu1 %v13987_v26 }
 0x4c2   :  { %9079 = vmatprep.subr.mxu0 %v13876_v14  ;;  %9122 = vmatprep.subr.mxu1 %v13876_v14 }
 0x4c3   :  { %9080 = vmatpush3.msra.mxu0 %v14001_v31  ;;  %9123 = vmatpush3.msra.mxu1 %v13988_v32 }
 0x4c4   :  { %9081 = vmatprep.subr.mxu0 %v13876_v14  ;;  %9125 = vmatmul.mubr.f32.vlgmr.msra.gmra.mxu1 %v2694_v60  ;;  %v14007_v60 = vld [vmem:[#allocation20_spill] sm:$0xff] }
 0x4c5   :  { %9162 = vmatprep.subr.mxu1 %v13876_v14  ;;  %9082 = vmatpush3.msra.mxu0 %v14002_v4 }
 0x4c6   :  { %9163 = vmatpush3.msra.mxu1 %v10851_v57  ;;  %9083 = vmatprep.subr.mxu0 %v13876_v14 }
 0x4c7   :  { %9164 = vmatprep.subr.mxu1 %v13876_v14  ;;  %9084 = vmatpush3.msra.mxu0 %v14003_v53 }
 0x4c8   :  { %9165 = vmatpush3.msra.mxu1 %v13963_v8  ;;  %9085 = vmatprep.subr.mxu0 %v13876_v14 }
 0x4c9   :  { %9166 = vmatprep.subr.mxu1 %v13876_v14  ;;  %9086 = vmatpush3.msra.mxu0 %v14004_v50 }
 0x4ca   :  { %9167 = vmatpush3.msra.mxu1 %v13965_v1  ;;  %9087 = vmatprep.subr.mxu0 %v13876_v14 }
 0x4cb   :  { %9168 = vmatprep.subr.mxu1 %v13876_v14  ;;  %9088 = vmatpush3.msra.mxu0 %v14005_v13 }
 0x4cc   :  { %9089 = vmatprep.mubr.msk.f32.mxu0 %vm10601_vm0, %v13876_v14  ;;  %9169 = vmatpush3.msra.mxu1 %v13967_v35 }
 0x4cd   :  { %9090 = vmatmul.mubr.f32.vlgmr.msra.gmra.mxu0 %v11978_v6  ;;  %9127 = vmatprep.subr.mxu0 %v13876_v14  ;;  %v14008_v6 = vld [vmem:[#allocation24_spill] sm:$0xff] }
 0x4ce   :  { %9170 = vmatprep.subr.mxu1 %v13876_v14  ;;  %9128 = vmatpush3.msra.mxu0 %v14006_v42 }
 0x4cf   :  { %9171 = vmatpush3.msra.mxu1 %v13969_v29  ;;  %9129 = vmatprep.subr.mxu0 %v13876_v14 }
 0x4d0   :  { %9172 = vmatprep.subr.mxu1 %v13876_v14  ;;  %9130 = vmatpush3.msra.mxu0 %v14007_v60 }
 0x4d1   :  { %9173 = vmatpush3.msra.mxu1 %v13971_v38  ;;  %9131 = vmatprep.subr.mxu0 %v13876_v14 }
 0x4d2   :  { %9174 = vmatprep.subr.mxu1 %v13876_v14  ;;  %9132 = vmatpush3.msra.mxu0 %v14008_v6 }
 0x4d3   :  { %9175 = vmatpush3.msra.mxu1 %v13973_v11  ;;  %9133 = vmatprep.subr.mxu0 %v13876_v14 }
 0x4d4   :  { %9176 = vmatprep.subr.mxu1 %v13876_v14  ;;  %9134 = vmatpush3.msra.mxu0 %v14009_v9 }
 0x4d5   :  { %9177 = vmatpush3.msra.mxu1 %v13975_v19  ;;  %9135 = vmatprep.subr.mxu0 %v13876_v14 }
 0x4d6   :  { %9178 = vmatprep.subr.mxu1 %v13876_v14  ;;  %9136 = vmatpush3.msra.mxu0 %v14010_v0 }
 0x4d7   :  { %9179 = vmatpush3.msra.mxu1 %v13977_v21  ;;  %9137 = vmatprep.subr.mxu0 %v13876_v14 }
 0x4d8   :  { %9180 = vmatprep.subr.mxu1 %v13876_v14  ;;  %9138 = vmatpush3.msra.mxu0 %v14011_v5 }
 0x4d9   :  { %9181 = vmatpush3.msra.mxu1 %v13979_v40  ;;  %9139 = vmatprep.subr.mxu0 %v13876_v14 }
 0x4da   :  { %9182 = vmatprep.subr.mxu1 %v13876_v14  ;;  %9140 = vmatpush3.msra.mxu0 %v14012_v18 }
 0x4db   :  { %9183 = vmatpush3.msra.mxu1 %v13981_v20  ;;  %9141 = vmatprep.subr.mxu0 %v13876_v14 }
 0x4dc   :  { %9184 = vmatprep.subr.mxu1 %v13876_v14  ;;  %9142 = vmatpush3.msra.mxu0 %v14013_v54 }
 0x4dd   :  { %9185 = vmatpush3.msra.mxu1 %v13983_v27  ;;  %9143 = vmatprep.subr.mxu0 %v13876_v14 }
 0x4de   :  { %9186 = vmatprep.subr.mxu1 %v13876_v14  ;;  %9144 = vmatpush3.msra.mxu0 %v14014_v44 }
 0x4df   :  { %9187 = vmatpush3.msra.mxu1 %v13985_v63  ;;  %9145 = vmatprep.subr.mxu0 %v13876_v14 }
 0x4e0   :  { %9188 = vmatprep.subr.mxu1 %v13876_v14  ;;  %9146 = vmatpush3.msra.mxu0 %v14015_v30 }
 0x4e1   :  { %9189 = vmatpush3.msra.mxu1 %v13986_v58  ;;  %9147 = vmatprep.subr.mxu0 %v13876_v14 }
 0x4e2   :  { %9190 = vmatprep.subr.mxu1 %v13876_v14  ;;  %9148 = vmatpush3.msra.mxu0 %v14016_v10  ;;  %v14020_v10 = vld [vmem:[#allocation71_spill] sm:$0xff] }
 0x4e3   :  { %9191 = vmatpush3.msra.mxu1 %v13987_v26  ;;  %9149 = vmatprep.subr.mxu0 %v13876_v14 }
 0x4e4   :  { %9192 = vmatprep.subr.mxu1 %v13876_v14  ;;  %9150 = vmatpush3.msra.mxu0 %v14017_v16  ;;  %v14019_v16 = vld [vmem:[#allocation70_spill] sm:$0xff] }
 0x4e5   :  { %9193 = vmatpush3.msra.mxu1 %v13988_v32  ;;  %9194 = vmatprep.mubr.msk.f32.mxu1 %vm10601_vm0, %v13876_v14 }
 0x4e6   :  { %9151 = vmatprep.subr.mxu0 %v13876_v14  ;;  %9195 = vmatmul.mubr.f32.vlgmr.msra.gmra.mxu1 %v11975_v47 }
 0x4e7   :  { %9232 = vmatprep.subr.mxu1 %v13876_v14  ;;  %9152 = vmatpush3.msra.mxu0 %v14018_v24 }
 0x4e8   :  { %9233 = vmatpush3.msra.mxu1 %v13879_v51  ;;  %9153 = vmatprep.subr.mxu0 %v13876_v14  ;;  %v14021_v51 = vld [vmem:[#allocation72_spill] sm:$0xff] }
 0x4e9   :  { %9234 = vmatprep.subr.mxu1 %v13876_v14  ;;  %9154 = vmatpush3.msra.mxu0 %v14019_v16 }
 0x4ea   :  { %9235 = vmatpush3.msra.mxu1 %v13881_v49  ;;  %9155 = vmatprep.subr.mxu0 %v13876_v14 }
 0x4eb   :  { %9236 = vmatprep.subr.mxu1 %v13876_v14  ;;  %9156 = vmatpush3.msra.mxu0 %v14020_v10 }
 0x4ec   :  { %9237 = vmatpush3.msra.mxu1 %v13883_v25  ;;  %9157 = vmatprep.subr.mxu0 %v13876_v14 }
 0x4ed   :  { %9238 = vmatprep.subr.mxu1 %v13876_v14  ;;  %9158 = vmatpush3.msra.mxu0 %v14021_v51 }
 0x4ee   :  { %9159 = vmatprep.mubr.msk.f32.mxu0 %vm10601_vm0, %v13876_v14  ;;  %9239 = vmatpush3.msra.mxu1 %v13885_v45 }
 0x4ef   :  { %9160 = vmatmul.mubr.f32.vlgmr.msra.gmra.mxu0 %v11975_v47  ;;  %9197 = vmatprep.subr.mxu0 %v13876_v14  ;;  %v2609_v47 = vmul.f32 %v11971_v2, %v11971_v2 }
 0x4f0   :  { %9240 = vmatprep.subr.mxu1 %v13876_v14  ;;  %9198 = vmatpush3.msra.mxu0 %v10851_v57 }
 0x4f1   :  { %9241 = vmatpush3.msra.mxu1 %v13886_v61  ;;  %9199 = vmatprep.subr.mxu0 %v13876_v14 }
 0x4f2   :  { %9242 = vmatprep.subr.mxu1 %v13876_v14  ;;  %9200 = vmatpush3.msra.mxu0 %v13963_v8 }
 0x4f3   :  { %9243 = vmatpush3.msra.mxu1 %v13964_v12  ;;  %9201 = vmatprep.subr.mxu0 %v13876_v14 }
 0x4f4   :  { %9244 = vmatprep.subr.mxu1 %v13876_v14  ;;  %9202 = vmatpush3.msra.mxu0 %v13965_v1 }
 0x4f5   :  { %9245 = vmatpush3.msra.mxu1 %v13966_v15  ;;  %9203 = vmatprep.subr.mxu0 %v13876_v14 }
 0x4f6   :  { %9246 = vmatprep.subr.mxu1 %v13876_v14  ;;  %9204 = vmatpush3.msra.mxu0 %v13967_v35 }
 0x4f7   :  { %9247 = vmatpush3.msra.mxu1 %v13968_v7  ;;  %9205 = vmatprep.subr.mxu0 %v13876_v14 }
 0x4f8   :  { %9248 = vmatprep.subr.mxu1 %v13876_v14  ;;  %9206 = vmatpush3.msra.mxu0 %v13969_v29 }
 0x4f9   :  { %9249 = vmatpush3.msra.mxu1 %v13970_v23  ;;  %9207 = vmatprep.subr.mxu0 %v13876_v14 }
 0x4fa   :  { %9250 = vmatprep.subr.mxu1 %v13876_v14  ;;  %9208 = vmatpush3.msra.mxu0 %v13971_v38 }
 0x4fb   :  { %9251 = vmatpush3.msra.mxu1 %v13972_v17  ;;  %9209 = vmatprep.subr.mxu0 %v13876_v14  ;;  %v12163_v17 = vand.u32 4294901760, %v2609_v47 }
 0x4fc   :  { %9252 = vmatprep.subr.mxu1 %v13876_v14  ;;  %9210 = vmatpush3.msra.mxu0 %v13973_v11 }
 0x4fd   :  { %9253 = vmatpush3.msra.mxu1 %v13974_v37  ;;  %9211 = vmatprep.subr.mxu0 %v13876_v14  ;;  %v12174_v2 = vsub.f32 %v2609_v47, %v12163_v17 }
 0x4fe   :  { %9254 = vmatprep.subr.mxu1 %v13876_v14  ;;  %9212 = vmatpush3.msra.mxu0 %v13975_v19 }
 0x4ff   :  { %9255 = vmatpush3.msra.mxu1 %v13976_v52  ;;  %9213 = vmatprep.subr.mxu0 %v13876_v14  ;;  %v3335_v47 = vand.u32 4294901760, %v12174_v2 }
 0x500   :  { %9256 = vmatprep.subr.mxu1 %v13876_v14  ;;  %9214 = vmatpush3.msra.mxu0 %v13977_v21 }
 0x501   :  { %9257 = vmatpush3.msra.mxu1 %v13978_v22  ;;  %9215 = vmatprep.subr.mxu0 %v13876_v14 }
 0x502   :  { %9258 = vmatprep.subr.mxu1 %v13876_v14  ;;  %9216 = vmatpush3.msra.mxu0 %v13979_v40 }
 0x503   :  { %9259 = vmatpush3.msra.mxu1 %v13980_v39  ;;  %9217 = vmatprep.subr.mxu0 %v13876_v14 }
 0x504   :  { %9260 = vmatprep.subr.mxu1 %v13876_v14  ;;  %9218 = vmatpush3.msra.mxu0 %v13981_v20 }
 0x505   :  { %9261 = vmatpush3.msra.mxu1 %v13982_v43  ;;  %9219 = vmatprep.subr.mxu0 %v13876_v14 }
 0x506   :  { %9262 = vmatprep.subr.mxu1 %v13876_v14  ;;  %9220 = vmatpush3.msra.mxu0 %v13983_v27 }
 0x507   :  { %9263 = vmatpush3.msra.mxu1 %v13984_v55  ;;  %9264 = vmatprep.mubr.msk.f32.mxu1 %vm10601_vm0, %v13876_v14  ;;  %v3336_v55 = vsub.f32 %v12174_v2, %v3335_v47 }
 0x508   :  { %9221 = vmatprep.subr.mxu0 %v13876_v14  ;;  %9265 = vmatmul.mubr.f32.vlgmr.msra.gmra.mxu1 %v12163_v17 }
 0x509   :  { %9302 = vmatprep.subr.mxu1 %v13876_v14  ;;  %9222 = vmatpush3.msra.mxu0 %v13985_v63  ;;  %v3337_v43 = vand.u32 4294901760, %v3336_v55  ;;  %v14023_v55 = vld [vmem:[#allocation62_spill] sm:$0xff] }
 0x50a   :  { %9303 = vmatpush3.msra.mxu1 %v10851_v57  ;;  %9223 = vmatprep.subr.mxu0 %v13876_v14 }
 0x50b   :  { %9304 = vmatprep.subr.mxu1 %v13876_v14  ;;  %9224 = vmatpush3.msra.mxu0 %v13986_v58 }
 0x50c   :  { %9305 = vmatpush3.msra.mxu1 %v13963_v8  ;;  %9225 = vmatprep.subr.mxu0 %v13876_v14 }
 0x50d   :  { %9306 = vmatprep.subr.mxu1 %v13876_v14  ;;  %9226 = vmatpush3.msra.mxu0 %v13987_v26 }
 0x50e   :  { %9307 = vmatpush3.msra.mxu1 %v13965_v1  ;;  %9227 = vmatprep.subr.mxu0 %v13876_v14 }
 0x50f   :  { %9308 = vmatprep.subr.mxu1 %v13876_v14  ;;  %9228 = vmatpush3.msra.mxu0 %v13988_v32 }
 0x510   :  { %9229 = vmatprep.mubr.msk.f32.mxu0 %vm10601_vm0, %v13876_v14  ;;  %9309 = vmatpush3.msra.mxu1 %v13967_v35 }
 0x511   :  { %9230 = vmatmul.mubr.f32.vlgmr.msra.gmra.mxu0 %v3337_v43  ;;  %9267 = vmatprep.subr.mxu0 %v13876_v14  ;;  %v14022_v43 = vld [vmem:[#allocation56_spill] sm:$0xff] }
 0x512   :  { %9310 = vmatprep.subr.mxu1 %v13876_v14  ;;  %9268 = vmatpush3.msra.mxu0 %v13990_v33 }
 0x513   :  { %9311 = vmatpush3.msra.mxu1 %v13969_v29  ;;  %9269 = vmatprep.subr.mxu0 %v13876_v14 }
 0x514   :  { %9312 = vmatprep.subr.mxu1 %v13876_v14  ;;  %9270 = vmatpush3.msra.mxu0 %v13991_v3 }
 0x515   :  { %9313 = vmatpush3.msra.mxu1 %v13971_v38  ;;  %9271 = vmatprep.subr.mxu0 %v13876_v14 }
 0x516   :  { %9314 = vmatprep.subr.mxu1 %v13876_v14  ;;  %9272 = vmatpush3.msra.mxu0 %v13992_v59 }
 0x517   :  { %9315 = vmatpush3.msra.mxu1 %v13973_v11  ;;  %9273 = vmatprep.subr.mxu0 %v13876_v14 }
 0x518   :  { %9316 = vmatprep.subr.mxu1 %v13876_v14  ;;  %9274 = vmatpush3.msra.mxu0 %v13993_v28 }
 0x519   :  { %9317 = vmatpush3.msra.mxu1 %v13975_v19  ;;  %9275 = vmatprep.subr.mxu0 %v13876_v14 }
 0x51a   :  { %9318 = vmatprep.subr.mxu1 %v13876_v14  ;;  %9276 = vmatpush3.msra.mxu0 %v13994_v34 }
 0x51b   :  { %9319 = vmatpush3.msra.mxu1 %v13977_v21  ;;  %9277 = vmatprep.subr.mxu0 %v13876_v14 }
 0x51c   :  { %9320 = vmatprep.subr.mxu1 %v13876_v14  ;;  %9278 = vmatpush3.msra.mxu0 %v13995_v46 }
 0x51d   :  { %9321 = vmatpush3.msra.mxu1 %v13979_v40  ;;  %9279 = vmatprep.subr.mxu0 %v13876_v14 }
 0x51e   :  { %9322 = vmatprep.subr.mxu1 %v13876_v14  ;;  %9280 = vmatpush3.msra.mxu0 %v13996_v36 }
 0x51f   :  { %9323 = vmatpush3.msra.mxu1 %v13981_v20  ;;  %9281 = vmatprep.subr.mxu0 %v13876_v14 }
 0x520   :  { %9324 = vmatprep.subr.mxu1 %v13876_v14  ;;  %9282 = vmatpush3.msra.mxu0 %v13997_v41 }
 0x521   :  { %9325 = vmatpush3.msra.mxu1 %v13983_v27  ;;  %9283 = vmatprep.subr.mxu0 %v13876_v14 }
 0x522   :  { %9326 = vmatprep.subr.mxu1 %v13876_v14  ;;  %9284 = vmatpush3.msra.mxu0 %v13998_v56 }
 0x523   :  { %9327 = vmatpush3.msra.mxu1 %v13985_v63  ;;  %9285 = vmatprep.subr.mxu0 %v13876_v14 }
 0x524   :  { %9328 = vmatprep.subr.mxu1 %v13876_v14  ;;  %9286 = vmatpush3.msra.mxu0 %v13999_v62 }
 0x525   :  { %9329 = vmatpush3.msra.mxu1 %v13986_v58  ;;  %9287 = vmatprep.subr.mxu0 %v13876_v14 }
 0x526   :  { %9330 = vmatprep.subr.mxu1 %v13876_v14  ;;  %9288 = vmatpush3.msra.mxu0 %v14000_v48 }
 0x527   :  { %9331 = vmatpush3.msra.mxu1 %v13987_v26  ;;  %9289 = vmatprep.subr.mxu0 %v13876_v14 }
 0x528   :  { %9332 = vmatprep.subr.mxu1 %v13876_v14  ;;  %9290 = vmatpush3.msra.mxu0 %v14001_v31 }
 0x529   :  { %9333 = vmatpush3.msra.mxu1 %v13988_v32  ;;  %9334 = vmatprep.mubr.msk.f32.mxu1 %vm10601_vm0, %v13876_v14 }
 0x52a   :  { %9291 = vmatprep.subr.mxu0 %v13876_v14  ;;  %9335 = vmatmul.mubr.f32.vlgmr.msra.gmra.mxu1 %v3335_v47  ;;  %v14025_v47 = vld [vmem:[#allocation93_spill] sm:$0xff] }
 0x52b   :  { %9372 = vmatprep.subr.mxu1 %v13876_v14  ;;  %9292 = vmatpush3.msra.mxu0 %v14002_v4 }
 0x52c   :  { %9373 = vmatpush3.msra.mxu1 %v10851_v57  ;;  %9293 = vmatprep.subr.mxu0 %v13876_v14 }
 0x52d   :  { %9374 = vmatprep.subr.mxu1 %v13876_v14  ;;  %9294 = vmatpush3.msra.mxu0 %v14003_v53 }
 0x52e   :  { %9375 = vmatpush3.msra.mxu1 %v13963_v8  ;;  %9295 = vmatprep.subr.mxu0 %v13876_v14 }
 0x52f   :  { %9376 = vmatprep.subr.mxu1 %v13876_v14  ;;  %9296 = vmatpush3.msra.mxu0 %v14004_v50 }
 0x530   :  { %9377 = vmatpush3.msra.mxu1 %v13965_v1  ;;  %9297 = vmatprep.subr.mxu0 %v13876_v14 }
 0x531   :  { %9378 = vmatprep.subr.mxu1 %v13876_v14  ;;  %9298 = vmatpush3.msra.mxu0 %v14005_v13 }
 0x532   :  { %9299 = vmatprep.mubr.msk.f32.mxu0 %vm10601_vm0, %v13876_v14  ;;  %9379 = vmatpush3.msra.mxu1 %v13967_v35 }
 0x533   :  { %9300 = vmatmul.mubr.f32.vlgmr.msra.gmra.mxu0 %v12174_v2  ;;  %9337 = vmatprep.subr.mxu0 %v13876_v14  ;;  %v14024_v2 = vld [vmem:[#allocation92_spill] sm:$0xff] }
 0x534   :  { %9380 = vmatprep.subr.mxu1 %v13876_v14  ;;  %9338 = vmatpush3.msra.mxu0 %v14006_v42  ;;  %v14052_v42 = vld [vmem:[#allocation119_spill] sm:$0xff] }
 0x535   :  { %9381 = vmatpush3.msra.mxu1 %v13969_v29  ;;  %9339 = vmatprep.subr.mxu0 %v13876_v14 }
 0x536   :  { %9382 = vmatprep.subr.mxu1 %v13876_v14  ;;  %9340 = vmatpush3.msra.mxu0 %v14007_v60  ;;  %v14051_v60 = vld [vmem:[#allocation139_spill] sm:$0xff] }
 0x537   :  { %9383 = vmatpush3.msra.mxu1 %v13971_v38  ;;  %9341 = vmatprep.subr.mxu0 %v13876_v14 }
 0x538   :  { %9384 = vmatprep.subr.mxu1 %v13876_v14  ;;  %9342 = vmatpush3.msra.mxu0 %v14008_v6 }
 0x539   :  { %9385 = vmatpush3.msra.mxu1 %v13973_v11  ;;  %9343 = vmatprep.subr.mxu0 %v13876_v14 }
 0x53a   :  { %9386 = vmatprep.subr.mxu1 %v13876_v14  ;;  %9344 = vmatpush3.msra.mxu0 %v14009_v9 }
 0x53b   :  { %9387 = vmatpush3.msra.mxu1 %v13975_v19  ;;  %9345 = vmatprep.subr.mxu0 %v13876_v14 }
 0x53c   :  { %9388 = vmatprep.subr.mxu1 %v13876_v14  ;;  %9346 = vmatpush3.msra.mxu0 %v14010_v0  ;;  %v14047_v0 = vld [vmem:[#allocation137_spill] sm:$0xff] }
 0x53d   :  { %9389 = vmatpush3.msra.mxu1 %v13977_v21  ;;  %9347 = vmatprep.subr.mxu0 %v13876_v14 }
 0x53e   :  { %9390 = vmatprep.subr.mxu1 %v13876_v14  ;;  %9348 = vmatpush3.msra.mxu0 %v14011_v5  ;;  %v14045_v5 = vld [vmem:[#allocation136_spill] sm:$0xff] }
 0x53f   :  { %9391 = vmatpush3.msra.mxu1 %v13979_v40  ;;  %9349 = vmatprep.subr.mxu0 %v13876_v14 }
 0x540   :  { %9392 = vmatprep.subr.mxu1 %v13876_v14  ;;  %9350 = vmatpush3.msra.mxu0 %v14012_v18  ;;  %v14044_v18 = vld [vmem:[#allocation105_spill] sm:$0xff] }
 0x541   :  { %9393 = vmatpush3.msra.mxu1 %v13981_v20  ;;  %9351 = vmatprep.subr.mxu0 %v13876_v14 }
 0x542   :  { %9394 = vmatprep.subr.mxu1 %v13876_v14  ;;  %9352 = vmatpush3.msra.mxu0 %v14013_v54  ;;  %v14043_v54 = vld [vmem:[#allocation132_spill] sm:$0xff] }
 0x543   :  { %9395 = vmatpush3.msra.mxu1 %v13983_v27  ;;  %9353 = vmatprep.subr.mxu0 %v13876_v14 }
 0x544   :  { %9396 = vmatprep.subr.mxu1 %v13876_v14  ;;  %9354 = vmatpush3.msra.mxu0 %v14014_v44 }
 0x545   :  { %9397 = vmatpush3.msra.mxu1 %v13985_v63  ;;  %9355 = vmatprep.subr.mxu0 %v13876_v14 }
 0x546   :  { %9398 = vmatprep.subr.mxu1 %v13876_v14  ;;  %9356 = vmatpush3.msra.mxu0 %v14015_v30  ;;  %v14041_v30 = vld [vmem:[#allocation129_spill] sm:$0xff] }
 0x547   :  { %9399 = vmatpush3.msra.mxu1 %v13986_v58  ;;  %9357 = vmatprep.subr.mxu0 %v13876_v14 }
 0x548   :  { %9400 = vmatprep.subr.mxu1 %v13876_v14  ;;  %9358 = vmatpush3.msra.mxu0 %v14022_v43  ;;  %v14039_v43 = vld [vmem:[#allocation121_spill] sm:$0xff] }
 0x549   :  { %9401 = vmatpush3.msra.mxu1 %v13987_v26  ;;  %9359 = vmatprep.subr.mxu0 %v13876_v14 }
 0x54a   :  { %9402 = vmatprep.subr.mxu1 %v13876_v14  ;;  %9360 = vmatpush3.msra.mxu0 %v14023_v55  ;;  %v14037_v55 = vld [vmem:[#allocation117_spill] sm:$0xff] }
 0x54b   :  { %9403 = vmatpush3.msra.mxu1 %v13988_v32  ;;  %9404 = vmatprep.mubr.msk.f32.mxu1 %vm10601_vm0, %v13876_v14 }
 0x54c   :  { %9361 = vmatprep.subr.mxu0 %v13876_v14  ;;  %9405 = vmatmul.mubr.f32.vlgmr.msra.gmra.mxu1 %v12163_v17 }
 0x54d   :  { %9362 = vmatpush3.msra.mxu0 %v14018_v24  ;;  %9369 = vmatprep.mubr.msk.f32.mxu0 %vm10601_vm0, %v13876_v14  ;;  %v14026_v24 = vld [vmem:[#allocation95_spill] sm:$0xff] }
 0x54e   :  { %9363 = vmatprep.subr.mxu0 %v13876_v14  ;;  %9442 = vmatprep.subr.mxu1 %v13876_v14 }
 0x54f   :  { %9364 = vmatpush3.msra.mxu0 %v14019_v16  ;;  %9443 = vmatpush3.msra.mxu1 %v14024_v2  ;;  %v14027_v2 = vld [vmem:[#allocation96_spill] sm:$0xff]  ;;  %v14035_v16 = vld [vmem:[#allocation113_spill] sm:$0xff] }
 0x550   :  { %9365 = vmatprep.subr.mxu0 %v13876_v14  ;;  %9444 = vmatprep.subr.mxu1 %v13876_v14 }
 0x551   :  { %9366 = vmatpush3.msra.mxu0 %v14020_v10  ;;  %9445 = vmatpush3.msra.mxu1 %v14025_v47  ;;  %v14028_v10 = vld [vmem:[#allocation27_spill] sm:$0xff]  ;;  %v14029_v47 = vld [vmem:[#allocation97_spill] sm:$0xff] }
 0x552   :  { %9367 = vmatprep.subr.mxu0 %v13876_v14  ;;  %9446 = vmatprep.subr.mxu1 %v13876_v14 }
 0x553   :  { %9368 = vmatpush3.msra.mxu0 %v14021_v51  ;;  %9447 = vmatpush3.msra.mxu1 %v14026_v24  ;;  %v14030_v51 = vld [vmem:[#allocation31_spill] sm:$0xff]  ;;  %v14031_v24 = vld [vmem:[#allocation98_spill] sm:$0xff] }
 0x554   :  { %9370 = vmatmul.mubr.f32.vlgmr.msra.gmra.mxu0 %v12163_v17  ;;  %9448 = vmatprep.subr.mxu1 %v13876_v14  ;;  %v14032_v17 = vld [vmem:[#allocation35_spill] sm:$0xff] }
 0x555   :  { %9449 = vmatpush3.msra.mxu1 %v14027_v2  ;;  %9407 = vmatprep.subr.mxu0 %v13876_v14  ;;  %v14033_v2 = vld [vmem:[#allocation109_spill] sm:$0xff] }
 0x556   :  { %9450 = vmatprep.subr.mxu1 %v13876_v14  ;;  %9408 = vmatpush3.msra.mxu0 %v14028_v10 }
 0x557   :  { %9451 = vmatpush3.msra.mxu1 %v14029_v47  ;;  %9409 = vmatprep.subr.mxu0 %v13876_v14  ;;  %v14034_v47 = vld [vmem:[#allocation42_spill] sm:$0xff] }
 0x558   :  { %9452 = vmatprep.subr.mxu1 %v13876_v14  ;;  %9410 = vmatpush3.msra.mxu0 %v14030_v51 }
 0x559   :  { %9453 = vmatpush3.msra.mxu1 %v14031_v24  ;;  %9411 = vmatprep.subr.mxu0 %v13876_v14  ;;  %v14036_v24 = vld [vmem:[#allocation79_spill] sm:$0xff] }
 0x55a   :  { %9454 = vmatprep.subr.mxu1 %v13876_v14  ;;  %9412 = vmatpush3.msra.mxu0 %v14032_v17 }
 0x55b   :  { %9455 = vmatpush3.msra.mxu1 %v14033_v2  ;;  %9413 = vmatprep.subr.mxu0 %v13876_v14  ;;  %v14038_v2 = vld [vmem:[#allocation80_spill] sm:$0xff] }
 0x55c   :  { %9456 = vmatprep.subr.mxu1 %v13876_v14  ;;  %9414 = vmatpush3.msra.mxu0 %v14034_v47 }
 0x55d   :  { %9457 = vmatpush3.msra.mxu1 %v14035_v16  ;;  %9415 = vmatprep.subr.mxu0 %v13876_v14  ;;  %v14040_v16 = vld [vmem:[#allocation100_spill] sm:$0xff] }
 0x55e   :  { %9458 = vmatprep.subr.mxu1 %v13876_v14  ;;  %9416 = vmatpush3.msra.mxu0 %v14036_v24 }
 0x55f   :  { %9459 = vmatpush3.msra.mxu1 %v14037_v55  ;;  %9417 = vmatprep.subr.mxu0 %v13876_v14  ;;  %v14042_v55 = vld [vmem:[#allocation102_spill] sm:$0xff] }
 0x560   :  { %9460 = vmatprep.subr.mxu1 %v13876_v14  ;;  %9418 = vmatpush3.msra.mxu0 %v14038_v2 }
 0x561   :  { %9461 = vmatpush3.msra.mxu1 %v14039_v43  ;;  %9419 = vmatprep.subr.mxu0 %v13876_v14 }
 0x562   :  { %9462 = vmatprep.subr.mxu1 %v13876_v14  ;;  %9420 = vmatpush3.msra.mxu0 %v14040_v16 }
 0x563   :  { %9463 = vmatpush3.msra.mxu1 %v14041_v30  ;;  %9421 = vmatprep.subr.mxu0 %v13876_v14  ;;  %v14046_v30 = vld [vmem:[#allocation108_spill] sm:$0xff] }
 0x564   :  { %v2849_v44 = vpop.f32.mrf.mxu1  ;;  %9464 = vmatprep.subr.mxu1 %v13876_v14  ;;  %9422 = vmatpush3.msra.mxu0 %v14042_v55 }
 0x565   :  { %9465 = vmatpush3.msra.mxu1 %v14043_v54  ;;  %9423 = vmatprep.subr.mxu0 %v13876_v14  ;;  %v14048_v54 = vld [vmem:[#allocation112_spill] sm:$0xff] }
 0x566   :  { %v9056_v43 = vpop.f32.mrf.mxu1  ;;  %9466 = vmatprep.subr.mxu1 %v13876_v14  ;;  %9424 = vmatpush3.msra.mxu0 %v14044_v18 }
 0x567   :  { %9467 = vmatpush3.msra.mxu1 %v14045_v5  ;;  %9425 = vmatprep.subr.mxu0 %v13876_v14  ;;  %v14049_v43 = vld [vmem:[#allocation138_spill] sm:$0xff]  ;;  %v14050_v5 = vld [vmem:[#allocation115_spill] sm:$0xff] }
 0x568   :  { %9468 = vmatprep.subr.mxu1 %v13876_v14  ;;  %9426 = vmatpush3.msra.mxu0 %v14046_v30 }
 0x569   :  { %9469 = vmatpush3.msra.mxu1 %v14047_v0  ;;  %9427 = vmatprep.subr.mxu0 %v13876_v14 }
 0x56a   :  { %9470 = vmatprep.subr.mxu1 %v13876_v14  ;;  %9428 = vmatpush3.msra.mxu0 %v14048_v54 }
 0x56b   :  { %9471 = vmatpush3.msra.mxu1 %v14049_v43  ;;  %9429 = vmatprep.subr.mxu0 %v13876_v14  ;;  %v14053_v43 = vld [vmem:[#allocation124_spill] sm:$0xff] }
 0x56c   :  { %v2698_v9 = vpop.f32.mrf.mxu0  ;;  %9472 = vmatprep.subr.mxu1 %v13876_v14  ;;  %9430 = vmatpush3.msra.mxu0 %v14050_v5 }
 0x56d   :  { %v2850_v6 = vadd.f32 %v2849_v44, %v2698_v9  ;;  %9473 = vmatpush3.msra.mxu1 %v14051_v60  ;;  %9431 = vmatprep.subr.mxu0 %v13876_v14  ;;  %v14054_v44 = vld [vmem:[#allocation125_spill] sm:$0xff]  ;;  %v14055_v9 = vld [vmem:[#allocation126_spill] sm:$0xff] }
 0x56e   :  { %v9021_v0 = vpop.f32.mrf.mxu0  ;;  %9474 = vmatprep.mubr.msk.f32.mxu1 %vm10601_vm0, %v13876_v14  ;;  %9512 = vmatprep.subr.mxu1 %v13876_v14 }
 0x56f   :  { %9432 = vmatpush3.msra.mxu0 %v14052_v42  ;;  %9439 = vmatprep.mubr.msk.f32.mxu0 %vm10601_vm0, %v13876_v14 }
 0x570   :  { %9433 = vmatprep.subr.mxu0 %v13876_v14 }
 0x571   :  { %9434 = vmatpush3.msra.mxu0 %v14053_v43 }
 0x572   :  { %9435 = vmatprep.subr.mxu0 %v13876_v14 }
 0x573   :  { %9436 = vmatpush3.msra.mxu0 %v14054_v44 }
 0x574   :  { %9437 = vmatprep.subr.mxu0 %v13876_v14 }
 0x575   :  { %9438 = vmatpush3.msra.mxu0 %v14055_v9 }
 0x576   :  { %9477 = vmatprep.subr.mxu0 %v13876_v14 }
 0x584   :  { %v3042_v0 = vpop.f32.mrf.mxu1 }
 0x586   :  { %v9126_v60 = vpop.f32.mrf.mxu1 }
 0x58d   :  { %v2953_v13 = vpop.f32.mrf.mxu0 }
 0x58e   :  { %v2954_v50 = vadd.f32 %v2953_v13, %v2850_v6 }
 0x58f   :  { %v9091_v53 = vpop.f32.mrf.mxu0 }
 0x590   :  { %v3043_v4 = vadd.f32 %v3042_v0, %v2954_v50 }
 0x5a6   :  { %v3248_v31 = vpop.f32.mrf.mxu1 }
 0x5a8   :  { %v9196_v48 = vpop.f32.mrf.mxu1 }
 0x5af   :  { %v3161_v62 = vpop.f32.mrf.mxu0 }
 0x5b0   :  { %v3162_v56 = vadd.f32 %v3161_v62, %v3043_v4 }
 0x5b1   :  { %v9161_v41 = vpop.f32.mrf.mxu0 }
 0x5b2   :  { %v3249_v36 = vadd.f32 %v3248_v31, %v3162_v56  ;;  %v14056_v56 = vld [vmem:[#allocation99_spill] sm:$0xff] }
 0x5c8   :  { %v3490_v46 = vpop.f32.mrf.mxu1 }
 0x5ca   :  { %v9266_v34 = vpop.f32.mrf.mxu1 }
 0x5d1   :  { %v3339_v28 = vpop.f32.mrf.mxu0 }
 0x5d2   :  { %v3340_v58 = vadd.f32 1e-08, %v3339_v28 }
 0x5d3   :  { %v9231_v59 = vpop.f32.mrf.mxu0 }
 0x5d4   :  { %v3491_v63 = vadd.f32 %v3490_v46, %v3340_v58  ;;  %v14057_v46 = vld [vmem:[#allocation81_spill] sm:$0xff] }
 0x5ea   :  { %v3683_v3 = vpop.f32.mrf.mxu1 }
 0x5ec   :  { %v9336_v33 = vpop.f32.mrf.mxu1 }
 0x5f3   :  { %v3594_v32 = vpop.f32.mrf.mxu0 }
 0x5f4   :  { %v3595_v53 = vadd.f32 %v3594_v32, %v3491_v63 }
 0x5f5   :  { %v9301_v26 = vpop.f32.mrf.mxu0 }
 0x5f6   :  { %v3684_v50 = vadd.f32 %v3683_v3, %v3595_v53  ;;  %v14061_v53 = vld [vmem:[#allocation85_spill] sm:$0xff] }
 0x60c   :  { %v3889_v60 = vpop.f32.mrf.mxu1 }
 0x60e   :  { %v9406_v13 = vpop.f32.mrf.mxu1 }
 0x60f   :  { %v14060_v13 = vld [vmem:[#allocation84_spill] sm:$0xff] }
 0x614   :  { %v3802_v6 = vpop.f32.mrf.mxu0 }
 0x615   :  { %v3803_v48 = vadd.f32 %v3802_v6, %v3684_v50  ;;  %v14062_v50 = vld [vmem:[#allocation86_spill] sm:$0xff]  ;;  %v14063_v6 = vld [vmem:[#allocation101_spill] sm:$0xff] }
 0x616   :  { %v9371_v0 = vpop.f32.mrf.mxu0 }
 0x617   :  { %v3890_v62 = vadd.f32 %v3889_v60, %v3803_v48  ;;  %v14059_v60 = vld [vmem:[#allocation83_spill] sm:$0xff]  ;;  %v14064_v48 = vld [vmem:[#allocation104_spill] sm:$0xff] }
 0x618   :  { %v14065_v0 = vld [vmem:[#allocation107_spill] sm:$0xff] }
 0x619   :  { %10472 = vrsqrt.f32 %v3890_v62  ;;  %v14066_v62 = vld [vmem:[#allocation111_spill] sm:$0xff] }
 0x626   :  { %v10473_v41 = vpop.eup %10472 }
 0x627   :  { %v3897_v34 = vrot.slane %v10473_v41, %v14056_v56  ;;  %v14067_v41 = vld [vmem:[#allocation116_spill] sm:$0xff] }
 0x629   :  { %v3898_v31 = vmul.f32 %v3897_v34, %v3249_v36  ;;  %v14058_v36 = vld [vmem:[#allocation82_spill] sm:$0xff] }
 0x62a   :  { %v14068_v34 = vld [vmem:[#allocation118_spill] sm:$0xff] }
 0x62b   :  { %3899 = vmax.xlane.f32.xlu0 %v3898_v31 }
 0x6b4   :  { %v3900_v59 = vpop.xlane.xlu0 %3899 }
 0x6b5   :  { %v3901_v33 = vsub.f32 %v3898_v31, %v3900_v59  ;;  %v14069_v31 = vld [vmem:[#allocation123_spill] sm:$0xff]  ;;  %v14070_v59 = vld [vmem:[#allocation128_spill] sm:$0xff] }
 0x6b7   :  { %v3902_v4 = vmul.f32 1.442695, %v3901_v33  ;;  %v14071_v33 = vld [vmem:[#allocation130_spill] sm:$0xff] }
 0x6b9   :  { %10474 = vpow2.f32 %v3902_v4  ;;  %v14072_v4 = vld [vmem:[#allocation131_spill] sm:$0xff] }
 0x6c6   :  { %v12412_v26 = vpop.eup %10474 }
 0x6c7   :  { %v12415_v58 = vand.u32 4294901760, %v12412_v26 }
 0x6c9   :  { %9475 = vmatmul.mubr.f32.vlgmr.msra.gmra.mxu1 %v12415_v58  ;;  %v12420_v63 = vsub.f32 %v12412_v26, %v12415_v58 }
 0x6ca   :  { %9513 = vmatpush3.msra.mxu1 %v14028_v10  ;;  %9544 = vmatprep.mubr.msk.f32.mxu1 %vm10601_vm0, %v13876_v14 }
 0x6cb   :  { %9514 = vmatprep.subr.mxu1 %v13876_v14  ;;  %v3987_v32 = vand.u32 4294901760, %v12420_v63 }
 0x6cc   :  { %9515 = vmatpush3.msra.mxu1 %v14030_v51 }
 0x6cd   :  { %9516 = vmatprep.subr.mxu1 %v13876_v14  ;;  %v3988_v3 = vsub.f32 %v12420_v63, %v3987_v32 }
 0x6ce   :  { %9517 = vmatpush3.msra.mxu1 %v14032_v17 }
 0x6cf   :  { %9518 = vmatprep.subr.mxu1 %v13876_v14  ;;  %v3989_v28 = vand.u32 4294901760, %v3988_v3  ;;  %v14074_v3 = vld [vmem:[#allocation88_spill] sm:$0xff] }
 0x6d0   :  { %9519 = vmatpush3.msra.mxu1 %v14034_v47 }
 0x6d1   :  { %9520 = vmatprep.subr.mxu1 %v13876_v14  ;;  %9440 = vmatmul.mubr.f32.vlgmr.msra.gmra.mxu0 %v3989_v28  ;;  %v14076_v28 = vld [vmem:[#allocation90_spill] sm:$0xff] }
 0x6d2   :  { %9478 = vmatpush3.msra.mxu0 %v14057_v46  ;;  %9521 = vmatpush3.msra.mxu1 %v14036_v24 }
 0x6d3   :  { %9479 = vmatprep.subr.mxu0 %v13876_v14  ;;  %9522 = vmatprep.subr.mxu1 %v13876_v14 }
 0x6d4   :  { %9480 = vmatpush3.msra.mxu0 %v14058_v36  ;;  %9523 = vmatpush3.msra.mxu1 %v14038_v2 }
 0x6d5   :  { %9481 = vmatprep.subr.mxu0 %v13876_v14  ;;  %9524 = vmatprep.subr.mxu1 %v13876_v14 }
 0x6d6   :  { %9482 = vmatpush3.msra.mxu0 %v14059_v60  ;;  %9525 = vmatpush3.msra.mxu1 %v14040_v16 }
 0x6d7   :  { %9483 = vmatprep.subr.mxu0 %v13876_v14  ;;  %9526 = vmatprep.subr.mxu1 %v13876_v14 }
 0x6d8   :  { %9484 = vmatpush3.msra.mxu0 %v14060_v13  ;;  %9527 = vmatpush3.msra.mxu1 %v14042_v55 }
 0x6d9   :  { %9485 = vmatprep.subr.mxu0 %v13876_v14  ;;  %9528 = vmatprep.subr.mxu1 %v13876_v14 }
 0x6da   :  { %9486 = vmatpush3.msra.mxu0 %v14061_v53  ;;  %9529 = vmatpush3.msra.mxu1 %v14044_v18 }
 0x6db   :  { %9487 = vmatprep.subr.mxu0 %v13876_v14  ;;  %9530 = vmatprep.subr.mxu1 %v13876_v14 }
 0x6dc   :  { %9488 = vmatpush3.msra.mxu0 %v14062_v50  ;;  %9531 = vmatpush3.msra.mxu1 %v14046_v30 }
 0x6dd   :  { %9489 = vmatprep.subr.mxu0 %v13876_v14  ;;  %9532 = vmatprep.subr.mxu1 %v13876_v14 }
 0x6de   :  { %9490 = vmatpush3.msra.mxu0 %v14063_v6  ;;  %9533 = vmatpush3.msra.mxu1 %v14048_v54 }
 0x6df   :  { %9491 = vmatprep.subr.mxu0 %v13876_v14  ;;  %9534 = vmatprep.subr.mxu1 %v13876_v14 }
 0x6e0   :  { %9492 = vmatpush3.msra.mxu0 %v14064_v48  ;;  %9535 = vmatpush3.msra.mxu1 %v14050_v5 }
 0x6e1   :  { %9493 = vmatprep.subr.mxu0 %v13876_v14  ;;  %9536 = vmatprep.subr.mxu1 %v13876_v14 }
 0x6e2   :  { %9494 = vmatpush3.msra.mxu0 %v14065_v0  ;;  %9537 = vmatpush3.msra.mxu1 %v14052_v42 }
 0x6e3   :  { %9495 = vmatprep.subr.mxu0 %v13876_v14  ;;  %9538 = vmatprep.subr.mxu1 %v13876_v14 }
 0x6e4   :  { %9496 = vmatpush3.msra.mxu0 %v14066_v62  ;;  %9539 = vmatpush3.msra.mxu1 %v14053_v43 }
 0x6e5   :  { %9497 = vmatprep.subr.mxu0 %v13876_v14  ;;  %9540 = vmatprep.subr.mxu1 %v13876_v14 }
 0x6e6   :  { %9498 = vmatpush3.msra.mxu0 %v14067_v41  ;;  %9541 = vmatpush3.msra.mxu1 %v14054_v44 }
 0x6e7   :  { %9499 = vmatprep.subr.mxu0 %v13876_v14  ;;  %9542 = vmatprep.subr.mxu1 %v13876_v14 }
 0x6e8   :  { %9500 = vmatpush3.msra.mxu0 %v14068_v34  ;;  %9543 = vmatpush3.msra.mxu1 %v14055_v9 }
 0x6e9   :  { %9501 = vmatprep.subr.mxu0 %v13876_v14  ;;  %9545 = vmatmul.mubr.f32.vlgmr.msra.gmra.mxu1 %v3987_v32  ;;  %v14073_v32 = vld [vmem:[#allocation87_spill] sm:$0xff] }
 0x6ea   :  { %9582 = vmatprep.subr.mxu1 %v13876_v14  ;;  %9502 = vmatpush3.msra.mxu0 %v14069_v31 }
 0x6eb   :  { %9583 = vmatpush3.msra.mxu1 %v14028_v10  ;;  %9503 = vmatprep.subr.mxu0 %v13876_v14  ;;  %v14126_v10 = vld [vmem:[#allocation69_spill] sm:$0xff] }
 0x6ec   :  { %9584 = vmatprep.subr.mxu1 %v13876_v14  ;;  %9504 = vmatpush3.msra.mxu0 %v14070_v59  ;;  %v14096_v59 = vld [vmem:[#allocation61_spill] sm:$0xff] }
 0x6ed   :  { %9585 = vmatpush3.msra.mxu1 %v14030_v51  ;;  %9505 = vmatprep.subr.mxu0 %v13876_v14  ;;  %v14125_v51 = vld [vmem:[#allocation62_spill] sm:$0xff] }
 0x6ee   :  { %9586 = vmatprep.subr.mxu1 %v13876_v14  ;;  %9506 = vmatpush3.msra.mxu0 %v14071_v33  ;;  %v14095_v33 = vld [vmem:[#allocation60_spill] sm:$0xff] }
 0x6ef   :  { %9587 = vmatpush3.msra.mxu1 %v14032_v17  ;;  %9507 = vmatprep.subr.mxu0 %v13876_v14  ;;  %v14124_v17 = vld [vmem:[#allocation56_spill] sm:$0xff] }
 0x6f0   :  { %9588 = vmatprep.subr.mxu1 %v13876_v14  ;;  %9508 = vmatpush3.msra.mxu0 %v14072_v4  ;;  %v14094_v4 = vld [vmem:[#allocation59_spill] sm:$0xff] }
 0x6f1   :  { %9509 = vmatprep.mubr.msk.f32.mxu0 %vm10601_vm0, %v13876_v14  ;;  %9589 = vmatpush3.msra.mxu1 %v14034_v47  ;;  %v14123_v47 = vld [vmem:[#allocation54_spill] sm:$0xff] }
 0x6f2   :  { %9510 = vmatmul.mubr.f32.vlgmr.msra.gmra.mxu0 %v12420_v63  ;;  %9547 = vmatprep.subr.mxu0 %v13876_v14  ;;  %v14075_v63 = vld [vmem:[#allocation89_spill] sm:$0xff] }
 0x6f3   :  { %9590 = vmatprep.subr.mxu1 %v13876_v14  ;;  %9548 = vmatpush3.msra.mxu0 %v14073_v32  ;;  %v14088_v32 = vld [vmem:[#allocation134_spill] sm:$0xff] }
 0x6f4   :  { %9591 = vmatpush3.msra.mxu1 %v14036_v24  ;;  %9549 = vmatprep.subr.mxu0 %v13876_v14  ;;  %v14122_v24 = vld [vmem:[#allocation48_spill] sm:$0xff] }
 0x6f5   :  { %9592 = vmatprep.subr.mxu1 %v13876_v14  ;;  %9550 = vmatpush3.msra.mxu0 %v14074_v3  ;;  %v14077_v3 = vld [vmem:[#allocation91_spill] sm:$0xff] }
 0x6f6   :  { %9593 = vmatpush3.msra.mxu1 %v14038_v2  ;;  %9551 = vmatprep.subr.mxu0 %v13876_v14  ;;  %v14121_v2 = vld [vmem:[#allocation44_spill] sm:$0xff] }
 0x6f7   :  { %9594 = vmatprep.subr.mxu1 %v13876_v14  ;;  %9552 = vmatpush3.msra.mxu0 %v14075_v63  ;;  %v14078_v63 = vld [vmem:[#allocation94_spill] sm:$0xff] }
 0x6f8   :  { %9595 = vmatpush3.msra.mxu1 %v14040_v16  ;;  %9553 = vmatprep.subr.mxu0 %v13876_v14  ;;  %v14120_v16 = vld [vmem:[#allocation39_spill] sm:$0xff] }
 0x6f9   :  { %9596 = vmatprep.subr.mxu1 %v13876_v14  ;;  %9554 = vmatpush3.msra.mxu0 %v14076_v28  ;;  %v14079_v28 = vld [vmem:[#allocation103_spill] sm:$0xff] }
 0x6fa   :  { %9597 = vmatpush3.msra.mxu1 %v14042_v55  ;;  %9555 = vmatprep.subr.mxu0 %v13876_v14 }
 0x6fb   :  { %9598 = vmatprep.subr.mxu1 %v13876_v14  ;;  %9556 = vmatpush3.msra.mxu0 %v14077_v3  ;;  %v14080_v3 = vld [vmem:[#allocation106_spill] sm:$0xff] }
 0x6fc   :  { %9599 = vmatpush3.msra.mxu1 %v14044_v18  ;;  %9557 = vmatprep.subr.mxu0 %v13876_v14 }
 0x6fd   :  { %9600 = vmatprep.subr.mxu1 %v13876_v14  ;;  %9558 = vmatpush3.msra.mxu0 %v14078_v63  ;;  %v14081_v63 = vld [vmem:[#allocation110_spill] sm:$0xff] }
 0x6fe   :  { %9601 = vmatpush3.msra.mxu1 %v14046_v30  ;;  %9559 = vmatprep.subr.mxu0 %v13876_v14 }
 0x6ff   :  { %9602 = vmatprep.subr.mxu1 %v13876_v14  ;;  %9560 = vmatpush3.msra.mxu0 %v14079_v28  ;;  %v14082_v28 = vld [vmem:[#allocation114_spill] sm:$0xff] }
 0x700   :  { %9603 = vmatpush3.msra.mxu1 %v14048_v54  ;;  %9561 = vmatprep.subr.mxu0 %v13876_v14 }
 0x701   :  { %9604 = vmatprep.subr.mxu1 %v13876_v14  ;;  %9562 = vmatpush3.msra.mxu0 %v14080_v3  ;;  %v14083_v3 = vld [vmem:[#allocation120_spill] sm:$0xff] }
 0x702   :  { %9605 = vmatpush3.msra.mxu1 %v14050_v5  ;;  %9563 = vmatprep.subr.mxu0 %v13876_v14 }
 0x703   :  { %9606 = vmatprep.subr.mxu1 %v13876_v14  ;;  %9564 = vmatpush3.msra.mxu0 %v14081_v63  ;;  %v14084_v63 = vld [vmem:[#allocation122_spill] sm:$0xff] }
 0x704   :  { %9607 = vmatpush3.msra.mxu1 %v14052_v42  ;;  %9565 = vmatprep.subr.mxu0 %v13876_v14 }
 0x705   :  { %9608 = vmatprep.subr.mxu1 %v13876_v14  ;;  %9566 = vmatpush3.msra.mxu0 %v14082_v28  ;;  %v14085_v28 = vld [vmem:[#allocation127_spill] sm:$0xff] }
 0x706   :  { %9609 = vmatpush3.msra.mxu1 %v14053_v43  ;;  %9567 = vmatprep.subr.mxu0 %v13876_v14 }
 0x707   :  { %9610 = vmatprep.subr.mxu1 %v13876_v14  ;;  %9568 = vmatpush3.msra.mxu0 %v14083_v3  ;;  %v14086_v3 = vld [vmem:[#allocation133_spill] sm:$0xff] }
 0x708   :  { %9611 = vmatpush3.msra.mxu1 %v14054_v44  ;;  %9569 = vmatprep.subr.mxu0 %v13876_v14 }
 0x709   :  { %9612 = vmatprep.subr.mxu1 %v13876_v14  ;;  %9570 = vmatpush3.msra.mxu0 %v14084_v63  ;;  %v14087_v63 = vld [vmem:[#allocation23_spill] sm:$0xff] }
 0x70a   :  { %9613 = vmatpush3.msra.mxu1 %v14055_v9  ;;  %9614 = vmatprep.mubr.msk.f32.mxu1 %vm10601_vm0, %v13876_v14 }
 0x70b   :  { %9571 = vmatprep.subr.mxu0 %v13876_v14  ;;  %9615 = vmatmul.mubr.f32.vlgmr.msra.gmra.mxu1 %v12415_v58 }
 0x70c   :  { %9572 = vmatpush3.msra.mxu0 %v14085_v28  ;;  %9579 = vmatprep.mubr.msk.f32.mxu0 %vm10601_vm0, %v13876_v14  ;;  %v14089_v28 = vld [vmem:[#allocation135_spill] sm:$0xff] }
 0x70d   :  { %9573 = vmatprep.subr.mxu0 %v13876_v14  ;;  %9652 = vmatprep.subr.mxu1 %v13876_v14 }
 0x70e   :  { %9574 = vmatpush3.msra.mxu0 %v14086_v3  ;;  %9653 = vmatpush3.msra.mxu1 %v14087_v63  ;;  %v14093_v3 = vld [vmem:[#allocation58_spill] sm:$0xff] }
 0x70f   :  { %9575 = vmatprep.subr.mxu0 %v13876_v14  ;;  %9654 = vmatprep.subr.mxu1 %v13876_v14 }
 0x710   :  { %9576 = vmatpush3.msra.mxu0 %v14088_v32  ;;  %9655 = vmatpush3.msra.mxu1 %v13881_v49  ;;  %v14092_v32 = vld [vmem:[#allocation77_spill] sm:$0xff] }
 0x711   :  { %9577 = vmatprep.subr.mxu0 %v13876_v14  ;;  %9656 = vmatprep.subr.mxu1 %v13876_v14 }
 0x712   :  { %9578 = vmatpush3.msra.mxu0 %v14089_v28  ;;  %9657 = vmatpush3.msra.mxu1 %v13883_v25  ;;  %v14091_v28 = vld [vmem:[#allocation76_spill] sm:$0xff] }
 0x713   :  { %9580 = vmatmul.mubr.f32.vlgmr.msra.gmra.mxu0 %v12415_v58  ;;  %9658 = vmatprep.subr.mxu1 %v13876_v14  ;;  %v14090_v58 = vld [vmem:[#allocation64_spill] sm:$0xff] }
 0x714   :  { %9659 = vmatpush3.msra.mxu1 %v13885_v45  ;;  %9617 = vmatprep.subr.mxu0 %v13876_v14 }
 0x715   :  { %9660 = vmatprep.subr.mxu1 %v13876_v14  ;;  %9618 = vmatpush3.msra.mxu0 %v10851_v57 }
 0x716   :  { %9661 = vmatpush3.msra.mxu1 %v13886_v61  ;;  %9619 = vmatprep.subr.mxu0 %v13876_v14 }
 0x717   :  { %9662 = vmatprep.subr.mxu1 %v13876_v14  ;;  %9620 = vmatpush3.msra.mxu0 %v13963_v8 }
 0x718   :  { %9663 = vmatpush3.msra.mxu1 %v13964_v12  ;;  %9621 = vmatprep.subr.mxu0 %v13876_v14 }
 0x719   :  { %9664 = vmatprep.subr.mxu1 %v13876_v14  ;;  %9622 = vmatpush3.msra.mxu0 %v13965_v1 }
 0x71a   :  { %9665 = vmatpush3.msra.mxu1 %v13966_v15  ;;  %9623 = vmatprep.subr.mxu0 %v13876_v14 }
 0x71b   :  { %9666 = vmatprep.subr.mxu1 %v13876_v14  ;;  %9624 = vmatpush3.msra.mxu0 %v13967_v35 }
 0x71c   :  { %9667 = vmatpush3.msra.mxu1 %v13968_v7  ;;  %9625 = vmatprep.subr.mxu0 %v13876_v14 }
 0x71d   :  { %9668 = vmatprep.subr.mxu1 %v13876_v14  ;;  %9626 = vmatpush3.msra.mxu0 %v13969_v29 }
 0x71e   :  { %9669 = vmatpush3.msra.mxu1 %v13970_v23  ;;  %9627 = vmatprep.subr.mxu0 %v13876_v14 }
 0x71f   :  { %9670 = vmatprep.subr.mxu1 %v13876_v14  ;;  %9628 = vmatpush3.msra.mxu0 %v13971_v38 }
 0x720   :  { %9671 = vmatpush3.msra.mxu1 %v14090_v58  ;;  %9629 = vmatprep.subr.mxu0 %v13876_v14 }
 0x721   :  { %9672 = vmatprep.subr.mxu1 %v13876_v14  ;;  %9630 = vmatpush3.msra.mxu0 %v13973_v11 }
 0x722   :  { %9673 = vmatpush3.msra.mxu1 %v13974_v37  ;;  %9631 = vmatprep.subr.mxu0 %v13876_v14 }
 0x723   :  { %9674 = vmatprep.subr.mxu1 %v13876_v14  ;;  %9632 = vmatpush3.msra.mxu0 %v13975_v19 }
 0x724   :  { %9675 = vmatpush3.msra.mxu1 %v13976_v52  ;;  %9633 = vmatprep.subr.mxu0 %v13876_v14 }
 0x725   :  { %9676 = vmatprep.subr.mxu1 %v13876_v14  ;;  %9634 = vmatpush3.msra.mxu0 %v13977_v21 }
 0x726   :  { %9677 = vmatpush3.msra.mxu1 %v13978_v22  ;;  %9635 = vmatprep.subr.mxu0 %v13876_v14 }
 0x727   :  { %9678 = vmatprep.subr.mxu1 %v13876_v14  ;;  %9636 = vmatpush3.msra.mxu0 %v13979_v40 }
 0x728   :  { %9679 = vmatpush3.msra.mxu1 %v13980_v39  ;;  %9637 = vmatprep.subr.mxu0 %v13876_v14 }
 0x729   :  { %9680 = vmatprep.subr.mxu1 %v13876_v14  ;;  %9638 = vmatpush3.msra.mxu0 %v13981_v20 }
 0x72a   :  { %9681 = vmatpush3.msra.mxu1 %v14091_v28  ;;  %9639 = vmatprep.subr.mxu0 %v13876_v14 }
 0x72b   :  { %9682 = vmatprep.subr.mxu1 %v13876_v14  ;;  %9640 = vmatpush3.msra.mxu0 %v13983_v27 }
 0x72c   :  { %9683 = vmatpush3.msra.mxu1 %v14092_v32  ;;  %9641 = vmatprep.subr.mxu0 %v13876_v14 }
 0x72d   :  { %9684 = vmatprep.mubr.msk.f32.mxu1 %vm10601_vm0, %v13876_v14  ;;  %9722 = vmatprep.subr.mxu1 %v13876_v14 }
 0x72e   :  { %9642 = vmatpush3.msra.mxu0 %v14093_v3  ;;  %9649 = vmatprep.mubr.msk.f32.mxu0 %vm10601_vm0, %v13876_v14 }
 0x72f   :  { %9643 = vmatprep.subr.mxu0 %v13876_v14 }
 0x730   :  { %9644 = vmatpush3.msra.mxu0 %v14094_v4 }
 0x731   :  { %9645 = vmatprep.subr.mxu0 %v13876_v14 }
 0x732   :  { %9646 = vmatpush3.msra.mxu0 %v14095_v33 }
 0x733   :  { %9647 = vmatprep.subr.mxu0 %v13876_v14 }
 0x734   :  { %9648 = vmatpush3.msra.mxu0 %v14096_v59 }
 0x735   :  { %9687 = vmatprep.subr.mxu0 %v13876_v14 }
 0x789   :  { %v4142_v31 = vpop.f32.mrf.mxu1 }
 0x78b   :  { %v9476_v34 = vpop.f32.mrf.mxu1 }
 0x791   :  { %v3991_v41 = vpop.f32.mrf.mxu0 }
 0x792   :  { %v4143_v13 = vadd.f32 %v4142_v31, %v3991_v41  ;;  %v14107_v31 = vld [vmem:[#allocation50_spill] sm:$0xff] }
 0x793   :  { %v9441_v62 = vpop.f32.mrf.mxu0 }
 0x7a9   :  { %v4335_v0 = vpop.f32.mrf.mxu1 }
 0x7ab   :  { %v9546_v48 = vpop.f32.mrf.mxu1 }
 0x7ac   :  { %v14097_v48 = vld [vmem:[#allocation78_spill] sm:$0xff] }
 0x7b2   :  { %v4246_v6 = vpop.f32.mrf.mxu0 }
 0x7b3   :  { %v4247_v36 = vadd.f32 %v4246_v6, %v4143_v13  ;;  %v14105_v6 = vld [vmem:[#allocation40_spill] sm:$0xff] }
 0x7b4   :  { %v9511_v50 = vpop.f32.mrf.mxu0 }
 0x7b5   :  { %v4336_v46 = vadd.f32 %v4335_v0, %v4247_v36  ;;  %v14106_v0 = vld [vmem:[#allocation45_spill] sm:$0xff] }
 0x7cb   :  { %v4541_v53 = vpop.f32.mrf.mxu1 }
 0x7cd   :  { %v9616_v60 = vpop.f32.mrf.mxu1 }
 0x7d3   :  { %v4454_v56 = vpop.f32.mrf.mxu0 }
 0x7d4   :  { %v4455_v9 = vadd.f32 %v4454_v56, %v4336_v46  ;;  %v14101_v56 = vld [vmem:[#allocation25_spill] sm:$0xff]  ;;  %v14103_v46 = vld [vmem:[#allocation32_spill] sm:$0xff] }
 0x7d5   :  { %v9581_v44 = vpop.f32.mrf.mxu0 }
 0x7d6   :  { %v4542_v43 = vadd.f32 %v4541_v53, %v4455_v9  ;;  %v14104_v53 = vld [vmem:[#allocation37_spill] sm:$0xff] }
 0x7d8   :  { %10476 = vrcp.f32 %v4542_v43 }
 0x7e5   :  { %v10477_v42 = vpop.eup %10476 }
 0x7e6   :  { %v4546_v5 = vmul.f32 %v10477_v42, %v4542_v43  ;;  %v14100_v43 = vld [vmem:[#allocation21_spill] sm:$0xff] }
 0x7e8   :  { %v4547_v54 = vsub.f32 2.0, %v4546_v5 }
 0x7ea   :  { %v4548_v34 = vmul.f32 %v10477_v42, %v4547_v54  ;;  %v14098_v42 = vld [vmem:[#allocation15_spill] sm:$0xff] }
 0x7ec   :  { %v4549_v30 = vmul.f32 8.0, %v4548_v34  ;;  %v14108_v34 = vld [vmem:[#allocation52_spill] sm:$0xff] }
 0x7ee   :  { %v4550_v62 = vmul.f32 %v12412_v26, %v4549_v30  ;;  %v14102_v26 = vld [vmem:[#allocation30_spill] sm:$0xff] }
 0x7f0   :  { %v4551_v18 = vmul.f32 %v4550_v62, %v14097_v48  ;;  %v14109_v62 = vld [vmem:[#allocation57_spill] sm:$0xff] }
 0x7f2   :  { %v4552_v50 = vrot.slane %v4551_v18, 4 }
 0x7f4   :  { %v4553_v55 = vadd.f32 %v4552_v50, %v4551_v18  ;;  %v14110_v50 = vld [vmem:[#allocation63_spill] sm:$0xff] }
 0x7f6   :  { %v4554_v41 = vrot.slane %v4553_v55, 2 }
 0x7f8   :  { %v4555_v60 = vadd.f32 %v4554_v41, %v4553_v55  ;;  %v14099_v55 = vld [vmem:[#allocation18_spill] sm:$0xff]  ;;  %v14111_v41 = vld [vmem:[#allocation65_spill] sm:$0xff] }
 0x7fa   :  { %v4556_v13 = vrot.slane %v4555_v60, 1 }
 0x7fc   :  { %v12633_v36 = vadd.f32 %v4556_v13, %v4555_v60  ;;  %v14112_v60 = vld [vmem:[#allocation66_spill] sm:$0xff]  ;;  %v14113_v13 = vld [vmem:[#allocation67_spill] sm:$0xff] }
 0x7fe   :  { %v4559_v44 = vmul.f32 %v12633_v36, %v14097_v48  ;;  %v14119_v48 = vld [vmem:[#allocation36_spill] sm:$0xff] }
 0x800   :  { %v12637_v9 = vand.u32 4294901760, %v4559_v44 }
 0x802   :  { %v12640_v5 = vsub.f32 %v4559_v44, %v12637_v9  ;;  %9685 = vmatmul.mubr.f32.vlgmr.msra.gmra.mxu1 %v12637_v9  ;;  %v14114_v44 = vld [vmem:[#allocation17_spill] sm:$0xff] }
 0x803   :  { %9723 = vmatpush3.msra.mxu1 %v10851_v57  ;;  %9754 = vmatprep.mubr.msk.f32.mxu1 %vm10601_vm0, %v13876_v14 }
 0x804   :  { %9724 = vmatprep.subr.mxu1 %v13876_v14  ;;  %v4643_v30 = vand.u32 4294901760, %v12640_v5 }
 0x805   :  { %9725 = vmatpush3.msra.mxu1 %v13963_v8 }
 0x806   :  { %9726 = vmatprep.subr.mxu1 %v13876_v14  ;;  %v4644_v54 = vsub.f32 %v12640_v5, %v4643_v30 }
 0x807   :  { %9727 = vmatpush3.msra.mxu1 %v13965_v1 }
 0x808   :  { %9728 = vmatprep.subr.mxu1 %v13876_v14  ;;  %v4645_v18 = vand.u32 4294901760, %v4644_v54  ;;  %v14117_v54 = vld [vmem:[#allocation28_spill] sm:$0xff] }
 0x809   :  { %9729 = vmatpush3.msra.mxu1 %v13967_v35 }
 0x80a   :  { %9730 = vmatprep.subr.mxu1 %v13876_v14  ;;  %9650 = vmatmul.mubr.f32.vlgmr.msra.gmra.mxu0 %v4645_v18  ;;  %v14118_v18 = vld [vmem:[#allocation34_spill] sm:$0xff] }
 0x80b   :  { %9688 = vmatpush3.msra.mxu0 %v14098_v42  ;;  %9731 = vmatpush3.msra.mxu1 %v13969_v29 }
 0x80c   :  { %9689 = vmatprep.subr.mxu0 %v13876_v14  ;;  %9732 = vmatprep.subr.mxu1 %v13876_v14 }
 0x80d   :  { %9690 = vmatpush3.msra.mxu0 %v14099_v55  ;;  %9733 = vmatpush3.msra.mxu1 %v13971_v38 }
 0x80e   :  { %9691 = vmatprep.subr.mxu0 %v13876_v14  ;;  %9734 = vmatprep.subr.mxu1 %v13876_v14 }
 0x80f   :  { %9692 = vmatpush3.msra.mxu0 %v14100_v43  ;;  %9735 = vmatpush3.msra.mxu1 %v13973_v11 }
 0x810   :  { %9693 = vmatprep.subr.mxu0 %v13876_v14  ;;  %9736 = vmatprep.subr.mxu1 %v13876_v14 }
 0x811   :  { %9694 = vmatpush3.msra.mxu0 %v14101_v56  ;;  %9737 = vmatpush3.msra.mxu1 %v13975_v19 }
 0x812   :  { %9695 = vmatprep.subr.mxu0 %v13876_v14  ;;  %9738 = vmatprep.subr.mxu1 %v13876_v14 }
 0x813   :  { %9696 = vmatpush3.msra.mxu0 %v14102_v26  ;;  %9739 = vmatpush3.msra.mxu1 %v13977_v21 }
 0x814   :  { %9697 = vmatprep.subr.mxu0 %v13876_v14  ;;  %9740 = vmatprep.subr.mxu1 %v13876_v14 }
 0x815   :  { %9698 = vmatpush3.msra.mxu0 %v14103_v46  ;;  %9741 = vmatpush3.msra.mxu1 %v13979_v40 }
 0x816   :  { %9699 = vmatprep.subr.mxu0 %v13876_v14  ;;  %9742 = vmatprep.subr.mxu1 %v13876_v14 }
 0x817   :  { %9700 = vmatpush3.msra.mxu0 %v14104_v53  ;;  %9743 = vmatpush3.msra.mxu1 %v13981_v20 }
 0x818   :  { %9701 = vmatprep.subr.mxu0 %v13876_v14  ;;  %9744 = vmatprep.subr.mxu1 %v13876_v14 }
 0x819   :  { %9702 = vmatpush3.msra.mxu0 %v14105_v6  ;;  %9745 = vmatpush3.msra.mxu1 %v13983_v27 }
 0x81a   :  { %9703 = vmatprep.subr.mxu0 %v13876_v14  ;;  %9746 = vmatprep.subr.mxu1 %v13876_v14 }
 0x81b   :  { %9704 = vmatpush3.msra.mxu0 %v14106_v0  ;;  %9747 = vmatpush3.msra.mxu1 %v14093_v3 }
 0x81c   :  { %9705 = vmatprep.subr.mxu0 %v13876_v14  ;;  %9748 = vmatprep.subr.mxu1 %v13876_v14 }
 0x81d   :  { %9706 = vmatpush3.msra.mxu0 %v14107_v31  ;;  %9749 = vmatpush3.msra.mxu1 %v14094_v4 }
 0x81e   :  { %9707 = vmatprep.subr.mxu0 %v13876_v14  ;;  %9750 = vmatprep.subr.mxu1 %v13876_v14 }
 0x81f   :  { %9708 = vmatpush3.msra.mxu0 %v14108_v34  ;;  %9751 = vmatpush3.msra.mxu1 %v14095_v33 }
 0x820   :  { %9709 = vmatprep.subr.mxu0 %v13876_v14  ;;  %9752 = vmatprep.subr.mxu1 %v13876_v14 }
 0x821   :  { %9710 = vmatpush3.msra.mxu0 %v14109_v62  ;;  %9753 = vmatpush3.msra.mxu1 %v14096_v59 }
 0x822   :  { %9711 = vmatprep.subr.mxu0 %v13876_v14  ;;  %9755 = vmatmul.mubr.f32.vlgmr.msra.gmra.mxu1 %v4643_v30  ;;  %v14115_v30 = vld [vmem:[#allocation20_spill] sm:$0xff] }
 0x823   :  { %9792 = vmatprep.subr.mxu1 %v13876_v14  ;;  %9712 = vmatpush3.msra.mxu0 %v14110_v50 }
 0x824   :  { %9793 = vmatpush3.msra.mxu1 %v10851_v57  ;;  %9713 = vmatprep.subr.mxu0 %v13876_v14 }
 0x825   :  { %9794 = vmatprep.subr.mxu1 %v13876_v14  ;;  %9714 = vmatpush3.msra.mxu0 %v14111_v41 }
 0x826   :  { %9795 = vmatpush3.msra.mxu1 %v13963_v8  ;;  %9715 = vmatprep.subr.mxu0 %v13876_v14 }
 0x827   :  { %9796 = vmatprep.subr.mxu1 %v13876_v14  ;;  %9716 = vmatpush3.msra.mxu0 %v14112_v60 }
 0x828   :  { %9797 = vmatpush3.msra.mxu1 %v13965_v1  ;;  %9717 = vmatprep.subr.mxu0 %v13876_v14 }
 0x829   :  { %9798 = vmatprep.subr.mxu1 %v13876_v14  ;;  %9718 = vmatpush3.msra.mxu0 %v14113_v13 }
 0x82a   :  { %9719 = vmatprep.mubr.msk.f32.mxu0 %vm10601_vm0, %v13876_v14  ;;  %9799 = vmatpush3.msra.mxu1 %v13967_v35 }
 0x82b   :  { %9720 = vmatmul.mubr.f32.vlgmr.msra.gmra.mxu0 %v12640_v5  ;;  %9757 = vmatprep.subr.mxu0 %v13876_v14  ;;  %v14116_v5 = vld [vmem:[#allocation24_spill] sm:$0xff] }
 0x82c   :  { %9800 = vmatprep.subr.mxu1 %v13876_v14  ;;  %9758 = vmatpush3.msra.mxu0 %v14114_v44 }
 0x82d   :  { %9801 = vmatpush3.msra.mxu1 %v13969_v29  ;;  %9759 = vmatprep.subr.mxu0 %v13876_v14 }
 0x82e   :  { %9802 = vmatprep.subr.mxu1 %v13876_v14  ;;  %9760 = vmatpush3.msra.mxu0 %v14115_v30 }
 0x82f   :  { %9803 = vmatpush3.msra.mxu1 %v13971_v38  ;;  %9761 = vmatprep.subr.mxu0 %v13876_v14 }
 0x830   :  { %9804 = vmatprep.subr.mxu1 %v13876_v14  ;;  %9762 = vmatpush3.msra.mxu0 %v14116_v5 }
 0x831   :  { %9805 = vmatpush3.msra.mxu1 %v13973_v11  ;;  %9763 = vmatprep.subr.mxu0 %v13876_v14 }
 0x832   :  { %9806 = vmatprep.subr.mxu1 %v13876_v14  ;;  %9764 = vmatpush3.msra.mxu0 %v14117_v54 }
 0x833   :  { %9807 = vmatpush3.msra.mxu1 %v13975_v19  ;;  %9765 = vmatprep.subr.mxu0 %v13876_v14 }
 0x834   :  { %9808 = vmatprep.subr.mxu1 %v13876_v14  ;;  %9766 = vmatpush3.msra.mxu0 %v14118_v18 }
 0x835   :  { %9809 = vmatpush3.msra.mxu1 %v13977_v21  ;;  %9767 = vmatprep.subr.mxu0 %v13876_v14 }
 0x836   :  { %9810 = vmatprep.subr.mxu1 %v13876_v14  ;;  %9768 = vmatpush3.msra.mxu0 %v14119_v48 }
 0x837   :  { %9811 = vmatpush3.msra.mxu1 %v13979_v40  ;;  %9769 = vmatprep.subr.mxu0 %v13876_v14 }
 0x838   :  { %9812 = vmatprep.subr.mxu1 %v13876_v14  ;;  %9770 = vmatpush3.msra.mxu0 %v14120_v16 }
 0x839   :  { %9813 = vmatpush3.msra.mxu1 %v13981_v20  ;;  %9771 = vmatprep.subr.mxu0 %v13876_v14 }
 0x83a   :  { %9814 = vmatprep.subr.mxu1 %v13876_v14  ;;  %9772 = vmatpush3.msra.mxu0 %v14121_v2 }
 0x83b   :  { %9815 = vmatpush3.msra.mxu1 %v13983_v27  ;;  %9773 = vmatprep.subr.mxu0 %v13876_v14 }
 0x83c   :  { %9816 = vmatprep.subr.mxu1 %v13876_v14  ;;  %9774 = vmatpush3.msra.mxu0 %v14122_v24 }
 0x83d   :  { %9817 = vmatpush3.msra.mxu1 %v14093_v3  ;;  %9775 = vmatprep.subr.mxu0 %v13876_v14 }
 0x83e   :  { %9818 = vmatprep.subr.mxu1 %v13876_v14  ;;  %9776 = vmatpush3.msra.mxu0 %v14123_v47 }
 0x83f   :  { %9819 = vmatpush3.msra.mxu1 %v14094_v4  ;;  %9777 = vmatprep.subr.mxu0 %v13876_v14 }
 0x840   :  { %9820 = vmatprep.subr.mxu1 %v13876_v14  ;;  %9778 = vmatpush3.msra.mxu0 %v14124_v17  ;;  %v14128_v17 = vld [vmem:[#allocation71_spill] sm:$0xff] }
 0x841   :  { %9821 = vmatpush3.msra.mxu1 %v14095_v33  ;;  %9779 = vmatprep.subr.mxu0 %v13876_v14 }
 0x842   :  { %9822 = vmatprep.subr.mxu1 %v13876_v14  ;;  %9780 = vmatpush3.msra.mxu0 %v14125_v51  ;;  %v14127_v51 = vld [vmem:[#allocation70_spill] sm:$0xff] }
 0x843   :  { %9823 = vmatpush3.msra.mxu1 %v14096_v59  ;;  %9824 = vmatprep.mubr.msk.f32.mxu1 %vm10601_vm0, %v13876_v14 }
 0x844   :  { %9781 = vmatprep.subr.mxu0 %v13876_v14  ;;  %9825 = vmatmul.mubr.f32.vlgmr.msra.gmra.mxu1 %v12637_v9 }
 0x845   :  { %9862 = vmatprep.subr.mxu1 %v13876_v14  ;;  %9782 = vmatpush3.msra.mxu0 %v14126_v10 }
 0x846   :  { %9863 = vmatpush3.msra.mxu1 %v14087_v63  ;;  %9783 = vmatprep.subr.mxu0 %v13876_v14  ;;  %v14129_v63 = vld [vmem:[#allocation72_spill] sm:$0xff] }
 0x847   :  { %9864 = vmatprep.subr.mxu1 %v13876_v14  ;;  %9784 = vmatpush3.msra.mxu0 %v14127_v51 }
 0x848   :  { %9865 = vmatpush3.msra.mxu1 %v13881_v49  ;;  %9785 = vmatprep.subr.mxu0 %v13876_v14 }
 0x849   :  { %9866 = vmatprep.subr.mxu1 %v13876_v14  ;;  %9786 = vmatpush3.msra.mxu0 %v14128_v17 }
 0x84a   :  { %9867 = vmatpush3.msra.mxu1 %v13883_v25  ;;  %9787 = vmatprep.subr.mxu0 %v13876_v14 }
 0x84b   :  { %9868 = vmatprep.subr.mxu1 %v13876_v14  ;;  %9788 = vmatpush3.msra.mxu0 %v14129_v63 }
 0x84c   :  { %9789 = vmatprep.mubr.msk.f32.mxu0 %vm10601_vm0, %v13876_v14  ;;  %9869 = vmatpush3.msra.mxu1 %v13885_v45 }
 0x84d   :  { %9790 = vmatmul.mubr.f32.vlgmr.msra.gmra.mxu0 %v12637_v9  ;;  %9827 = vmatprep.subr.mxu0 %v13876_v14  ;;  %v4558_v9 = vmul.f32 %v12633_v36, %v12633_v36 }
 0x84e   :  { %9870 = vmatprep.subr.mxu1 %v13876_v14  ;;  %9828 = vmatpush3.msra.mxu0 %v10851_v57 }
 0x84f   :  { %9871 = vmatpush3.msra.mxu1 %v13886_v61  ;;  %9829 = vmatprep.subr.mxu0 %v13876_v14 }
 0x850   :  { %9872 = vmatprep.subr.mxu1 %v13876_v14  ;;  %9830 = vmatpush3.msra.mxu0 %v13963_v8 }
 0x851   :  { %9873 = vmatpush3.msra.mxu1 %v13964_v12  ;;  %9831 = vmatprep.subr.mxu0 %v13876_v14 }
 0x852   :  { %9874 = vmatprep.subr.mxu1 %v13876_v14  ;;  %9832 = vmatpush3.msra.mxu0 %v13965_v1 }
 0x853   :  { %9875 = vmatpush3.msra.mxu1 %v13966_v15  ;;  %9833 = vmatprep.subr.mxu0 %v13876_v14 }
 0x854   :  { %9876 = vmatprep.subr.mxu1 %v13876_v14  ;;  %9834 = vmatpush3.msra.mxu0 %v13967_v35 }
 0x855   :  { %9877 = vmatpush3.msra.mxu1 %v13968_v7  ;;  %9835 = vmatprep.subr.mxu0 %v13876_v14 }
 0x856   :  { %9878 = vmatprep.subr.mxu1 %v13876_v14  ;;  %9836 = vmatpush3.msra.mxu0 %v13969_v29 }
 0x857   :  { %9879 = vmatpush3.msra.mxu1 %v13970_v23  ;;  %9837 = vmatprep.subr.mxu0 %v13876_v14 }
 0x858   :  { %9880 = vmatprep.subr.mxu1 %v13876_v14  ;;  %9838 = vmatpush3.msra.mxu0 %v13971_v38 }
 0x859   :  { %9881 = vmatpush3.msra.mxu1 %v14090_v58  ;;  %9839 = vmatprep.subr.mxu0 %v13876_v14  ;;  %v12825_v58 = vand.u32 4294901760, %v4558_v9 }
 0x85a   :  { %9882 = vmatprep.subr.mxu1 %v13876_v14  ;;  %9840 = vmatpush3.msra.mxu0 %v13973_v11 }
 0x85b   :  { %9883 = vmatpush3.msra.mxu1 %v13974_v37  ;;  %9841 = vmatprep.subr.mxu0 %v13876_v14  ;;  %v12836_v36 = vsub.f32 %v4558_v9, %v12825_v58 }
 0x85c   :  { %9884 = vmatprep.subr.mxu1 %v13876_v14  ;;  %9842 = vmatpush3.msra.mxu0 %v13975_v19 }
 0x85d   :  { %9885 = vmatpush3.msra.mxu1 %v13976_v52  ;;  %9843 = vmatprep.subr.mxu0 %v13876_v14  ;;  %v5284_v9 = vand.u32 4294901760, %v12836_v36 }
 0x85e   :  { %9886 = vmatprep.subr.mxu1 %v13876_v14  ;;  %9844 = vmatpush3.msra.mxu0 %v13977_v21 }
 0x85f   :  { %9887 = vmatpush3.msra.mxu1 %v13978_v22  ;;  %9845 = vmatprep.subr.mxu0 %v13876_v14 }
 0x860   :  { %9888 = vmatprep.subr.mxu1 %v13876_v14  ;;  %9846 = vmatpush3.msra.mxu0 %v13979_v40 }
 0x861   :  { %9889 = vmatpush3.msra.mxu1 %v13980_v39  ;;  %9847 = vmatprep.subr.mxu0 %v13876_v14 }
 0x862   :  { %9890 = vmatprep.subr.mxu1 %v13876_v14  ;;  %9848 = vmatpush3.msra.mxu0 %v13981_v20 }
 0x863   :  { %9891 = vmatpush3.msra.mxu1 %v14091_v28  ;;  %9849 = vmatprep.subr.mxu0 %v13876_v14 }
 0x864   :  { %9892 = vmatprep.subr.mxu1 %v13876_v14  ;;  %9850 = vmatpush3.msra.mxu0 %v13983_v27 }
 0x865   :  { %9893 = vmatpush3.msra.mxu1 %v14092_v32  ;;  %9894 = vmatprep.mubr.msk.f32.mxu1 %vm10601_vm0, %v13876_v14  ;;  %v5285_v32 = vsub.f32 %v12836_v36, %v5284_v9 }
 0x866   :  { %9851 = vmatprep.subr.mxu0 %v13876_v14  ;;  %9895 = vmatmul.mubr.f32.vlgmr.msra.gmra.mxu1 %v12825_v58 }
 0x867   :  { %9932 = vmatprep.subr.mxu1 %v13876_v14  ;;  %9852 = vmatpush3.msra.mxu0 %v14093_v3  ;;  %v5286_v28 = vand.u32 4294901760, %v5285_v32  ;;  %v14130_v32 = vld [vmem:[#allocation56_spill] sm:$0xff] }
 0x868   :  { %9933 = vmatpush3.msra.mxu1 %v10851_v57  ;;  %9853 = vmatprep.subr.mxu0 %v13876_v14 }
 0x869   :  { %9934 = vmatprep.subr.mxu1 %v13876_v14  ;;  %9854 = vmatpush3.msra.mxu0 %v14094_v4 }
 0x86a   :  { %9935 = vmatpush3.msra.mxu1 %v13963_v8  ;;  %9855 = vmatprep.subr.mxu0 %v13876_v14 }
 0x86b   :  { %9936 = vmatprep.subr.mxu1 %v13876_v14  ;;  %9856 = vmatpush3.msra.mxu0 %v14095_v33 }
 0x86c   :  { %9937 = vmatpush3.msra.mxu1 %v13965_v1  ;;  %9857 = vmatprep.subr.mxu0 %v13876_v14 }
 0x86d   :  { %9938 = vmatprep.subr.mxu1 %v13876_v14  ;;  %9858 = vmatpush3.msra.mxu0 %v14096_v59 }
 0x86e   :  { %9859 = vmatprep.mubr.msk.f32.mxu0 %vm10601_vm0, %v13876_v14  ;;  %9939 = vmatpush3.msra.mxu1 %v13967_v35 }
 0x86f   :  { %9860 = vmatmul.mubr.f32.vlgmr.msra.gmra.mxu0 %v5286_v28  ;;  %9897 = vmatprep.subr.mxu0 %v13876_v14  ;;  %v14131_v28 = vld [vmem:[#allocation62_spill] sm:$0xff] }
 0x870   :  { %9940 = vmatprep.subr.mxu1 %v13876_v14  ;;  %9898 = vmatpush3.msra.mxu0 %v14098_v42 }
 0x871   :  { %9941 = vmatpush3.msra.mxu1 %v13969_v29  ;;  %9899 = vmatprep.subr.mxu0 %v13876_v14 }
 0x872   :  { %9942 = vmatprep.subr.mxu1 %v13876_v14  ;;  %9900 = vmatpush3.msra.mxu0 %v14099_v55 }
 0x873   :  { %9943 = vmatpush3.msra.mxu1 %v13971_v38  ;;  %9901 = vmatprep.subr.mxu0 %v13876_v14 }
 0x874   :  { %9944 = vmatprep.subr.mxu1 %v13876_v14  ;;  %9902 = vmatpush3.msra.mxu0 %v14100_v43 }
 0x875   :  { %9945 = vmatpush3.msra.mxu1 %v13973_v11  ;;  %9903 = vmatprep.subr.mxu0 %v13876_v14 }
 0x876   :  { %9946 = vmatprep.subr.mxu1 %v13876_v14  ;;  %9904 = vmatpush3.msra.mxu0 %v14101_v56 }
 0x877   :  { %9947 = vmatpush3.msra.mxu1 %v13975_v19  ;;  %9905 = vmatprep.subr.mxu0 %v13876_v14 }
 0x878   :  { %9948 = vmatprep.subr.mxu1 %v13876_v14  ;;  %9906 = vmatpush3.msra.mxu0 %v14102_v26 }
 0x879   :  { %9949 = vmatpush3.msra.mxu1 %v13977_v21  ;;  %9907 = vmatprep.subr.mxu0 %v13876_v14 }
 0x87a   :  { %9950 = vmatprep.subr.mxu1 %v13876_v14  ;;  %9908 = vmatpush3.msra.mxu0 %v14103_v46 }
 0x87b   :  { %9951 = vmatpush3.msra.mxu1 %v13979_v40  ;;  %9909 = vmatprep.subr.mxu0 %v13876_v14 }
 0x87c   :  { %9952 = vmatprep.subr.mxu1 %v13876_v14  ;;  %9910 = vmatpush3.msra.mxu0 %v14104_v53 }
 0x87d   :  { %9953 = vmatpush3.msra.mxu1 %v13981_v20  ;;  %9911 = vmatprep.subr.mxu0 %v13876_v14 }
 0x87e   :  { %9954 = vmatprep.subr.mxu1 %v13876_v14  ;;  %9912 = vmatpush3.msra.mxu0 %v14105_v6 }
 0x87f   :  { %9955 = vmatpush3.msra.mxu1 %v13983_v27  ;;  %9913 = vmatprep.subr.mxu0 %v13876_v14 }
 0x880   :  { %9956 = vmatprep.subr.mxu1 %v13876_v14  ;;  %9914 = vmatpush3.msra.mxu0 %v14106_v0 }
 0x881   :  { %9957 = vmatpush3.msra.mxu1 %v14093_v3  ;;  %9915 = vmatprep.subr.mxu0 %v13876_v14 }
 0x882   :  { %9958 = vmatprep.subr.mxu1 %v13876_v14  ;;  %9916 = vmatpush3.msra.mxu0 %v14107_v31 }
 0x883   :  { %9959 = vmatpush3.msra.mxu1 %v14094_v4  ;;  %9917 = vmatprep.subr.mxu0 %v13876_v14 }
 0x884   :  { %9960 = vmatprep.subr.mxu1 %v13876_v14  ;;  %9918 = vmatpush3.msra.mxu0 %v14108_v34 }
 0x885   :  { %9961 = vmatpush3.msra.mxu1 %v14095_v33  ;;  %9919 = vmatprep.subr.mxu0 %v13876_v14 }
 0x886   :  { %9962 = vmatprep.subr.mxu1 %v13876_v14  ;;  %9920 = vmatpush3.msra.mxu0 %v14109_v62 }
 0x887   :  { %9963 = vmatpush3.msra.mxu1 %v14096_v59  ;;  %9964 = vmatprep.mubr.msk.f32.mxu1 %vm10601_vm0, %v13876_v14 }
 0x888   :  { %9921 = vmatprep.subr.mxu0 %v13876_v14  ;;  %9965 = vmatmul.mubr.f32.vlgmr.msra.gmra.mxu1 %v5284_v9  ;;  %v14133_v9 = vld [vmem:[#allocation93_spill] sm:$0xff] }
 0x889   :  { %10002 = vmatprep.subr.mxu1 %v13876_v14  ;;  %9922 = vmatpush3.msra.mxu0 %v14110_v50 }
 0x88a   :  { %10003 = vmatpush3.msra.mxu1 %v10851_v57  ;;  %9923 = vmatprep.subr.mxu0 %v13876_v14 }
 0x88b   :  { %10004 = vmatprep.subr.mxu1 %v13876_v14  ;;  %9924 = vmatpush3.msra.mxu0 %v14111_v41 }
 0x88c   :  { %10005 = vmatpush3.msra.mxu1 %v13963_v8  ;;  %9925 = vmatprep.subr.mxu0 %v13876_v14 }
 0x88d   :  { %10006 = vmatprep.subr.mxu1 %v13876_v14  ;;  %9926 = vmatpush3.msra.mxu0 %v14112_v60 }
 0x88e   :  { %10007 = vmatpush3.msra.mxu1 %v13965_v1  ;;  %9927 = vmatprep.subr.mxu0 %v13876_v14 }
 0x88f   :  { %10008 = vmatprep.subr.mxu1 %v13876_v14  ;;  %9928 = vmatpush3.msra.mxu0 %v14113_v13 }
 0x890   :  { %9929 = vmatprep.mubr.msk.f32.mxu0 %vm10601_vm0, %v13876_v14  ;;  %10009 = vmatpush3.msra.mxu1 %v13967_v35 }
 0x891   :  { %9930 = vmatmul.mubr.f32.vlgmr.msra.gmra.mxu0 %v12836_v36  ;;  %9967 = vmatprep.subr.mxu0 %v13876_v14  ;;  %v14132_v36 = vld [vmem:[#allocation92_spill] sm:$0xff] }
 0x892   :  { %10010 = vmatprep.subr.mxu1 %v13876_v14  ;;  %9968 = vmatpush3.msra.mxu0 %v14114_v44  ;;  %v14160_v44 = vld [vmem:[#allocation119_spill] sm:$0xff] }
 0x893   :  { %10011 = vmatpush3.msra.mxu1 %v13969_v29  ;;  %9969 = vmatprep.subr.mxu0 %v13876_v14 }
 0x894   :  { %10012 = vmatprep.subr.mxu1 %v13876_v14  ;;  %9970 = vmatpush3.msra.mxu0 %v14115_v30  ;;  %v14159_v30 = vld [vmem:[#allocation139_spill] sm:$0xff] }
 0x895   :  { %10013 = vmatpush3.msra.mxu1 %v13971_v38  ;;  %9971 = vmatprep.subr.mxu0 %v13876_v14 }
 0x896   :  { %10014 = vmatprep.subr.mxu1 %v13876_v14  ;;  %9972 = vmatpush3.msra.mxu0 %v14116_v5 }
 0x897   :  { %10015 = vmatpush3.msra.mxu1 %v13973_v11  ;;  %9973 = vmatprep.subr.mxu0 %v13876_v14 }
 0x898   :  { %10016 = vmatprep.subr.mxu1 %v13876_v14  ;;  %9974 = vmatpush3.msra.mxu0 %v14117_v54 }
 0x899   :  { %10017 = vmatpush3.msra.mxu1 %v13975_v19  ;;  %9975 = vmatprep.subr.mxu0 %v13876_v14 }
 0x89a   :  { %10018 = vmatprep.subr.mxu1 %v13876_v14  ;;  %9976 = vmatpush3.msra.mxu0 %v14118_v18  ;;  %v14155_v18 = vld [vmem:[#allocation137_spill] sm:$0xff] }
 0x89b   :  { %10019 = vmatpush3.msra.mxu1 %v13977_v21  ;;  %9977 = vmatprep.subr.mxu0 %v13876_v14 }
 0x89c   :  { %10020 = vmatprep.subr.mxu1 %v13876_v14  ;;  %9978 = vmatpush3.msra.mxu0 %v14119_v48  ;;  %v14153_v48 = vld [vmem:[#allocation136_spill] sm:$0xff] }
 0x89d   :  { %10021 = vmatpush3.msra.mxu1 %v13979_v40  ;;  %9979 = vmatprep.subr.mxu0 %v13876_v14 }
 0x89e   :  { %10022 = vmatprep.subr.mxu1 %v13876_v14  ;;  %9980 = vmatpush3.msra.mxu0 %v14120_v16  ;;  %v14152_v16 = vld [vmem:[#allocation105_spill] sm:$0xff] }
 0x89f   :  { %10023 = vmatpush3.msra.mxu1 %v13981_v20  ;;  %9981 = vmatprep.subr.mxu0 %v13876_v14 }
 0x8a0   :  { %10024 = vmatprep.subr.mxu1 %v13876_v14  ;;  %9982 = vmatpush3.msra.mxu0 %v14121_v2  ;;  %v14151_v2 = vld [vmem:[#allocation132_spill] sm:$0xff] }
 0x8a1   :  { %10025 = vmatpush3.msra.mxu1 %v13983_v27  ;;  %9983 = vmatprep.subr.mxu0 %v13876_v14 }
 0x8a2   :  { %10026 = vmatprep.subr.mxu1 %v13876_v14  ;;  %9984 = vmatpush3.msra.mxu0 %v14122_v24 }
 0x8a3   :  { %10027 = vmatpush3.msra.mxu1 %v14093_v3  ;;  %9985 = vmatprep.subr.mxu0 %v13876_v14 }
 0x8a4   :  { %10028 = vmatprep.subr.mxu1 %v13876_v14  ;;  %9986 = vmatpush3.msra.mxu0 %v14123_v47  ;;  %v14149_v47 = vld [vmem:[#allocation129_spill] sm:$0xff] }
 0x8a5   :  { %10029 = vmatpush3.msra.mxu1 %v14094_v4  ;;  %9987 = vmatprep.subr.mxu0 %v13876_v14 }
 0x8a6   :  { %10030 = vmatprep.subr.mxu1 %v13876_v14  ;;  %9988 = vmatpush3.msra.mxu0 %v14130_v32  ;;  %v14147_v32 = vld [vmem:[#allocation121_spill] sm:$0xff] }
 0x8a7   :  { %10031 = vmatpush3.msra.mxu1 %v14095_v33  ;;  %9989 = vmatprep.subr.mxu0 %v13876_v14 }
 0x8a8   :  { %10032 = vmatprep.subr.mxu1 %v13876_v14  ;;  %9990 = vmatpush3.msra.mxu0 %v14131_v28  ;;  %v14145_v28 = vld [vmem:[#allocation117_spill] sm:$0xff] }
 0x8a9   :  { %10033 = vmatpush3.msra.mxu1 %v14096_v59  ;;  %10034 = vmatprep.mubr.msk.f32.mxu1 %vm10601_vm0, %v13876_v14 }
 0x8aa   :  { %9991 = vmatprep.subr.mxu0 %v13876_v14  ;;  %10035 = vmatmul.mubr.f32.vlgmr.msra.gmra.mxu1 %v12825_v58 }
 0x8ab   :  { %9992 = vmatpush3.msra.mxu0 %v14126_v10  ;;  %9999 = vmatprep.mubr.msk.f32.mxu0 %vm10601_vm0, %v13876_v14  ;;  %v14134_v10 = vld [vmem:[#allocation95_spill] sm:$0xff] }
 0x8ac   :  { %9993 = vmatprep.subr.mxu0 %v13876_v14  ;;  %10072 = vmatprep.subr.mxu1 %v13876_v14 }
 0x8ad   :  { %9994 = vmatpush3.msra.mxu0 %v14127_v51  ;;  %10073 = vmatpush3.msra.mxu1 %v14132_v36  ;;  %v14135_v36 = vld [vmem:[#allocation96_spill] sm:$0xff]  ;;  %v14143_v51 = vld [vmem:[#allocation113_spill] sm:$0xff] }
 0x8ae   :  { %9995 = vmatprep.subr.mxu0 %v13876_v14  ;;  %10074 = vmatprep.subr.mxu1 %v13876_v14 }
 0x8af   :  { %9996 = vmatpush3.msra.mxu0 %v14128_v17  ;;  %10075 = vmatpush3.msra.mxu1 %v14133_v9  ;;  %v14136_v17 = vld [vmem:[#allocation27_spill] sm:$0xff]  ;;  %v14137_v9 = vld [vmem:[#allocation97_spill] sm:$0xff] }
 0x8b0   :  { %9997 = vmatprep.subr.mxu0 %v13876_v14  ;;  %10076 = vmatprep.subr.mxu1 %v13876_v14 }
 0x8b1   :  { %9998 = vmatpush3.msra.mxu0 %v14129_v63  ;;  %10077 = vmatpush3.msra.mxu1 %v14134_v10  ;;  %v14138_v63 = vld [vmem:[#allocation31_spill] sm:$0xff]  ;;  %v14139_v10 = vld [vmem:[#allocation98_spill] sm:$0xff] }
 0x8b2   :  { %10000 = vmatmul.mubr.f32.vlgmr.msra.gmra.mxu0 %v12825_v58  ;;  %10078 = vmatprep.subr.mxu1 %v13876_v14  ;;  %v14140_v58 = vld [vmem:[#allocation35_spill] sm:$0xff] }
 0x8b3   :  { %10079 = vmatpush3.msra.mxu1 %v14135_v36  ;;  %10037 = vmatprep.subr.mxu0 %v13876_v14  ;;  %v14141_v36 = vld [vmem:[#allocation109_spill] sm:$0xff] }
 0x8b4   :  { %10080 = vmatprep.subr.mxu1 %v13876_v14  ;;  %10038 = vmatpush3.msra.mxu0 %v14136_v17 }
 0x8b5   :  { %10081 = vmatpush3.msra.mxu1 %v14137_v9  ;;  %10039 = vmatprep.subr.mxu0 %v13876_v14  ;;  %v14142_v9 = vld [vmem:[#allocation42_spill] sm:$0xff] }
 0x8b6   :  { %10082 = vmatprep.subr.mxu1 %v13876_v14  ;;  %10040 = vmatpush3.msra.mxu0 %v14138_v63 }
 0x8b7   :  { %10083 = vmatpush3.msra.mxu1 %v14139_v10  ;;  %10041 = vmatprep.subr.mxu0 %v13876_v14  ;;  %v14144_v10 = vld [vmem:[#allocation79_spill] sm:$0xff] }
 0x8b8   :  { %10084 = vmatprep.subr.mxu1 %v13876_v14  ;;  %10042 = vmatpush3.msra.mxu0 %v14140_v58 }
 0x8b9   :  { %10085 = vmatpush3.msra.mxu1 %v14141_v36  ;;  %10043 = vmatprep.subr.mxu0 %v13876_v14  ;;  %v14146_v36 = vld [vmem:[#allocation80_spill] sm:$0xff] }
 0x8ba   :  { %10086 = vmatprep.subr.mxu1 %v13876_v14  ;;  %10044 = vmatpush3.msra.mxu0 %v14142_v9 }
 0x8bb   :  { %10087 = vmatpush3.msra.mxu1 %v14143_v51  ;;  %10045 = vmatprep.subr.mxu0 %v13876_v14  ;;  %v14148_v51 = vld [vmem:[#allocation100_spill] sm:$0xff] }
 0x8bc   :  { %10088 = vmatprep.subr.mxu1 %v13876_v14  ;;  %10046 = vmatpush3.msra.mxu0 %v14144_v10 }
 0x8bd   :  { %10089 = vmatpush3.msra.mxu1 %v14145_v28  ;;  %10047 = vmatprep.subr.mxu0 %v13876_v14  ;;  %v14150_v28 = vld [vmem:[#allocation102_spill] sm:$0xff] }
 0x8be   :  { %10090 = vmatprep.subr.mxu1 %v13876_v14  ;;  %10048 = vmatpush3.msra.mxu0 %v14146_v36 }
 0x8bf   :  { %10091 = vmatpush3.msra.mxu1 %v14147_v32  ;;  %10049 = vmatprep.subr.mxu0 %v13876_v14 }
 0x8c0   :  { %10092 = vmatprep.subr.mxu1 %v13876_v14  ;;  %10050 = vmatpush3.msra.mxu0 %v14148_v51 }
 0x8c1   :  { %10093 = vmatpush3.msra.mxu1 %v14149_v47  ;;  %10051 = vmatprep.subr.mxu0 %v13876_v14  ;;  %v14154_v47 = vld [vmem:[#allocation108_spill] sm:$0xff] }
 0x8c2   :  { %v4798_v24 = vpop.f32.mrf.mxu1  ;;  %10094 = vmatprep.subr.mxu1 %v13876_v14  ;;  %10052 = vmatpush3.msra.mxu0 %v14150_v28 }
 0x8c3   :  { %10095 = vmatpush3.msra.mxu1 %v14151_v2  ;;  %10053 = vmatprep.subr.mxu0 %v13876_v14  ;;  %v14156_v2 = vld [vmem:[#allocation112_spill] sm:$0xff] }
 0x8c4   :  { %v9686_v32 = vpop.f32.mrf.mxu1  ;;  %10096 = vmatprep.subr.mxu1 %v13876_v14  ;;  %10054 = vmatpush3.msra.mxu0 %v14152_v16 }
 0x8c5   :  { %10097 = vmatpush3.msra.mxu1 %v14153_v48  ;;  %10055 = vmatprep.subr.mxu0 %v13876_v14  ;;  %v14157_v32 = vld [vmem:[#allocation138_spill] sm:$0xff]  ;;  %v14158_v48 = vld [vmem:[#allocation115_spill] sm:$0xff] }
 0x8c6   :  { %10098 = vmatprep.subr.mxu1 %v13876_v14  ;;  %10056 = vmatpush3.msra.mxu0 %v14154_v47 }
 0x8c7   :  { %10099 = vmatpush3.msra.mxu1 %v14155_v18  ;;  %10057 = vmatprep.subr.mxu0 %v13876_v14 }
 0x8c8   :  { %10100 = vmatprep.subr.mxu1 %v13876_v14  ;;  %10058 = vmatpush3.msra.mxu0 %v14156_v2 }
 0x8c9   :  { %10101 = vmatpush3.msra.mxu1 %v14157_v32  ;;  %10059 = vmatprep.subr.mxu0 %v13876_v14  ;;  %v14161_v32 = vld [vmem:[#allocation124_spill] sm:$0xff] }
 0x8ca   :  { %v4647_v54 = vpop.f32.mrf.mxu0  ;;  %10102 = vmatprep.subr.mxu1 %v13876_v14  ;;  %10060 = vmatpush3.msra.mxu0 %v14158_v48 }
 0x8cb   :  { %v4799_v5 = vadd.f32 %v4798_v24, %v4647_v54  ;;  %10103 = vmatpush3.msra.mxu1 %v14159_v30  ;;  %10061 = vmatprep.subr.mxu0 %v13876_v14  ;;  %v14162_v24 = vld [vmem:[#allocation125_spill] sm:$0xff]  ;;  %v14163_v30 = vld [vmem:[#allocation126_spill] sm:$0xff] }
 0x8cc   :  { %v9651_v18 = vpop.f32.mrf.mxu0  ;;  %10104 = vmatprep.mubr.msk.f32.mxu1 %vm10601_vm0, %v13876_v14  ;;  %10142 = vmatprep.subr.mxu1 %v13876_v14 }
 0x8cd   :  { %10062 = vmatpush3.msra.mxu0 %v14160_v44  ;;  %10069 = vmatprep.mubr.msk.f32.mxu0 %vm10601_vm0, %v13876_v14 }
 0x8ce   :  { %10063 = vmatprep.subr.mxu0 %v13876_v14 }
 0x8cf   :  { %10064 = vmatpush3.msra.mxu0 %v14161_v32 }
 0x8d0   :  { %10065 = vmatprep.subr.mxu0 %v13876_v14 }
 0x8d1   :  { %10066 = vmatpush3.msra.mxu0 %v14162_v24 }
 0x8d2   :  { %10067 = vmatprep.subr.mxu0 %v13876_v14 }
 0x8d3   :  { %10068 = vmatpush3.msra.mxu0 %v14163_v30 }
 0x8d4   :  { %10107 = vmatprep.subr.mxu0 %v13876_v14 }
 0x8e2   :  { %v4991_v54 = vpop.f32.mrf.mxu1 }
 0x8e4   :  { %v9756_v18 = vpop.f32.mrf.mxu1 }
 0x8eb   :  { %v4902_v13 = vpop.f32.mrf.mxu0 }
 0x8ec   :  { %v4903_v60 = vadd.f32 %v4902_v13, %v4799_v5 }
 0x8ed   :  { %v9721_v41 = vpop.f32.mrf.mxu0 }
 0x8ee   :  { %v4992_v50 = vadd.f32 %v4991_v54, %v4903_v60 }
 0x904   :  { %v5197_v62 = vpop.f32.mrf.mxu1 }
 0x906   :  { %v9826_v34 = vpop.f32.mrf.mxu1 }
 0x90d   :  { %v5110_v31 = vpop.f32.mrf.mxu0 }
 0x90e   :  { %v5111_v0 = vadd.f32 %v5110_v31, %v4992_v50 }
 0x90f   :  { %v9791_v6 = vpop.f32.mrf.mxu0 }
 0x910   :  { %v5198_v53 = vadd.f32 %v5197_v62, %v5111_v0  ;;  %v14164_v0 = vld [vmem:[#allocation99_spill] sm:$0xff] }
 0x926   :  { %v5439_v46 = vpop.f32.mrf.mxu1 }
 0x928   :  { %v9896_v26 = vpop.f32.mrf.mxu1 }
 0x92f   :  { %v5288_v56 = vpop.f32.mrf.mxu0 }
 0x930   :  { %v5289_v4 = vadd.f32 1e-08, %v5288_v56 }
 0x931   :  { %v9861_v43 = vpop.f32.mrf.mxu0 }
 0x932   :  { %v5440_v3 = vadd.f32 %v5439_v46, %v5289_v4  ;;  %v14165_v46 = vld [vmem:[#allocation81_spill] sm:$0xff] }
 0x948   :  { %v5632_v55 = vpop.f32.mrf.mxu1 }
 0x94a   :  { %v9966_v42 = vpop.f32.mrf.mxu1 }
 0x951   :  { %v5543_v59 = vpop.f32.mrf.mxu0 }
 0x952   :  { %v5544_v41 = vadd.f32 %v5543_v59, %v5440_v3 }
 0x953   :  { %v9931_v33 = vpop.f32.mrf.mxu0 }
 0x954   :  { %v5633_v60 = vadd.f32 %v5632_v55, %v5544_v41  ;;  %v14169_v41 = vld [vmem:[#allocation85_spill] sm:$0xff] }
 0x96a   :  { %v5838_v18 = vpop.f32.mrf.mxu1 }
 0x96c   :  { %v10036_v13 = vpop.f32.mrf.mxu1 }
 0x96d   :  { %v14168_v13 = vld [vmem:[#allocation84_spill] sm:$0xff] }
 0x972   :  { %v5751_v5 = vpop.f32.mrf.mxu0 }
 0x973   :  { %v5752_v34 = vadd.f32 %v5751_v5, %v5633_v60  ;;  %v14170_v60 = vld [vmem:[#allocation86_spill] sm:$0xff]  ;;  %v14171_v5 = vld [vmem:[#allocation101_spill] sm:$0xff] }
 0x974   :  { %v10001_v54 = vpop.f32.mrf.mxu0 }
 0x975   :  { %v5839_v31 = vadd.f32 %v5838_v18, %v5752_v34  ;;  %v14167_v18 = vld [vmem:[#allocation83_spill] sm:$0xff]  ;;  %v14172_v34 = vld [vmem:[#allocation104_spill] sm:$0xff] }
 0x976   :  { %v14173_v54 = vld [vmem:[#allocation107_spill] sm:$0xff] }
 0x977   :  { %10478 = vrsqrt.f32 %v5839_v31  ;;  %v14174_v31 = vld [vmem:[#allocation111_spill] sm:$0xff] }
 0x984   :  { %v10479_v6 = vpop.eup %10478 }
 0x985   :  { %v5846_v26 = vrot.slane %v10479_v6, %v14164_v0  ;;  %v14175_v6 = vld [vmem:[#allocation116_spill] sm:$0xff]  ;;  %v14176_v0 = vld [vmem:[#allocation118_spill] sm:$0xff] }
 0x987   :  { %v5847_v62 = vmul.f32 %v5846_v26, %v5198_v53  ;;  %v14166_v53 = vld [vmem:[#allocation82_spill] sm:$0xff]  ;;  %v14177_v26 = vld [vmem:[#allocation123_spill] sm:$0xff] }
 0x989   :  { %5848 = vmax.xlane.f32.xlu1 %v5847_v62 }
 0xa12   :  { %v5849_v43 = vpop.xlane.xlu1 %5848 }
 0xa13   :  { %v5850_v42 = vsub.f32 %v5847_v62, %v5849_v43  ;;  %v14178_v62 = vld [vmem:[#allocation128_spill] sm:$0xff]  ;;  %v14179_v43 = vld [vmem:[#allocation130_spill] sm:$0xff] }
 0xa15   :  { %v5851_v50 = vmul.f32 1.442695, %v5850_v42  ;;  %v14195_v42 = vld [vmem:[#allocation23_spill] sm:$0xff] }
 0xa17   :  { %10480 = vpow2.f32 %v5851_v50  ;;  %v14197_v50 = vld [vmem:[#allocation135_spill] sm:$0xff] }
 0xa24   :  { %v13074_v33 = vpop.eup %10480 }
 0xa25   :  { %v13077_v4 = vand.u32 4294901760, %v13074_v33 }
 0xa27   :  { %10105 = vmatmul.mubr.f32.vlgmr.msra.gmra.mxu1 %v13077_v4  ;;  %v13082_v59 = vsub.f32 %v13074_v33, %v13077_v4 }
 0xa28   :  { %10143 = vmatpush3.msra.mxu1 %v14136_v17  ;;  %10174 = vmatprep.mubr.msk.f32.mxu1 %vm10601_vm0, %v13876_v14 }
 0xa29   :  { %10144 = vmatprep.subr.mxu1 %v13876_v14  ;;  %v5936_v3 = vand.u32 4294901760, %v13082_v59 }
 0xa2a   :  { %10145 = vmatpush3.msra.mxu1 %v14138_v63 }
 0xa2b   :  { %10146 = vmatprep.subr.mxu1 %v13876_v14  ;;  %v5937_v55 = vsub.f32 %v13082_v59, %v5936_v3 }
 0xa2c   :  { %10147 = vmatpush3.msra.mxu1 %v14140_v58 }
 0xa2d   :  { %10148 = vmatprep.subr.mxu1 %v13876_v14  ;;  %v5938_v56 = vand.u32 4294901760, %v5937_v55 }
 0xa2e   :  { %10149 = vmatpush3.msra.mxu1 %v14142_v9 }
 0xa2f   :  { %10150 = vmatprep.subr.mxu1 %v13876_v14  ;;  %10070 = vmatmul.mubr.f32.vlgmr.msra.gmra.mxu0 %v5938_v56 }
 0xa30   :  { %10108 = vmatpush3.msra.mxu0 %v14165_v46  ;;  %10151 = vmatpush3.msra.mxu1 %v14144_v10 }
 0xa31   :  { %10109 = vmatprep.subr.mxu0 %v13876_v14  ;;  %10152 = vmatprep.subr.mxu1 %v13876_v14 }
 0xa32   :  { %10110 = vmatpush3.msra.mxu0 %v14166_v53  ;;  %10153 = vmatpush3.msra.mxu1 %v14146_v36 }
 0xa33   :  { %10111 = vmatprep.subr.mxu0 %v13876_v14  ;;  %10154 = vmatprep.subr.mxu1 %v13876_v14 }
 0xa34   :  { %10112 = vmatpush3.msra.mxu0 %v14167_v18  ;;  %10155 = vmatpush3.msra.mxu1 %v14148_v51 }
 0xa35   :  { %10113 = vmatprep.subr.mxu0 %v13876_v14  ;;  %10156 = vmatprep.subr.mxu1 %v13876_v14 }
 0xa36   :  { %10114 = vmatpush3.msra.mxu0 %v14168_v13  ;;  %10157 = vmatpush3.msra.mxu1 %v14150_v28 }
 0xa37   :  { %10115 = vmatprep.subr.mxu0 %v13876_v14  ;;  %10158 = vmatprep.subr.mxu1 %v13876_v14 }
 0xa38   :  { %10116 = vmatpush3.msra.mxu0 %v14169_v41  ;;  %10159 = vmatpush3.msra.mxu1 %v14152_v16 }
 0xa39   :  { %10117 = vmatprep.subr.mxu0 %v13876_v14  ;;  %10160 = vmatprep.subr.mxu1 %v13876_v14 }
 0xa3a   :  { %10118 = vmatpush3.msra.mxu0 %v14170_v60  ;;  %10161 = vmatpush3.msra.mxu1 %v14154_v47 }
 0xa3b   :  { %10119 = vmatprep.subr.mxu0 %v13876_v14  ;;  %10162 = vmatprep.subr.mxu1 %v13876_v14 }
 0xa3c   :  { %10120 = vmatpush3.msra.mxu0 %v14171_v5  ;;  %10163 = vmatpush3.msra.mxu1 %v14156_v2 }
 0xa3d   :  { %10121 = vmatprep.subr.mxu0 %v13876_v14  ;;  %10164 = vmatprep.subr.mxu1 %v13876_v14 }
 0xa3e   :  { %10122 = vmatpush3.msra.mxu0 %v14172_v34  ;;  %10165 = vmatpush3.msra.mxu1 %v14158_v48 }
 0xa3f   :  { %10123 = vmatprep.subr.mxu0 %v13876_v14  ;;  %10166 = vmatprep.subr.mxu1 %v13876_v14 }
 0xa40   :  { %10124 = vmatpush3.msra.mxu0 %v14173_v54  ;;  %10167 = vmatpush3.msra.mxu1 %v14160_v44 }
 0xa41   :  { %10125 = vmatprep.subr.mxu0 %v13876_v14  ;;  %10168 = vmatprep.subr.mxu1 %v13876_v14 }
 0xa42   :  { %10126 = vmatpush3.msra.mxu0 %v14174_v31  ;;  %10169 = vmatpush3.msra.mxu1 %v14161_v32 }
 0xa43   :  { %10127 = vmatprep.subr.mxu0 %v13876_v14  ;;  %10170 = vmatprep.subr.mxu1 %v13876_v14 }
 0xa44   :  { %10128 = vmatpush3.msra.mxu0 %v14175_v6  ;;  %10171 = vmatpush3.msra.mxu1 %v14162_v24 }
 0xa45   :  { %10129 = vmatprep.subr.mxu0 %v13876_v14  ;;  %10172 = vmatprep.subr.mxu1 %v13876_v14 }
 0xa46   :  { %10130 = vmatpush3.msra.mxu0 %v14176_v0  ;;  %10173 = vmatpush3.msra.mxu1 %v14163_v30 }
 0xa47   :  { %10131 = vmatprep.subr.mxu0 %v13876_v14  ;;  %10175 = vmatmul.mubr.f32.vlgmr.msra.gmra.mxu1 %v5936_v3 }
 0xa48   :  { %10212 = vmatprep.subr.mxu1 %v13876_v14  ;;  %10132 = vmatpush3.msra.mxu0 %v14177_v26 }
 0xa49   :  { %10213 = vmatpush3.msra.mxu1 %v14136_v17  ;;  %10133 = vmatprep.subr.mxu0 %v13876_v14  ;;  %v14180_v17 = vld [vmem:[#allocation131_spill] sm:$0xff] }
 0xa4a   :  { %10214 = vmatprep.subr.mxu1 %v13876_v14  ;;  %10134 = vmatpush3.msra.mxu0 %v14178_v62  ;;  %v14205_v62 = vld [vmem:[#allocation78_spill] sm:$0xff] }
 0xa4b   :  { %10215 = vmatpush3.msra.mxu1 %v14138_v63  ;;  %10135 = vmatprep.subr.mxu0 %v13876_v14  ;;  %v14181_v63 = vld [vmem:[#allocation87_spill] sm:$0xff] }
 0xa4c   :  { %10216 = vmatprep.subr.mxu1 %v13876_v14  ;;  %10136 = vmatpush3.msra.mxu0 %v14179_v43 }
 0xa4d   :  { %10217 = vmatpush3.msra.mxu1 %v14140_v58  ;;  %10137 = vmatprep.subr.mxu0 %v13876_v14  ;;  %v14182_v58 = vld [vmem:[#allocation88_spill] sm:$0xff] }
 0xa4e   :  { %10218 = vmatprep.subr.mxu1 %v13876_v14  ;;  %10138 = vmatpush3.msra.mxu0 %v14180_v17 }
 0xa4f   :  { %10139 = vmatprep.mubr.msk.f32.mxu0 %vm10601_vm0, %v13876_v14  ;;  %10219 = vmatpush3.msra.mxu1 %v14142_v9  ;;  %v14183_v9 = vld [vmem:[#allocation89_spill] sm:$0xff] }
 0xa50   :  { %10140 = vmatmul.mubr.f32.vlgmr.msra.gmra.mxu0 %v13082_v59  ;;  %10177 = vmatprep.subr.mxu0 %v13876_v14 }
 0xa51   :  { %10220 = vmatprep.subr.mxu1 %v13876_v14  ;;  %10178 = vmatpush3.msra.mxu0 %v14181_v63 }
 0xa52   :  { %10221 = vmatpush3.msra.mxu1 %v14144_v10  ;;  %10179 = vmatprep.subr.mxu0 %v13876_v14  ;;  %v14184_v10 = vld [vmem:[#allocation90_spill] sm:$0xff] }
 0xa53   :  { %10222 = vmatprep.subr.mxu1 %v13876_v14  ;;  %10180 = vmatpush3.msra.mxu0 %v14182_v58 }
 0xa54   :  { %10223 = vmatpush3.msra.mxu1 %v14146_v36  ;;  %10181 = vmatprep.subr.mxu0 %v13876_v14  ;;  %v14185_v36 = vld [vmem:[#allocation91_spill] sm:$0xff] }
 0xa55   :  { %10224 = vmatprep.subr.mxu1 %v13876_v14  ;;  %10182 = vmatpush3.msra.mxu0 %v14183_v9 }
 0xa56   :  { %10225 = vmatpush3.msra.mxu1 %v14148_v51  ;;  %10183 = vmatprep.subr.mxu0 %v13876_v14  ;;  %v14186_v51 = vld [vmem:[#allocation94_spill] sm:$0xff] }
 0xa57   :  { %10226 = vmatprep.subr.mxu1 %v13876_v14  ;;  %10184 = vmatpush3.msra.mxu0 %v14184_v10 }
 0xa58   :  { %10227 = vmatpush3.msra.mxu1 %v14150_v28  ;;  %10185 = vmatprep.subr.mxu0 %v13876_v14  ;;  %v14187_v28 = vld [vmem:[#allocation103_spill] sm:$0xff] }
 0xa59   :  { %10228 = vmatprep.subr.mxu1 %v13876_v14  ;;  %10186 = vmatpush3.msra.mxu0 %v14185_v36 }
 0xa5a   :  { %10229 = vmatpush3.msra.mxu1 %v14152_v16  ;;  %10187 = vmatprep.subr.mxu0 %v13876_v14  ;;  %v14188_v16 = vld [vmem:[#allocation106_spill] sm:$0xff] }
 0xa5b   :  { %10230 = vmatprep.subr.mxu1 %v13876_v14  ;;  %10188 = vmatpush3.msra.mxu0 %v14186_v51 }
 0xa5c   :  { %10231 = vmatpush3.msra.mxu1 %v14154_v47  ;;  %10189 = vmatprep.subr.mxu0 %v13876_v14  ;;  %v14189_v47 = vld [vmem:[#allocation110_spill] sm:$0xff] }
 0xa5d   :  { %10232 = vmatprep.subr.mxu1 %v13876_v14  ;;  %10190 = vmatpush3.msra.mxu0 %v14187_v28 }
 0xa5e   :  { %10233 = vmatpush3.msra.mxu1 %v14156_v2  ;;  %10191 = vmatprep.subr.mxu0 %v13876_v14  ;;  %v14190_v2 = vld [vmem:[#allocation114_spill] sm:$0xff] }
 0xa5f   :  { %10234 = vmatprep.subr.mxu1 %v13876_v14  ;;  %10192 = vmatpush3.msra.mxu0 %v14188_v16 }
 0xa60   :  { %10235 = vmatpush3.msra.mxu1 %v14158_v48  ;;  %10193 = vmatprep.subr.mxu0 %v13876_v14  ;;  %v14191_v48 = vld [vmem:[#allocation120_spill] sm:$0xff] }
 0xa61   :  { %10236 = vmatprep.subr.mxu1 %v13876_v14  ;;  %10194 = vmatpush3.msra.mxu0 %v14189_v47 }
 0xa62   :  { %10237 = vmatpush3.msra.mxu1 %v14160_v44  ;;  %10195 = vmatprep.subr.mxu0 %v13876_v14  ;;  %v14192_v44 = vld [vmem:[#allocation122_spill] sm:$0xff] }
 0xa63   :  { %10238 = vmatprep.subr.mxu1 %v13876_v14  ;;  %10196 = vmatpush3.msra.mxu0 %v14190_v2 }
 0xa64   :  { %10239 = vmatpush3.msra.mxu1 %v14161_v32  ;;  %10197 = vmatprep.subr.mxu0 %v13876_v14  ;;  %v14193_v32 = vld [vmem:[#allocation127_spill] sm:$0xff] }
 0xa65   :  { %10240 = vmatprep.subr.mxu1 %v13876_v14  ;;  %10198 = vmatpush3.msra.mxu0 %v14191_v48  ;;  %v14206_v48 = vld [vmem:[#allocation15_spill] sm:$0xff] }
 0xa66   :  { %10241 = vmatpush3.msra.mxu1 %v14162_v24  ;;  %10199 = vmatprep.subr.mxu0 %v13876_v14  ;;  %v14194_v24 = vld [vmem:[#allocation133_spill] sm:$0xff] }
 0xa67   :  { %10242 = vmatprep.subr.mxu1 %v13876_v14  ;;  %10200 = vmatpush3.msra.mxu0 %v14192_v44  ;;  %v14207_v44 = vld [vmem:[#allocation18_spill] sm:$0xff] }
 0xa68   :  { %10243 = vmatpush3.msra.mxu1 %v14163_v30  ;;  %10244 = vmatprep.mubr.msk.f32.mxu1 %vm10601_vm0, %v13876_v14  ;;  %v14196_v30 = vld [vmem:[#allocation134_spill] sm:$0xff] }
 0xa69   :  { %10201 = vmatprep.subr.mxu0 %v13876_v14  ;;  %10245 = vmatmul.mubr.f32.vlgmr.msra.gmra.mxu1 %v13077_v4 }
 0xa6a   :  { %10202 = vmatpush3.msra.mxu0 %v14193_v32  ;;  %10209 = vmatprep.mubr.msk.f32.mxu0 %vm10601_vm0, %v13876_v14  ;;  %v14208_v32 = vld [vmem:[#allocation21_spill] sm:$0xff] }
 0xa6b   :  { %10203 = vmatprep.subr.mxu0 %v13876_v14  ;;  %10282 = vmatprep.subr.mxu1 %v13876_v14 }
 0xa6c   :  { %10204 = vmatpush3.msra.mxu0 %v14194_v24  ;;  %10283 = vmatpush3.msra.mxu1 %v14195_v42  ;;  %v14209_v24 = vld [vmem:[#allocation25_spill] sm:$0xff]  ;;  %v14210_v42 = vld [vmem:[#allocation30_spill] sm:$0xff] }
 0xa6d   :  { %10205 = vmatprep.subr.mxu0 %v13876_v14  ;;  %10284 = vmatprep.subr.mxu1 %v13876_v14 }
 0xa6e   :  { %10206 = vmatpush3.msra.mxu0 %v14196_v30  ;;  %10285 = vmatpush3.msra.mxu1 %v13881_v49  ;;  %v14198_v49 = vld [vmem:[#allocation64_spill] sm:$0xff] }
 0xa6f   :  { %10207 = vmatprep.subr.mxu0 %v13876_v14  ;;  %10286 = vmatprep.subr.mxu1 %v13876_v14  ;;  %v14211_v30 = vld [vmem:[#allocation32_spill] sm:$0xff] }
 0xa70   :  { %10208 = vmatpush3.msra.mxu0 %v14197_v50  ;;  %10287 = vmatpush3.msra.mxu1 %v13883_v25  ;;  %v14199_v25 = vld [vmem:[#allocation76_spill] sm:$0xff]  ;;  %v14212_v50 = vld [vmem:[#allocation37_spill] sm:$0xff] }
 0xa71   :  { %10210 = vmatmul.mubr.f32.vlgmr.msra.gmra.mxu0 %v13077_v4  ;;  %10288 = vmatprep.subr.mxu1 %v13876_v14 }
 0xa72   :  { %10289 = vmatpush3.msra.mxu1 %v13885_v45  ;;  %10247 = vmatprep.subr.mxu0 %v13876_v14  ;;  %v14200_v45 = vld [vmem:[#allocation77_spill] sm:$0xff] }
 0xa73   :  { %10290 = vmatprep.subr.mxu1 %v13876_v14  ;;  %10248 = vmatpush3.msra.mxu0 %v10851_v57 }
 0xa74   :  { %10291 = vmatpush3.msra.mxu1 %v13886_v61  ;;  %10249 = vmatprep.subr.mxu0 %v13876_v14  ;;  %v14202_v61 = vld [vmem:[#allocation59_spill] sm:$0xff] }
 0xa75   :  { %10292 = vmatprep.subr.mxu1 %v13876_v14  ;;  %10250 = vmatpush3.msra.mxu0 %v13963_v8 }
 0xa76   :  { %10293 = vmatpush3.msra.mxu1 %v13964_v12  ;;  %10251 = vmatprep.subr.mxu0 %v13876_v14 }
 0xa77   :  { %10294 = vmatprep.subr.mxu1 %v13876_v14  ;;  %10252 = vmatpush3.msra.mxu0 %v13965_v1 }
 0xa78   :  { %10295 = vmatpush3.msra.mxu1 %v13966_v15  ;;  %10253 = vmatprep.subr.mxu0 %v13876_v14 }
 0xa79   :  { %10296 = vmatprep.subr.mxu1 %v13876_v14  ;;  %10254 = vmatpush3.msra.mxu0 %v13967_v35 }
 0xa7a   :  { %10297 = vmatpush3.msra.mxu1 %v13968_v7  ;;  %10255 = vmatprep.subr.mxu0 %v13876_v14 }
 0xa7b   :  { %10298 = vmatprep.subr.mxu1 %v13876_v14  ;;  %10256 = vmatpush3.msra.mxu0 %v13969_v29 }
 0xa7c   :  { %10299 = vmatpush3.msra.mxu1 %v13970_v23  ;;  %10257 = vmatprep.subr.mxu0 %v13876_v14 }
 0xa7d   :  { %10300 = vmatprep.subr.mxu1 %v13876_v14  ;;  %10258 = vmatpush3.msra.mxu0 %v13971_v38 }
 0xa7e   :  { %10301 = vmatpush3.msra.mxu1 %v14198_v49  ;;  %10259 = vmatprep.subr.mxu0 %v13876_v14  ;;  %v14213_v49 = vld [vmem:[#allocation40_spill] sm:$0xff] }
 0xa7f   :  { %10302 = vmatprep.subr.mxu1 %v13876_v14  ;;  %10260 = vmatpush3.msra.mxu0 %v13973_v11 }
 0xa80   :  { %10303 = vmatpush3.msra.mxu1 %v13974_v37  ;;  %10261 = vmatprep.subr.mxu0 %v13876_v14 }
 0xa81   :  { %10304 = vmatprep.subr.mxu1 %v13876_v14  ;;  %10262 = vmatpush3.msra.mxu0 %v13975_v19 }
 0xa82   :  { %10305 = vmatpush3.msra.mxu1 %v13976_v52  ;;  %10263 = vmatprep.subr.mxu0 %v13876_v14  ;;  %v14204_v52 = vld [vmem:[#allocation61_spill] sm:$0xff] }
 0xa83   :  { %10306 = vmatprep.subr.mxu1 %v13876_v14  ;;  %10264 = vmatpush3.msra.mxu0 %v13977_v21 }
 0xa84   :  { %10307 = vmatpush3.msra.mxu1 %v13978_v22  ;;  %10265 = vmatprep.subr.mxu0 %v13876_v14  ;;  %v14203_v22 = vld [vmem:[#allocation60_spill] sm:$0xff] }
 0xa85   :  { %10308 = vmatprep.subr.mxu1 %v13876_v14  ;;  %10266 = vmatpush3.msra.mxu0 %v13979_v40 }
 0xa86   :  { %10309 = vmatpush3.msra.mxu1 %v13980_v39  ;;  %10267 = vmatprep.subr.mxu0 %v13876_v14  ;;  %v14201_v39 = vld [vmem:[#allocation58_spill] sm:$0xff] }
 0xa87   :  { %10310 = vmatprep.subr.mxu1 %v13876_v14  ;;  %10268 = vmatpush3.msra.mxu0 %v13981_v20 }
 0xa88   :  { %10311 = vmatpush3.msra.mxu1 %v14199_v25  ;;  %10269 = vmatprep.subr.mxu0 %v13876_v14  ;;  %v14214_v25 = vld [vmem:[#allocation45_spill] sm:$0xff] }
 0xa89   :  { %10312 = vmatprep.subr.mxu1 %v13876_v14  ;;  %10270 = vmatpush3.msra.mxu0 %v13983_v27 }
 0xa8a   :  { %10313 = vmatpush3.msra.mxu1 %v14200_v45  ;;  %10271 = vmatprep.subr.mxu0 %v13876_v14  ;;  %v14215_v45 = vld [vmem:[#allocation50_spill] sm:$0xff] }
 0xa8b   :  { %10314 = vmatprep.mubr.msk.f32.mxu1 %vm10601_vm0, %v13876_v14  ;;  %10352 = vmatprep.subr.mxu1 %v13876_v14 }
 0xa8c   :  { %10272 = vmatpush3.msra.mxu0 %v14201_v39  ;;  %10279 = vmatprep.mubr.msk.f32.mxu0 %vm10601_vm0, %v13876_v14 }
 0xa8d   :  { %10273 = vmatprep.subr.mxu0 %v13876_v14 }
 0xa8e   :  { %10274 = vmatpush3.msra.mxu0 %v14202_v61 }
 0xa8f   :  { %10275 = vmatprep.subr.mxu0 %v13876_v14 }
 0xa90   :  { %10276 = vmatpush3.msra.mxu0 %v14203_v22 }
 0xa91   :  { %10277 = vmatprep.subr.mxu0 %v13876_v14 }
 0xa92   :  { %10278 = vmatpush3.msra.mxu0 %v14204_v52 }
 0xa93   :  { %10317 = vmatprep.subr.mxu0 %v13876_v14 }
 0xae7   :  { %v6091_v37 = vpop.f32.mrf.mxu1 }
 0xae9   :  { %v10106_v23 = vpop.f32.mrf.mxu1 }
 0xaea   :  { %v14217_v23 = vld [vmem:[#allocation57_spill] sm:$0xff] }
 0xaef   :  { %v5940_v12 = vpop.f32.mrf.mxu0 }
 0xaf0   :  { %v6092_v56 = vadd.f32 %v6091_v37, %v5940_v12  ;;  %v14216_v37 = vld [vmem:[#allocation52_spill] sm:$0xff]  ;;  %v14218_v12 = vld [vmem:[#allocation63_spill] sm:$0xff] }
 0xaf1   :  { %v10071_v15 = vpop.f32.mrf.mxu0 }
 0xaf2   :  { %v14219_v15 = vld [vmem:[#allocation65_spill] sm:$0xff] }
 0xb07   :  { %v6284_v7 = vpop.f32.mrf.mxu1 }
 0xb09   :  { %v10176_v4 = vpop.f32.mrf.mxu1 }
 0xb0a   :  { %v14236_v4 = vld [vmem:[#allocation71_spill] sm:$0xff] }
 0xb10   :  { %v6195_v59 = vpop.f32.mrf.mxu0 }
 0xb11   :  { %v6196_v53 = vadd.f32 %v6195_v59, %v6092_v56 }
 0xb12   :  { %v10141_v3 = vpop.f32.mrf.mxu0 }
 0xb13   :  { %v6285_v18 = vadd.f32 %v6284_v7, %v6196_v53  ;;  %v14220_v7 = vld [vmem:[#allocation66_spill] sm:$0xff] }
 0xb29   :  { %v6490_v55 = vpop.f32.mrf.mxu1 }
 0xb2b   :  { %v10246_v46 = vpop.f32.mrf.mxu1 }
 0xb31   :  { %v6403_v13 = vpop.f32.mrf.mxu0 }
 0xb32   :  { %v6404_v41 = vadd.f32 %v6403_v13, %v6285_v18 }
 0xb33   :  { %v10211_v60 = vpop.f32.mrf.mxu0 }
 0xb34   :  { %v6491_v5 = vadd.f32 %v6490_v55, %v6404_v41 }
 0xb36   :  { %10482 = vrcp.f32 %v6491_v5 }
 0xb43   :  { %v10483_v34 = vpop.eup %10482 }
 0xb44   :  { %v6495_v54 = vmul.f32 %v10483_v34, %v6491_v5 }
 0xb46   :  { %v6496_v31 = vsub.f32 2.0, %v6495_v54 }
 0xb48   :  { %v6497_v6 = vmul.f32 %v10483_v34, %v6496_v31 }
 0xb4a   :  { %v6498_v0 = vmul.f32 8.0, %v6497_v6 }
 0xb4c   :  { %v6499_v26 = vmul.f32 %v13074_v33, %v6498_v0 }
 0xb4e   :  { %v6500_v43 = vmul.f32 %v6499_v26, %v14205_v62 }
 0xb50   :  { %v6501_v17 = vrot.slane %v6500_v43, 4 }
 0xb52   :  { %v6502_v63 = vadd.f32 %v6501_v17, %v6500_v43 }
 0xb54   :  { %v6503_v58 = vrot.slane %v6502_v63, 2 }
 0xb56   :  { %v6504_v9 = vadd.f32 %v6503_v58, %v6502_v63 }
 0xb58   :  { %v6505_v10 = vrot.slane %v6504_v9, 1 }
 0xb5a   :  { %v13295_v36 = vadd.f32 %v6505_v10, %v6504_v9 }
 0xb5c   :  { %v6507_v51 = vmul.f32 %v13295_v36, %v13295_v36 }
 0xb5e   :  { %v13299_v28 = vand.u32 4294901760, %v6507_v51 }
 0xb60   :  { %v13302_v16 = vsub.f32 %v6507_v51, %v13299_v28  ;;  %10315 = vmatmul.mubr.f32.vlgmr.msra.gmra.mxu1 %v13299_v28 }
 0xb61   :  { %10353 = vmatpush3.msra.mxu1 %v10851_v57  ;;  %10384 = vmatprep.mubr.msk.f32.mxu1 %vm10601_vm0, %v13876_v14 }
 0xb62   :  { %10354 = vmatprep.subr.mxu1 %v13876_v14  ;;  %v6591_v33 = vand.u32 4294901760, %v13302_v16 }
 0xb63   :  { %10355 = vmatpush3.msra.mxu1 %v13963_v8 }
 0xb64   :  { %10356 = vmatprep.subr.mxu1 %v13876_v14  ;;  %v6592_v47 = vsub.f32 %v13302_v16, %v6591_v33 }
 0xb65   :  { %10357 = vmatpush3.msra.mxu1 %v13965_v1 }
 0xb66   :  { %10358 = vmatprep.subr.mxu1 %v13876_v14  ;;  %v6593_v2 = vand.u32 4294901760, %v6592_v47 }
 0xb67   :  { %10359 = vmatpush3.msra.mxu1 %v13967_v35 }
 0xb68   :  { %10360 = vmatprep.subr.mxu1 %v13876_v14  ;;  %10280 = vmatmul.mubr.f32.vlgmr.msra.gmra.mxu0 %v6593_v2 }
 0xb69   :  { %10318 = vmatpush3.msra.mxu0 %v14206_v48  ;;  %10361 = vmatpush3.msra.mxu1 %v13969_v29 }
 0xb6a   :  { %10319 = vmatprep.subr.mxu0 %v13876_v14  ;;  %10362 = vmatprep.subr.mxu1 %v13876_v14 }
 0xb6b   :  { %10320 = vmatpush3.msra.mxu0 %v14207_v44  ;;  %10363 = vmatpush3.msra.mxu1 %v13971_v38 }
 0xb6c   :  { %10321 = vmatprep.subr.mxu0 %v13876_v14  ;;  %10364 = vmatprep.subr.mxu1 %v13876_v14 }
 0xb6d   :  { %10322 = vmatpush3.msra.mxu0 %v14208_v32  ;;  %10365 = vmatpush3.msra.mxu1 %v13973_v11 }
 0xb6e   :  { %10323 = vmatprep.subr.mxu0 %v13876_v14  ;;  %10366 = vmatprep.subr.mxu1 %v13876_v14 }
 0xb6f   :  { %10324 = vmatpush3.msra.mxu0 %v14209_v24  ;;  %10367 = vmatpush3.msra.mxu1 %v13975_v19 }
 0xb70   :  { %10325 = vmatprep.subr.mxu0 %v13876_v14  ;;  %10368 = vmatprep.subr.mxu1 %v13876_v14 }
 0xb71   :  { %10326 = vmatpush3.msra.mxu0 %v14210_v42  ;;  %10369 = vmatpush3.msra.mxu1 %v13977_v21 }
 0xb72   :  { %10327 = vmatprep.subr.mxu0 %v13876_v14  ;;  %10370 = vmatprep.subr.mxu1 %v13876_v14 }
 0xb73   :  { %10328 = vmatpush3.msra.mxu0 %v14211_v30  ;;  %10371 = vmatpush3.msra.mxu1 %v13979_v40 }
 0xb74   :  { %10329 = vmatprep.subr.mxu0 %v13876_v14  ;;  %10372 = vmatprep.subr.mxu1 %v13876_v14 }
 0xb75   :  { %10330 = vmatpush3.msra.mxu0 %v14212_v50  ;;  %10373 = vmatpush3.msra.mxu1 %v13981_v20 }
 0xb76   :  { %10331 = vmatprep.subr.mxu0 %v13876_v14  ;;  %10374 = vmatprep.subr.mxu1 %v13876_v14 }
 0xb77   :  { %10332 = vmatpush3.msra.mxu0 %v14213_v49  ;;  %10375 = vmatpush3.msra.mxu1 %v13983_v27 }
 0xb78   :  { %10333 = vmatprep.subr.mxu0 %v13876_v14  ;;  %10376 = vmatprep.subr.mxu1 %v13876_v14 }
 0xb79   :  { %10334 = vmatpush3.msra.mxu0 %v14214_v25  ;;  %10377 = vmatpush3.msra.mxu1 %v14201_v39 }
 0xb7a   :  { %10335 = vmatprep.subr.mxu0 %v13876_v14  ;;  %10378 = vmatprep.subr.mxu1 %v13876_v14 }
 0xb7b   :  { %10336 = vmatpush3.msra.mxu0 %v14215_v45  ;;  %10379 = vmatpush3.msra.mxu1 %v14202_v61 }
 0xb7c   :  { %10337 = vmatprep.subr.mxu0 %v13876_v14  ;;  %10380 = vmatprep.subr.mxu1 %v13876_v14 }
 0xb7d   :  { %10338 = vmatpush3.msra.mxu0 %v14216_v37  ;;  %10381 = vmatpush3.msra.mxu1 %v14203_v22 }
 0xb7e   :  { %10339 = vmatprep.subr.mxu0 %v13876_v14  ;;  %10382 = vmatprep.subr.mxu1 %v13876_v14 }
 0xb7f   :  { %10340 = vmatpush3.msra.mxu0 %v14217_v23  ;;  %10383 = vmatpush3.msra.mxu1 %v14204_v52 }
 0xb80   :  { %10341 = vmatprep.subr.mxu0 %v13876_v14  ;;  %10385 = vmatmul.mubr.f32.vlgmr.msra.gmra.mxu1 %v6591_v33 }
 0xb81   :  { %10422 = vmatprep.subr.mxu1 %v13876_v14  ;;  %10342 = vmatpush3.msra.mxu0 %v14218_v12 }
 0xb82   :  { %10423 = vmatpush3.msra.mxu1 %v10851_v57  ;;  %10343 = vmatprep.subr.mxu0 %v13876_v14  ;;  %v14221_v57 = vld [vmem:[#allocation67_spill] sm:$0xff] }
 0xb83   :  { %10424 = vmatprep.subr.mxu1 %v13876_v14  ;;  %10344 = vmatpush3.msra.mxu0 %v14219_v15 }
 0xb84   :  { %10425 = vmatpush3.msra.mxu1 %v13963_v8  ;;  %10345 = vmatprep.subr.mxu0 %v13876_v14  ;;  %v14222_v8 = vld [vmem:[#allocation17_spill] sm:$0xff] }
 0xb85   :  { %10426 = vmatprep.subr.mxu1 %v13876_v14  ;;  %10346 = vmatpush3.msra.mxu0 %v14220_v7 }
 0xb86   :  { %10427 = vmatpush3.msra.mxu1 %v13965_v1  ;;  %10347 = vmatprep.subr.mxu0 %v13876_v14  ;;  %v14223_v1 = vld [vmem:[#allocation20_spill] sm:$0xff] }
 0xb87   :  { %10428 = vmatprep.subr.mxu1 %v13876_v14  ;;  %10348 = vmatpush3.msra.mxu0 %v14221_v57 }
 0xb88   :  { %10349 = vmatprep.mubr.msk.f32.mxu0 %vm10601_vm0, %v13876_v14  ;;  %10429 = vmatpush3.msra.mxu1 %v13967_v35  ;;  %v14224_v35 = vld [vmem:[#allocation24_spill] sm:$0xff] }
 0xb89   :  { %10350 = vmatmul.mubr.f32.vlgmr.msra.gmra.mxu0 %v13302_v16  ;;  %10387 = vmatprep.subr.mxu0 %v13876_v14 }
 0xb8a   :  { %10430 = vmatprep.subr.mxu1 %v13876_v14  ;;  %10388 = vmatpush3.msra.mxu0 %v14222_v8 }
 0xb8b   :  { %10431 = vmatpush3.msra.mxu1 %v13969_v29  ;;  %10389 = vmatprep.subr.mxu0 %v13876_v14  ;;  %v14225_v29 = vld [vmem:[#allocation28_spill] sm:$0xff] }
 0xb8c   :  { %10432 = vmatprep.subr.mxu1 %v13876_v14  ;;  %10390 = vmatpush3.msra.mxu0 %v14223_v1 }
 0xb8d   :  { %10433 = vmatpush3.msra.mxu1 %v13971_v38  ;;  %10391 = vmatprep.subr.mxu0 %v13876_v14  ;;  %v14226_v38 = vld [vmem:[#allocation34_spill] sm:$0xff] }
 0xb8e   :  { %10434 = vmatprep.subr.mxu1 %v13876_v14  ;;  %10392 = vmatpush3.msra.mxu0 %v14224_v35 }
 0xb8f   :  { %10435 = vmatpush3.msra.mxu1 %v13973_v11  ;;  %10393 = vmatprep.subr.mxu0 %v13876_v14  ;;  %v14227_v11 = vld [vmem:[#allocation36_spill] sm:$0xff] }
 0xb90   :  { %10436 = vmatprep.subr.mxu1 %v13876_v14  ;;  %10394 = vmatpush3.msra.mxu0 %v14225_v29 }
 0xb91   :  { %10437 = vmatpush3.msra.mxu1 %v13975_v19  ;;  %10395 = vmatprep.subr.mxu0 %v13876_v14  ;;  %v14228_v19 = vld [vmem:[#allocation39_spill] sm:$0xff] }
 0xb92   :  { %10438 = vmatprep.subr.mxu1 %v13876_v14  ;;  %10396 = vmatpush3.msra.mxu0 %v14226_v38 }
 0xb93   :  { %10439 = vmatpush3.msra.mxu1 %v13977_v21  ;;  %10397 = vmatprep.subr.mxu0 %v13876_v14  ;;  %v14229_v21 = vld [vmem:[#allocation44_spill] sm:$0xff] }
 0xb94   :  { %10440 = vmatprep.subr.mxu1 %v13876_v14  ;;  %10398 = vmatpush3.msra.mxu0 %v14227_v11 }
 0xb95   :  { %10441 = vmatpush3.msra.mxu1 %v13979_v40  ;;  %10399 = vmatprep.subr.mxu0 %v13876_v14  ;;  %v14230_v40 = vld [vmem:[#allocation48_spill] sm:$0xff] }
 0xb96   :  { %10442 = vmatprep.subr.mxu1 %v13876_v14  ;;  %10400 = vmatpush3.msra.mxu0 %v14228_v19 }
 0xb97   :  { %10443 = vmatpush3.msra.mxu1 %v13981_v20  ;;  %10401 = vmatprep.subr.mxu0 %v13876_v14  ;;  %v14231_v20 = vld [vmem:[#allocation54_spill] sm:$0xff] }
 0xb98   :  { %10444 = vmatprep.subr.mxu1 %v13876_v14  ;;  %10402 = vmatpush3.msra.mxu0 %v14229_v21 }
 0xb99   :  { %10445 = vmatpush3.msra.mxu1 %v13983_v27  ;;  %10403 = vmatprep.subr.mxu0 %v13876_v14  ;;  %v14232_v27 = vld [vmem:[#allocation56_spill] sm:$0xff] }
 0xb9a   :  { %10446 = vmatprep.subr.mxu1 %v13876_v14  ;;  %10404 = vmatpush3.msra.mxu0 %v14230_v40 }
 0xb9b   :  { %10447 = vmatpush3.msra.mxu1 %v14201_v39  ;;  %10405 = vmatprep.subr.mxu0 %v13876_v14  ;;  %v14233_v39 = vld [vmem:[#allocation62_spill] sm:$0xff] }
 0xb9c   :  { %10448 = vmatprep.subr.mxu1 %v13876_v14  ;;  %10406 = vmatpush3.msra.mxu0 %v14231_v20 }
 0xb9d   :  { %10449 = vmatpush3.msra.mxu1 %v14202_v61  ;;  %10407 = vmatprep.subr.mxu0 %v13876_v14  ;;  %v14234_v61 = vld [vmem:[#allocation69_spill] sm:$0xff] }
 0xb9e   :  { %10450 = vmatprep.subr.mxu1 %v13876_v14  ;;  %10408 = vmatpush3.msra.mxu0 %v14232_v27 }
 0xb9f   :  { %10451 = vmatpush3.msra.mxu1 %v14203_v22  ;;  %10409 = vmatprep.subr.mxu0 %v13876_v14  ;;  %v14235_v22 = vld [vmem:[#allocation70_spill] sm:$0xff] }
 0xba0   :  { %10452 = vmatprep.subr.mxu1 %v13876_v14  ;;  %10410 = vmatpush3.msra.mxu0 %v14233_v39 }
 0xba1   :  { %10453 = vmatpush3.msra.mxu1 %v14204_v52  ;;  %10454 = vmatprep.mubr.msk.f32.mxu1 %vm10601_vm0, %v13876_v14  ;;  %v14237_v52 = vld [vmem:[#allocation72_spill] sm:$0xff] }
 0xba2   :  { %10411 = vmatprep.subr.mxu0 %v13876_v14  ;;  %10455 = vmatmul.mubr.f32.vlgmr.msra.gmra.mxu1 %v13299_v28 }
 0xba3   :  { %10412 = vmatpush3.msra.mxu0 %v14234_v61  ;;  %10419 = vmatprep.mubr.msk.f32.mxu0 %vm10601_vm0, %v13876_v14 }
 0xba4   :  { %10413 = vmatprep.subr.mxu0 %v13876_v14 }
 0xba5   :  { %10414 = vmatpush3.msra.mxu0 %v14235_v22 }
 0xba6   :  { %10415 = vmatprep.subr.mxu0 %v13876_v14 }
 0xba7   :  { %10416 = vmatpush3.msra.mxu0 %v14236_v4 }
 0xba8   :  { %10417 = vmatprep.subr.mxu0 %v13876_v14 }
 0xba9   :  { %10418 = vmatpush3.msra.mxu0 %v14237_v52 }
 0xbaa   :  { %10420 = vmatmul.mubr.f32.vlgmr.msra.gmra.mxu0 %v13299_v28 }
 0xc20   :  { %v6746_v59 = vpop.f32.mrf.mxu1 }
 0xc22   :  { %v10316_v3 = vpop.f32.mrf.mxu1 }
 0xc28   :  { %v6595_v55 = vpop.f32.mrf.mxu0 }
 0xc29   :  { %v6596_v41 = vadd.f32 1e-08, %v6595_v55 }
 0xc2a   :  { %v10281_v56 = vpop.f32.mrf.mxu0 }
 0xc2b   :  { %v6747_v5 = vadd.f32 %v6746_v59, %v6596_v41 }
 0xc40   :  { %v6939_v46 = vpop.f32.mrf.mxu1 }
 0xc42   :  { %v10386_v53 = vpop.f32.mrf.mxu1 }
 0xc49   :  { %v6850_v18 = vpop.f32.mrf.mxu0 }
 0xc4a   :  { %v6851_v54 = vadd.f32 %v6850_v18, %v6747_v5 }
 0xc4b   :  { %v10351_v13 = vpop.f32.mrf.mxu0 }
 0xc4c   :  { %v6940_v31 = vadd.f32 %v6939_v46, %v6851_v54 }
 0xc62   :  { %v7145_v60 = vpop.f32.mrf.mxu1 }
 0xc64   :  { %v10456_v34 = vpop.f32.mrf.mxu1 }
 0xc6a   :  { %v7058_v6 = vpop.f32.mrf.mxu0 }
 0xc6b   :  { %v7059_v14 = vadd.f32 %v7058_v6, %v6940_v31 }
 0xc6c   :  { %v10421_v0 = vpop.f32.mrf.mxu0 }
 0xc6d   :  { %v7146_v26 = vadd.f32 %v7145_v60, %v7059_v14 }
 0xc6f   :  { %10484 = vrsqrt.f32 %v7146_v26 }
 0xc7c   :  { %v10485_v62 = vpop.eup %10484 }
 0xc7d   :  { %v7150_v43 = vmul.f32 %v10485_v62, %v13295_v36 }
 0xc7f   :  { %7151 = vst [vmem:[#allocation10] sm:$0x1] %v7150_v43 }
 0xc80   :  { %10577 = shalt.err (!%p10574_p10)
}
 0xc81   :  { %7161 = dma.vmem_to_hbm [thread:$0]  %s7159_s3, 16, %s13452_s4, [#allocation4]  }
 0xc82   :  { %10592 = dma.done.wait [#allocation4], 16  }
 0xc83   :  { %10593 = vsyncadd [#allocation4], 4294967280 }
 0xc84   :  { %7165 = vsyncpa [#allocation3], 1 }
 0xc85   :  { %7166 = vsyncpa [#allocation6], 1 }
 0xc86   :  { %7167 = vsyncpa [#allocation9], 1 }
 0xc87   :  { %7168 = vsyncpa [#allocation4], 1 }

</bundles_post_ra>
